<compile_context>
chip_gen: v6e
topology: v6e:2x2x1
jax: 0.10.0
libtpu: 0.0.40
codegen_flags: <defaults>
</compile_context>

<pallas_src>
import functools

import jax
import jax.numpy as jnp
from jax import lax
from jax.experimental import pallas as pl
from jax.experimental.pallas import tpu as pltpu


def _round_up(x, m):
    return ((x + m - 1) // m) * m


def _mlvq_kernel(x_ref, cbd_ref, cbh_ref, cbl_ref, e2_ref,
                 qout_ref, idx_ref, stats_ref, *,
                 num_quantizers, num_valid_tokens, compute_dtype,
                 gather_needs_lo):
    """One (batch, token-tile) step: independent VQ per quantizer slice.

    x_ref    : (1, Q, D, T)     input channel slices, token-last
    cbd_ref  : (Q, Kp, D)       -2 * codebook, compute dtype (distance matmul)
    cbh_ref  : (Q, D, Kp)       codebook^T, high bf16 half (gather matmul)
    cbl_ref  : (Q, D, Kp)       codebook^T, low  bf16 half (gather correction)
    e2_ref   : (Q, Kp, 1)       ||e_k||^2, f32 (padded rows = 1e30)
    qout_ref : (1, Q, D, T)     quantized output (lane-dense)
    idx_ref  : (1, Q, T)        chosen code per token (lane-dense)
    stats_ref: (1, 1, Q+1, Kp)  rows 0..Q-1: per-tile code-usage counts;
                                row Q, lanes 0..Q-1: per-tile SSE (loss).
    """
    tile_tokens = x_ref.shape[-1]
    kp = cbd_ref.shape[1]

    # validity mask for the (possibly padded) last token tile of each batch.
    tok = pl.program_id(1) * tile_tokens + lax.broadcasted_iota(
        jnp.int32, (1, tile_tokens), 1)
    valid = (tok < num_valid_tokens).astype(jnp.float32)          # (1, T)
    valid_c = valid.astype(compute_dtype)

    # q-invariant iotas hoisted out of the unrolled loop (JAX does not CSE
    # broadcast_in_dim).
    kio = lax.broadcasted_iota(jnp.int32, (kp, tile_tokens), 0)   # (Kp, T)
    lane_k = lax.broadcasted_iota(jnp.int32, (1, kp), 1)          # (1, Kp)

    loss_row = jnp.zeros((1, kp), jnp.float32)
    for q in range(num_quantizers):                               # static unroll
        r = x_ref[0, q].astype(jnp.float32)                       # (D, T)

        # argmin_k ||r - e_k||^2 == argmin_k (||e_k||^2 - 2 e_k.r); the ||r||^2
        # term is constant over k and dropped; -2 is folded into cbd (host).
        re = jnp.dot(cbd_ref[q], r.astype(compute_dtype),
                     preferred_element_type=jnp.float32)          # (Kp, T)
        dist = e2_ref[q] + re                                     # (Kp, T)

        # first-index argmin over codes (exact tie-break), lane-dense result.
        min_d = jnp.min(dist, axis=0, keepdims=True)              # (1, T)
        idx = jnp.min(jnp.where(dist == min_d, kio, kp),
                      axis=0, keepdims=True)                      # (1, T)
        onehot = (kio == idx).astype(compute_dtype)               # exact 0/1

        # codebook-row gather as bf16 one-hot MXU matmuls; the hi/lo split of
        # the f32 codebook keeps rows f32-accurate while avoiding the slow
        # multi-pass f32 MXU path.
        quant = jnp.dot(cbh_ref[q], onehot,
                        preferred_element_type=jnp.float32)       # (D, T)
        if gather_needs_lo:
            quant = quant + jnp.dot(cbl_ref[q], onehot,
                                    preferred_element_type=jnp.float32)

        # per-quantizer stores bound live ranges; both outputs are lane-dense.
        qout_ref[0, q] = quant.astype(qout_ref.dtype)
        idx_ref[0, pl.ds(q, 1), :] = idx.astype(jnp.int32)

        diff = (quant - r) * valid
        sse = jnp.sum(diff * diff)
        loss_row = jnp.where(lane_k == q, sse, loss_row)

        # masked per-code usage counts: (1,T).(Kp,T)^T -> (1,Kp) on the MXU.
        stats_ref[0, 0, pl.ds(q, 1), :] = lax.dot_general(
            valid_c, onehot, (((1,), (1,)), ((), ())),
            preferred_element_type=jnp.float32)

    # per-tile SSE vector (lanes 0..Q-1) shares the counts output stream.
    stats_ref[0, 0, pl.ds(num_quantizers, 1), :] = loss_row


def multi_layer_vq_forward(x, codebooks, *, commitment=1.0, tile_tokens=1024,
                           compute_dtype=jnp.bfloat16, out_dtype=None,
                           vmem_limit_bytes=48 * 1024 * 1024):
    """x: (B, Q*D, H, W); codebooks: (Q, K, D).  Returns the MultiLayerVQ tuple."""
    B, C, H, W = x.shape
    Q, K, D = codebooks.shape
    assert C == Q * D, "channel dim must be num_quantizers * codebook_dim"
    N = H * W                       # tokens per batch element
    M = B * N                       # total tokens
    out_dtype = x.dtype if out_dtype is None else out_dtype

    # ---- layout plumbing (free reshape only; no transposes) ----------------
    x4 = x.reshape(B, Q, D, N)

    # pad codebook size to a multiple of 128 lanes; padded rows can never win
    # the argmin because their ||e||^2 is huge.
    Kp = max(128, _round_up(K, 128))
    cb = codebooks.astype(jnp.float32)
    cb_pad = jnp.pad(cb, ((0, 0), (0, Kp - K), (0, 0)))
    e2 = jnp.sum(cb * cb, axis=-1)                                  # (Q, K)
    e2 = jnp.pad(e2, ((0, 0), (0, Kp - K)), constant_values=1e30)
    e2 = e2.reshape(Q, Kp, 1)
    cb_dist = (-2.0 * cb_pad).astype(compute_dtype)                 # (Q, Kp, D)
    cb_t = cb_pad.transpose(0, 2, 1)                                # (Q, D, Kp) f32
    cb_hi = cb_t.astype(compute_dtype)
    gather_needs_lo = compute_dtype != jnp.float32
    cb_lo = (cb_t - cb_hi.astype(jnp.float32)).astype(compute_dtype)

    # token tiling per batch element: lane-dense multiples of 128.
    T = max(128, min(_round_up(tile_tokens, 128), _round_up(N, 128)))
    num_tiles = -(-N // T)
    Np = num_tiles * T
    if Np != N:
        x4 = jnp.pad(x4, ((0, 0), (0, 0), (0, 0), (0, Np - N)))

    kernel = functools.partial(
        _mlvq_kernel, num_quantizers=Q, num_valid_tokens=N,
        compute_dtype=compute_dtype, gather_needs_lo=gather_needs_lo)

    out_shapes = (
        jax.ShapeDtypeStruct((B, Q, D, Np), out_dtype),                 # quantized
        jax.ShapeDtypeStruct((B, Q, Np), jnp.int32),                    # indices
        jax.ShapeDtypeStruct((B, num_tiles, Q + 1, Kp), jnp.float32),   # counts+SSE
    )
    grid_spec = pltpu.PrefetchScalarGridSpec(
        num_scalar_prefetch=0,
        grid=(B, num_tiles),
        in_specs=[
            pl.BlockSpec((1, Q, D, T), lambda b, i: (b, 0, 0, i)),   # x (pipelined)
            pl.BlockSpec((Q, Kp, D), lambda b, i: (0, 0, 0)),        # -2*codebook
            pl.BlockSpec((Q, D, Kp), lambda b, i: (0, 0, 0)),        # codebook^T hi
            pl.BlockSpec((Q, D, Kp), lambda b, i: (0, 0, 0)),        # codebook^T lo
            pl.BlockSpec((Q, Kp, 1), lambda b, i: (0, 0, 0)),        # ||e||^2
        ],
        out_specs=(
            pl.BlockSpec((1, Q, D, T), lambda b, i: (b, 0, 0, i)),
            pl.BlockSpec((1, Q, T), lambda b, i: (b, 0, i)),
            pl.BlockSpec((1, 1, Q + 1, Kp), lambda b, i: (b, i, 0, 0)),
        ),
    )
    qout, idx, stats = pl.pallas_call(
        kernel,
        out_shape=out_shapes,
        grid_spec=grid_spec,
        compiler_params=pltpu.CompilerParams(
            dimension_semantics=("parallel", "parallel"),
            vmem_limit_bytes=vmem_limit_bytes),
    )(x4, cb_dist, cb_hi, cb_lo, e2)

    # ---- epilogue (pure reshapes + tiny reductions) -------------------------
    quantized = qout[..., :N].reshape(B, Q * D, H, W)
    indices = idx[..., :N].reshape(B, Q, H, W)
    stats_sum = jnp.sum(stats, axis=(0, 1))                         # (Q+1, Kp)
    counts = stats_sum[:Q, :K]                                      # (Q, K)
    losses = commitment * stats_sum[Q, :Q] / (M * D)                # (Q,)
    probs = counts / M
    perplexity = jnp.exp(-jnp.sum(probs * jnp.log(probs + 1e-10), axis=-1))
    return quantized, indices, losses, perplexity


def multi_layer_vq_reference(x, codebooks, *, commitment=1.0,
                             compute_dtype=jnp.bfloat16):
    """Pure-JAX reference mirroring the kernel's numerics (bf16 distance matmul)."""
    B, C, H, W = x.shape
    Q, K, D = codebooks.shape
    M = B * H * W
    xq = x.reshape(B, Q, D, H * W).transpose(1, 0, 3, 2).reshape(Q, M, D)

    qs, idxs, losses, perps = [], [], [], []
    for q in range(Q):
        r = xq[q].astype(jnp.float32)                        # (M, D)
        cb = codebooks[q].astype(jnp.float32)                # (K, D)
        e2 = jnp.sum(cb * cb, axis=-1)                       # (K,)
        nb = (-2.0 * cb).astype(compute_dtype)               # folded -2, like kernel
        re = jnp.dot(r.astype(compute_dtype), nb.T,
                     preferred_element_type=jnp.float32)     # (M, K)
        dist = e2[None, :] + re
        idx = jnp.argmin(dist, axis=-1)
        quant = cb[idx]                                      # exact rows
        losses.append(commitment * jnp.mean((quant - r) ** 2))
        counts = jnp.sum(jax.nn.one_hot(idx, K, dtype=jnp.float32), axis=0)
        probs = counts / M
        perps.append(jnp.exp(-jnp.sum(probs * jnp.log(probs + 1e-10))))
        qs.append(quant)
        idxs.append(idx.astype(jnp.int32))

    quantized = (jnp.stack(qs).reshape(Q, B, H, W, D)
                 .transpose(1, 0, 4, 2, 3).reshape(B, Q * D, H, W))
    indices = jnp.stack(idxs).reshape(Q, B, H, W).transpose(1, 0, 2, 3)
    return quantized, indices, jnp.stack(losses), jnp.stack(perps)


if __name__ == "__main__":
    # MultiLayerVQ(num_quantizers=4, dim=32, codebook_size=64) on a
    # (B=2, C=4*32, H=16, W=16) feature map; 256 tokens/batch -> grid (2, 1).
    B, H, W = 2, 16, 16
    Q, K, D = 4, 64, 32

    key = jax.random.PRNGKey(0)
    kx, kc = jax.random.split(key)
    x = jax.random.normal(kx, (B, Q * D, H, W), dtype=jnp.float32)
    codebooks = jax.random.normal(kc, (Q, K, D), dtype=jnp.float32)

    outs = multi_layer_vq_forward(x, codebooks, commitment=1.0)
    quantized, indices, losses, perplexity = jax.block_until_ready(outs)

    q_ref, i_ref, l_ref, p_ref = multi_layer_vq_reference(x, codebooks,
                                                          commitment=1.0)

    assert quantized.shape == (B, Q * D, H, W)
    assert indices.shape == (B, Q, H, W)
    assert losses.shape == (Q,)
    assert perplexity.shape == (Q,)
    assert jnp.array_equal(indices, i_ref), "indices mismatch"
    assert jnp.allclose(quantized, q_ref, atol=2e-5, rtol=1e-5), "quantized mismatch"
    assert jnp.allclose(losses, l_ref, atol=1e-5, rtol=1e-4), "loss mismatch"
    assert jnp.allclose(perplexity, p_ref, atol=1e-4, rtol=1e-4), "perplexity mismatch"

    print("KERNEL_OK")
</pallas_src>

<mosaic_0001>
module attributes {stable_mosaic.version = 11 : i64} {
  func.func @_mlvq_kernel(%arg0: i32, %arg1: i32, %arg2: memref<1x4x32x256xf32, #tpu.memory_space<vmem>>, %arg3: memref<4x128x32xbf16, #tpu.memory_space<vmem>>, %arg4: memref<4x32x128xbf16, #tpu.memory_space<vmem>>, %arg5: memref<4x32x128xbf16, #tpu.memory_space<vmem>>, %arg6: memref<4x128x1xf32, #tpu.memory_space<vmem>>, %arg7: memref<1x4x32x256xf32, #tpu.memory_space<vmem>>, %arg8: memref<1x4x256xi32, #tpu.memory_space<vmem>>, %arg9: memref<1x1x5x128xf32, #tpu.memory_space<vmem>>) attributes {dimension_semantics = [#tpu.dimension_semantics<parallel>, #tpu.dimension_semantics<parallel>], iteration_bounds = array<i64: 2, 1>, scalar_prefetch = 0 : i64, scratch_operands = 0 : i64, tpu.core_type = #tpu.core_type<tc>, window_params = [{transform_indices = @transform_0, window_bounds = array<i64: 1, 4, 32, 256>}, {pipeline_mode = #tpu.pipeline_mode<synchronous>, transform_indices = @transform_1, window_bounds = array<i64: 4, 128, 32>}, {pipeline_mode = #tpu.pipeline_mode<synchronous>, transform_indices = @transform_2, window_bounds = array<i64: 4, 32, 128>}, {pipeline_mode = #tpu.pipeline_mode<synchronous>, transform_indices = @transform_3, window_bounds = array<i64: 4, 32, 128>}, {pipeline_mode = #tpu.pipeline_mode<synchronous>, transform_indices = @transform_4, window_bounds = array<i64: 4, 128, 1>}, {transform_indices = @transform_5, window_bounds = array<i64: 1, 4, 32, 256>}, {transform_indices = @transform_6, window_bounds = array<i64: 1, 4, 256>}, {transform_indices = @transform_7, window_bounds = array<i64: 1, 1, 5, 128>}]} {
    %c256_i32 = arith.constant 256 : i32
    %0 = arith.muli %arg1, %c256_i32 : i32
    %1 = tpu.iota {dimensions = array<i32: 1>} : vector<1x256xi32>
    %2 = vector.broadcast %0 : i32 to vector<1x256xi32>
    %3 = arith.addi %2, %1 : vector<1x256xi32>
    %c256_i32_0 = arith.constant 256 : i32
    %4 = vector.broadcast %c256_i32_0 : i32 to vector<1x256xi32>
    %5 = arith.cmpi slt, %3, %4 : vector<1x256xi32>
    %6 = arith.extui %5 : vector<1x256xi1> to vector<1x256xi32>
    %7 = arith.sitofp %6 : vector<1x256xi32> to vector<1x256xf32>
    %8 = arith.truncf %7 : vector<1x256xf32> to vector<1x256xbf16>
    %9 = tpu.iota {dimensions = array<i32: 0>} : vector<128x256xi32>
    %10 = tpu.iota {dimensions = array<i32: 1>} : vector<1x128xi32>
    %cst = arith.constant 0.000000e+00 : f32
    %11 = vector.broadcast %cst : f32 to vector<1x128xf32>
    %c0 = arith.constant 0 : index
    %c0_1 = arith.constant 0 : index
    %c0_2 = arith.constant 0 : index
    %c0_3 = arith.constant 0 : index
    %12 = vector.load %arg2[%c0, %c0_1, %c0_2, %c0_3] : memref<1x4x32x256xf32, #tpu.memory_space<vmem>>, vector<1x1x32x256xf32>
    %13 = vector.shape_cast %12 : vector<1x1x32x256xf32> to vector<32x256xf32>
    %c0_4 = arith.constant 0 : index
    %c0_5 = arith.constant 0 : index
    %c0_6 = arith.constant 0 : index
    %14 = vector.load %arg3[%c0_4, %c0_5, %c0_6] : memref<4x128x32xbf16, #tpu.memory_space<vmem>>, vector<1x128x32xbf16>
    %15 = vector.shape_cast %14 : vector<1x128x32xbf16> to vector<128x32xbf16>
    %16 = arith.truncf %13 : vector<32x256xf32> to vector<32x256xbf16>
    %cst_7 = arith.constant dense<0.000000e+00> : vector<128x256xf32>
    %17 = tpu.matmul %15, %16, %cst_7 {dimension_numbers = #tpu.dot_dimension_numbers<[1], [0], [0], [1], [0, 0, 1, 1], [], []>} : vector<128x32xbf16>, vector<32x256xbf16>, vector<128x256xf32> -> vector<128x256xf32>
    %c0_8 = arith.constant 0 : index
    %c0_9 = arith.constant 0 : index
    %c0_10 = arith.constant 0 : index
    %18 = vector.load %arg6[%c0_8, %c0_9, %c0_10] : memref<4x128x1xf32, #tpu.memory_space<vmem>>, vector<1x128x1xf32>
    %19 = vector.shape_cast %18 : vector<1x128x1xf32> to vector<128x1xf32>
    %20 = vector.broadcast %19 : vector<128x1xf32> to vector<128x256xf32>
    %21 = arith.addf %20, %17 : vector<128x256xf32>
    %cst_11 = arith.constant dense<0x7F800000> : vector<256xf32>
    %22 = vector.multi_reduction <minimumf>, %21, %cst_11 [0] : vector<128x256xf32> to vector<256xf32>
    %23 = vector.shape_cast %22 : vector<256xf32> to vector<1x256xf32>
    %24 = vector.broadcast %23 : vector<1x256xf32> to vector<128x256xf32>
    %25 = arith.cmpf oeq, %21, %24 : vector<128x256xf32>
    %c128_i32 = arith.constant 128 : i32
    %26 = vector.broadcast %c128_i32 : i32 to vector<128x256xi32>
    %27 = arith.select %25, %9, %26 : vector<128x256xi1>, vector<128x256xi32>
    %cst_12 = arith.constant dense<2147483647> : vector<256xi32>
    %28 = vector.multi_reduction <minsi>, %27, %cst_12 [0] : vector<128x256xi32> to vector<256xi32>
    %29 = vector.shape_cast %28 : vector<256xi32> to vector<1x256xi32>
    %30 = vector.broadcast %29 : vector<1x256xi32> to vector<128x256xi32>
    %31 = arith.cmpi eq, %9, %30 : vector<128x256xi32>
    %32 = arith.extui %31 : vector<128x256xi1> to vector<128x256xi32>
    %33 = arith.sitofp %32 : vector<128x256xi32> to vector<128x256xf32>
    %34 = arith.truncf %33 : vector<128x256xf32> to vector<128x256xbf16>
    %c0_13 = arith.constant 0 : index
    %c0_14 = arith.constant 0 : index
    %c0_15 = arith.constant 0 : index
    %35 = vector.load %arg4[%c0_13, %c0_14, %c0_15] : memref<4x32x128xbf16, #tpu.memory_space<vmem>>, vector<1x32x128xbf16>
    %36 = vector.shape_cast %35 : vector<1x32x128xbf16> to vector<32x128xbf16>
    %cst_16 = arith.constant dense<0.000000e+00> : vector<32x256xf32>
    %37 = tpu.matmul %36, %34, %cst_16 {dimension_numbers = #tpu.dot_dimension_numbers<[1], [0], [0], [1], [0, 0, 1, 1], [], []>} : vector<32x128xbf16>, vector<128x256xbf16>, vector<32x256xf32> -> vector<32x256xf32>
    %c0_17 = arith.constant 0 : index
    %c0_18 = arith.constant 0 : index
    %c0_19 = arith.constant 0 : index
    %38 = vector.load %arg5[%c0_17, %c0_18, %c0_19] : memref<4x32x128xbf16, #tpu.memory_space<vmem>>, vector<1x32x128xbf16>
    %39 = vector.shape_cast %38 : vector<1x32x128xbf16> to vector<32x128xbf16>
    %cst_20 = arith.constant dense<0.000000e+00> : vector<32x256xf32>
    %40 = tpu.matmul %39, %34, %cst_20 {dimension_numbers = #tpu.dot_dimension_numbers<[1], [0], [0], [1], [0, 0, 1, 1], [], []>} : vector<32x128xbf16>, vector<128x256xbf16>, vector<32x256xf32> -> vector<32x256xf32>
    %41 = arith.addf %37, %40 : vector<32x256xf32>
    %c0_21 = arith.constant 0 : index
    %c0_22 = arith.constant 0 : index
    %c0_23 = arith.constant 0 : index
    %c0_24 = arith.constant 0 : index
    %42 = vector.load %arg7[%c0_21, %c0_22, %c0_23, %c0_24] : memref<1x4x32x256xf32, #tpu.memory_space<vmem>>, vector<1x1x32x256xf32>
    %43 = vector.shape_cast %42 : vector<1x1x32x256xf32> to vector<32x256xf32>
    %44 = vector.shape_cast %41 : vector<32x256xf32> to vector<1x1x32x256xf32>
    tpu.vector_store %arg7[%c0_21, %c0_22, %c0_23, %c0_24], %44 {strides = array<i32>} : memref<1x4x32x256xf32, #tpu.memory_space<vmem>>, vector<1x1x32x256xf32>,
    %c0_25 = arith.constant 0 : index
    %c0_26 = arith.constant 0 : index
    %c0_27 = arith.constant 0 : index
    %45 = vector.load %arg8[%c0_25, %c0_26, %c0_27] : memref<1x4x256xi32, #tpu.memory_space<vmem>>, vector<1x1x256xi32>
    %46 = vector.shape_cast %45 : vector<1x1x256xi32> to vector<1x256xi32>
    %47 = vector.shape_cast %29 : vector<1x256xi32> to vector<1x1x256xi32>
    tpu.vector_store %arg8[%c0_25, %c0_26, %c0_27], %47 {strides = array<i32>} : memref<1x4x256xi32, #tpu.memory_space<vmem>>, vector<1x1x256xi32>,
    %48 = arith.subf %41, %13 : vector<32x256xf32>
    %49 = vector.broadcast %7 : vector<1x256xf32> to vector<32x256xf32>
    %50 = arith.mulf %48, %49 : vector<32x256xf32>
    %51 = arith.mulf %50, %50 : vector<32x256xf32>
    %52 = vector.shape_cast %51 : vector<32x256xf32> to vector<1x32x256xf32>
    %cst_28 = arith.constant dense<0.000000e+00> : vector<1xf32>
    %53 = vector.multi_reduction <add>, %52, %cst_28 [1, 2] : vector<1x32x256xf32> to vector<1xf32>
    %54 = vector.shape_cast %53 : vector<1xf32> to vector<1x1x1xf32>
    %55 = vector.extract %54[0, 0, 0] : f32 from vector<1x1x1xf32>
    %c0_i32 = arith.constant 0 : i32
    %56 = vector.broadcast %c0_i32 : i32 to vector<1x128xi32>
    %57 = arith.cmpi eq, %10, %56 : vector<1x128xi32>
    %58 = vector.broadcast %55 : f32 to vector<1x128xf32>
    %59 = arith.select %57, %58, %11 : vector<1x128xi1>, vector<1x128xf32>
    %cst_29 = arith.constant dense<0.000000e+00> : vector<1x128xf32>
    %60 = tpu.matmul %8, %34, %cst_29 {dimension_numbers = #tpu.dot_dimension_numbers<[1], [1], [0], [0], [0, 0, 1, 0], [], []>} : vector<1x256xbf16>, vector<128x256xbf16>, vector<1x128xf32> -> vector<1x128xf32>
    %c0_30 = arith.constant 0 : index
    %c0_31 = arith.constant 0 : index
    %c0_32 = arith.constant 0 : index
    %c0_33 = arith.constant 0 : index
    %61 = vector.load %arg9[%c0_30, %c0_31, %c0_32, %c0_33] : memref<1x1x5x128xf32, #tpu.memory_space<vmem>>, vector<1x1x1x128xf32>
    %62 = vector.shape_cast %61 : vector<1x1x1x128xf32> to vector<1x128xf32>
    %63 = vector.shape_cast %60 : vector<1x128xf32> to vector<1x1x1x128xf32>
    tpu.vector_store %arg9[%c0_30, %c0_31, %c0_32, %c0_33], %63 {strides = array<i32>} : memref<1x1x5x128xf32, #tpu.memory_space<vmem>>, vector<1x1x1x128xf32>,
    %c0_34 = arith.constant 0 : index
    %c1 = arith.constant 1 : index
    %c0_35 = arith.constant 0 : index
    %c0_36 = arith.constant 0 : index
    %64 = vector.load %arg2[%c0_34, %c1, %c0_35, %c0_36] : memref<1x4x32x256xf32, #tpu.memory_space<vmem>>, vector<1x1x32x256xf32>
    %65 = vector.shape_cast %64 : vector<1x1x32x256xf32> to vector<32x256xf32>
    %c1_37 = arith.constant 1 : index
    %c0_38 = arith.constant 0 : index
    %c0_39 = arith.constant 0 : index
    %66 = vector.load %arg3[%c1_37, %c0_38, %c0_39] : memref<4x128x32xbf16, #tpu.memory_space<vmem>>, vector<1x128x32xbf16>
    %67 = vector.shape_cast %66 : vector<1x128x32xbf16> to vector<128x32xbf16>
    %68 = arith.truncf %65 : vector<32x256xf32> to vector<32x256xbf16>
    %cst_40 = arith.constant dense<0.000000e+00> : vector<128x256xf32>
    %69 = tpu.matmul %67, %68, %cst_40 {dimension_numbers = #tpu.dot_dimension_numbers<[1], [0], [0], [1], [0, 0, 1, 1], [], []>} : vector<128x32xbf16>, vector<32x256xbf16>, vector<128x256xf32> -> vector<128x256xf32>
    %c1_41 = arith.constant 1 : index
    %c0_42 = arith.constant 0 : index
    %c0_43 = arith.constant 0 : index
    %70 = vector.load %arg6[%c1_41, %c0_42, %c0_43] : memref<4x128x1xf32, #tpu.memory_space<vmem>>, vector<1x128x1xf32>
    %71 = vector.shape_cast %70 : vector<1x128x1xf32> to vector<128x1xf32>
    %72 = vector.broadcast %71 : vector<128x1xf32> to vector<128x256xf32>
    %73 = arith.addf %72, %69 : vector<128x256xf32>
    %cst_44 = arith.constant dense<0x7F800000> : vector<256xf32>
    %74 = vector.multi_reduction <minimumf>, %73, %cst_44 [0] : vector<128x256xf32> to vector<256xf32>
    %75 = vector.shape_cast %74 : vector<256xf32> to vector<1x256xf32>
    %76 = vector.broadcast %75 : vector<1x256xf32> to vector<128x256xf32>
    %77 = arith.cmpf oeq, %73, %76 : vector<128x256xf32>
    %c128_i32_45 = arith.constant 128 : i32
    %78 = vector.broadcast %c128_i32_45 : i32 to vector<128x256xi32>
    %79 = arith.select %77, %9, %78 : vector<128x256xi1>, vector<128x256xi32>
    %cst_46 = arith.constant dense<2147483647> : vector<256xi32>
    %80 = vector.multi_reduction <minsi>, %79, %cst_46 [0] : vector<128x256xi32> to vector<256xi32>
    %81 = vector.shape_cast %80 : vector<256xi32> to vector<1x256xi32>
    %82 = vector.broadcast %81 : vector<1x256xi32> to vector<128x256xi32>
    %83 = arith.cmpi eq, %9, %82 : vector<128x256xi32>
    %84 = arith.extui %83 : vector<128x256xi1> to vector<128x256xi32>
    %85 = arith.sitofp %84 : vector<128x256xi32> to vector<128x256xf32>
    %86 = arith.truncf %85 : vector<128x256xf32> to vector<128x256xbf16>
    %c1_47 = arith.constant 1 : index
    %c0_48 = arith.constant 0 : index
    %c0_49 = arith.constant 0 : index
    %87 = vector.load %arg4[%c1_47, %c0_48, %c0_49] : memref<4x32x128xbf16, #tpu.memory_space<vmem>>, vector<1x32x128xbf16>
    %88 = vector.shape_cast %87 : vector<1x32x128xbf16> to vector<32x128xbf16>
    %cst_50 = arith.constant dense<0.000000e+00> : vector<32x256xf32>
    %89 = tpu.matmul %88, %86, %cst_50 {dimension_numbers = #tpu.dot_dimension_numbers<[1], [0], [0], [1], [0, 0, 1, 1], [], []>} : vector<32x128xbf16>, vector<128x256xbf16>, vector<32x256xf32> -> vector<32x256xf32>
    %c1_51 = arith.constant 1 : index
    %c0_52 = arith.constant 0 : index
    %c0_53 = arith.constant 0 : index
    %90 = vector.load %arg5[%c1_51, %c0_52, %c0_53] : memref<4x32x128xbf16, #tpu.memory_space<vmem>>, vector<1x32x128xbf16>
    %91 = vector.shape_cast %90 : vector<1x32x128xbf16> to vector<32x128xbf16>
    %cst_54 = arith.constant dense<0.000000e+00> : vector<32x256xf32>
    %92 = tpu.matmul %91, %86, %cst_54 {dimension_numbers = #tpu.dot_dimension_numbers<[1], [0], [0], [1], [0, 0, 1, 1], [], []>} : vector<32x128xbf16>, vector<128x256xbf16>, vector<32x256xf32> -> vector<32x256xf32>
    %93 = arith.addf %89, %92 : vector<32x256xf32>
    %c0_55 = arith.constant 0 : index
    %c1_56 = arith.constant 1 : index
    %c0_57 = arith.constant 0 : index
    %c0_58 = arith.constant 0 : index
    %94 = vector.load %arg7[%c0_55, %c1_56, %c0_57, %c0_58] : memref<1x4x32x256xf32, #tpu.memory_space<vmem>>, vector<1x1x32x256xf32>
    %95 = vector.shape_cast %94 : vector<1x1x32x256xf32> to vector<32x256xf32>
    %96 = vector.shape_cast %93 : vector<32x256xf32> to vector<1x1x32x256xf32>
    tpu.vector_store %arg7[%c0_55, %c1_56, %c0_57, %c0_58], %96 {strides = array<i32>} : memref<1x4x32x256xf32, #tpu.memory_space<vmem>>, vector<1x1x32x256xf32>,
    %c0_59 = arith.constant 0 : index
    %c1_60 = arith.constant 1 : index
    %c0_61 = arith.constant 0 : index
    %97 = vector.load %arg8[%c0_59, %c1_60, %c0_61] : memref<1x4x256xi32, #tpu.memory_space<vmem>>, vector<1x1x256xi32>
    %98 = vector.shape_cast %97 : vector<1x1x256xi32> to vector<1x256xi32>
    %99 = vector.shape_cast %81 : vector<1x256xi32> to vector<1x1x256xi32>
    tpu.vector_store %arg8[%c0_59, %c1_60, %c0_61], %99 {strides = array<i32>} : memref<1x4x256xi32, #tpu.memory_space<vmem>>, vector<1x1x256xi32>,
    %100 = arith.subf %93, %65 : vector<32x256xf32>
    %101 = vector.broadcast %7 : vector<1x256xf32> to vector<32x256xf32>
    %102 = arith.mulf %100, %101 : vector<32x256xf32>
    %103 = arith.mulf %102, %102 : vector<32x256xf32>
    %104 = vector.shape_cast %103 : vector<32x256xf32> to vector<1x32x256xf32>
    %cst_62 = arith.constant dense<0.000000e+00> : vector<1xf32>
    %105 = vector.multi_reduction <add>, %104, %cst_62 [1, 2] : vector<1x32x256xf32> to vector<1xf32>
    %106 = vector.shape_cast %105 : vector<1xf32> to vector<1x1x1xf32>
    %107 = vector.extract %106[0, 0, 0] : f32 from vector<1x1x1xf32>
    %c1_i32 = arith.constant 1 : i32
    %108 = vector.broadcast %c1_i32 : i32 to vector<1x128xi32>
    %109 = arith.cmpi eq, %10, %108 : vector<1x128xi32>
    %110 = vector.broadcast %107 : f32 to vector<1x128xf32>
    %111 = arith.select %109, %110, %59 : vector<1x128xi1>, vector<1x128xf32>
    %cst_63 = arith.constant dense<0.000000e+00> : vector<1x128xf32>
    %112 = tpu.matmul %8, %86, %cst_63 {dimension_numbers = #tpu.dot_dimension_numbers<[1], [1], [0], [0], [0, 0, 1, 0], [], []>} : vector<1x256xbf16>, vector<128x256xbf16>, vector<1x128xf32> -> vector<1x128xf32>
    %c0_64 = arith.constant 0 : index
    %c0_65 = arith.constant 0 : index
    %c1_66 = arith.constant 1 : index
    %c0_67 = arith.constant 0 : index
    %113 = vector.load %arg9[%c0_64, %c0_65, %c1_66, %c0_67] : memref<1x1x5x128xf32, #tpu.memory_space<vmem>>, vector<1x1x1x128xf32>
    %114 = vector.shape_cast %113 : vector<1x1x1x128xf32> to vector<1x128xf32>
    %115 = vector.shape_cast %112 : vector<1x128xf32> to vector<1x1x1x128xf32>
    tpu.vector_store %arg9[%c0_64, %c0_65, %c1_66, %c0_67], %115 {strides = array<i32>} : memref<1x1x5x128xf32, #tpu.memory_space<vmem>>, vector<1x1x1x128xf32>,
    %c0_68 = arith.constant 0 : index
    %c2 = arith.constant 2 : index
    %c0_69 = arith.constant 0 : index
    %c0_70 = arith.constant 0 : index
    %116 = vector.load %arg2[%c0_68, %c2, %c0_69, %c0_70] : memref<1x4x32x256xf32, #tpu.memory_space<vmem>>, vector<1x1x32x256xf32>
    %117 = vector.shape_cast %116 : vector<1x1x32x256xf32> to vector<32x256xf32>
    %c2_71 = arith.constant 2 : index
    %c0_72 = arith.constant 0 : index
    %c0_73 = arith.constant 0 : index
    %118 = vector.load %arg3[%c2_71, %c0_72, %c0_73] : memref<4x128x32xbf16, #tpu.memory_space<vmem>>, vector<1x128x32xbf16>
    %119 = vector.shape_cast %118 : vector<1x128x32xbf16> to vector<128x32xbf16>
    %120 = arith.truncf %117 : vector<32x256xf32> to vector<32x256xbf16>
    %cst_74 = arith.constant dense<0.000000e+00> : vector<128x256xf32>
    %121 = tpu.matmul %119, %120, %cst_74 {dimension_numbers = #tpu.dot_dimension_numbers<[1], [0], [0], [1], [0, 0, 1, 1], [], []>} : vector<128x32xbf16>, vector<32x256xbf16>, vector<128x256xf32> -> vector<128x256xf32>
    %c2_75 = arith.constant 2 : index
    %c0_76 = arith.constant 0 : index
    %c0_77 = arith.constant 0 : index
    %122 = vector.load %arg6[%c2_75, %c0_76, %c0_77] : memref<4x128x1xf32, #tpu.memory_space<vmem>>, vector<1x128x1xf32>
    %123 = vector.shape_cast %122 : vector<1x128x1xf32> to vector<128x1xf32>
    %124 = vector.broadcast %123 : vector<128x1xf32> to vector<128x256xf32>
    %125 = arith.addf %124, %121 : vector<128x256xf32>
    %cst_78 = arith.constant dense<0x7F800000> : vector<256xf32>
    %126 = vector.multi_reduction <minimumf>, %125, %cst_78 [0] : vector<128x256xf32> to vector<256xf32>
    %127 = vector.shape_cast %126 : vector<256xf32> to vector<1x256xf32>
    %128 = vector.broadcast %127 : vector<1x256xf32> to vector<128x256xf32>
    %129 = arith.cmpf oeq, %125, %128 : vector<128x256xf32>
    %c128_i32_79 = arith.constant 128 : i32
    %130 = vector.broadcast %c128_i32_79 : i32 to vector<128x256xi32>
    %131 = arith.select %129, %9, %130 : vector<128x256xi1>, vector<128x256xi32>
    %cst_80 = arith.constant dense<2147483647> : vector<256xi32>
    %132 = vector.multi_reduction <minsi>, %131, %cst_80 [0] : vector<128x256xi32> to vector<256xi32>
    %133 = vector.shape_cast %132 : vector<256xi32> to vector<1x256xi32>
    %134 = vector.broadcast %133 : vector<1x256xi32> to vector<128x256xi32>
    %135 = arith.cmpi eq, %9, %134 : vector<128x256xi32>
    %136 = arith.extui %135 : vector<128x256xi1> to vector<128x256xi32>
    %137 = arith.sitofp %136 : vector<128x256xi32> to vector<128x256xf32>
    %138 = arith.truncf %137 : vector<128x256xf32> to vector<128x256xbf16>
    %c2_81 = arith.constant 2 : index
    %c0_82 = arith.constant 0 : index
    %c0_83 = arith.constant 0 : index
    %139 = vector.load %arg4[%c2_81, %c0_82, %c0_83] : memref<4x32x128xbf16, #tpu.memory_space<vmem>>, vector<1x32x128xbf16>
    %140 = vector.shape_cast %139 : vector<1x32x128xbf16> to vector<32x128xbf16>
    %cst_84 = arith.constant dense<0.000000e+00> : vector<32x256xf32>
    %141 = tpu.matmul %140, %138, %cst_84 {dimension_numbers = #tpu.dot_dimension_numbers<[1], [0], [0], [1], [0, 0, 1, 1], [], []>} : vector<32x128xbf16>, vector<128x256xbf16>, vector<32x256xf32> -> vector<32x256xf32>
    %c2_85 = arith.constant 2 : index
    %c0_86 = arith.constant 0 : index
    %c0_87 = arith.constant 0 : index
    %142 = vector.load %arg5[%c2_85, %c0_86, %c0_87] : memref<4x32x128xbf16, #tpu.memory_space<vmem>>, vector<1x32x128xbf16>
    %143 = vector.shape_cast %142 : vector<1x32x128xbf16> to vector<32x128xbf16>
    %cst_88 = arith.constant dense<0.000000e+00> : vector<32x256xf32>
    %144 = tpu.matmul %143, %138, %cst_88 {dimension_numbers = #tpu.dot_dimension_numbers<[1], [0], [0], [1], [0, 0, 1, 1], [], []>} : vector<32x128xbf16>, vector<128x256xbf16>, vector<32x256xf32> -> vector<32x256xf32>
    %145 = arith.addf %141, %144 : vector<32x256xf32>
    %c0_89 = arith.constant 0 : index
    %c2_90 = arith.constant 2 : index
    %c0_91 = arith.constant 0 : index
    %c0_92 = arith.constant 0 : index
    %146 = vector.load %arg7[%c0_89, %c2_90, %c0_91, %c0_92] : memref<1x4x32x256xf32, #tpu.memory_space<vmem>>, vector<1x1x32x256xf32>
    %147 = vector.shape_cast %146 : vector<1x1x32x256xf32> to vector<32x256xf32>
    %148 = vector.shape_cast %145 : vector<32x256xf32> to vector<1x1x32x256xf32>
    tpu.vector_store %arg7[%c0_89, %c2_90, %c0_91, %c0_92], %148 {strides = array<i32>} : memref<1x4x32x256xf32, #tpu.memory_space<vmem>>, vector<1x1x32x256xf32>,
    %c0_93 = arith.constant 0 : index
    %c2_94 = arith.constant 2 : index
    %c0_95 = arith.constant 0 : index
    %149 = vector.load %arg8[%c0_93, %c2_94, %c0_95] : memref<1x4x256xi32, #tpu.memory_space<vmem>>, vector<1x1x256xi32>
    %150 = vector.shape_cast %149 : vector<1x1x256xi32> to vector<1x256xi32>
    %151 = vector.shape_cast %133 : vector<1x256xi32> to vector<1x1x256xi32>
    tpu.vector_store %arg8[%c0_93, %c2_94, %c0_95], %151 {strides = array<i32>} : memref<1x4x256xi32, #tpu.memory_space<vmem>>, vector<1x1x256xi32>,
    %152 = arith.subf %145, %117 : vector<32x256xf32>
    %153 = vector.broadcast %7 : vector<1x256xf32> to vector<32x256xf32>
    %154 = arith.mulf %152, %153 : vector<32x256xf32>
    %155 = arith.mulf %154, %154 : vector<32x256xf32>
    %156 = vector.shape_cast %155 : vector<32x256xf32> to vector<1x32x256xf32>
    %cst_96 = arith.constant dense<0.000000e+00> : vector<1xf32>
    %157 = vector.multi_reduction <add>, %156, %cst_96 [1, 2] : vector<1x32x256xf32> to vector<1xf32>
    %158 = vector.shape_cast %157 : vector<1xf32> to vector<1x1x1xf32>
    %159 = vector.extract %158[0, 0, 0] : f32 from vector<1x1x1xf32>
    %c2_i32 = arith.constant 2 : i32
    %160 = vector.broadcast %c2_i32 : i32 to vector<1x128xi32>
    %161 = arith.cmpi eq, %10, %160 : vector<1x128xi32>
    %162 = vector.broadcast %159 : f32 to vector<1x128xf32>
    %163 = arith.select %161, %162, %111 : vector<1x128xi1>, vector<1x128xf32>
    %cst_97 = arith.constant dense<0.000000e+00> : vector<1x128xf32>
    %164 = tpu.matmul %8, %138, %cst_97 {dimension_numbers = #tpu.dot_dimension_numbers<[1], [1], [0], [0], [0, 0, 1, 0], [], []>} : vector<1x256xbf16>, vector<128x256xbf16>, vector<1x128xf32> -> vector<1x128xf32>
    %c0_98 = arith.constant 0 : index
    %c0_99 = arith.constant 0 : index
    %c2_100 = arith.constant 2 : index
    %c0_101 = arith.constant 0 : index
    %165 = vector.load %arg9[%c0_98, %c0_99, %c2_100, %c0_101] : memref<1x1x5x128xf32, #tpu.memory_space<vmem>>, vector<1x1x1x128xf32>
    %166 = vector.shape_cast %165 : vector<1x1x1x128xf32> to vector<1x128xf32>
    %167 = vector.shape_cast %164 : vector<1x128xf32> to vector<1x1x1x128xf32>
    tpu.vector_store %arg9[%c0_98, %c0_99, %c2_100, %c0_101], %167 {strides = array<i32>} : memref<1x1x5x128xf32, #tpu.memory_space<vmem>>, vector<1x1x1x128xf32>,
    %c0_102 = arith.constant 0 : index
    %c3 = arith.constant 3 : index
    %c0_103 = arith.constant 0 : index
    %c0_104 = arith.constant 0 : index
    %168 = vector.load %arg2[%c0_102, %c3, %c0_103, %c0_104] : memref<1x4x32x256xf32, #tpu.memory_space<vmem>>, vector<1x1x32x256xf32>
    %169 = vector.shape_cast %168 : vector<1x1x32x256xf32> to vector<32x256xf32>
    %c3_105 = arith.constant 3 : index
    %c0_106 = arith.constant 0 : index
    %c0_107 = arith.constant 0 : index
    %170 = vector.load %arg3[%c3_105, %c0_106, %c0_107] : memref<4x128x32xbf16, #tpu.memory_space<vmem>>, vector<1x128x32xbf16>
    %171 = vector.shape_cast %170 : vector<1x128x32xbf16> to vector<128x32xbf16>
    %172 = arith.truncf %169 : vector<32x256xf32> to vector<32x256xbf16>
    %cst_108 = arith.constant dense<0.000000e+00> : vector<128x256xf32>
    %173 = tpu.matmul %171, %172, %cst_108 {dimension_numbers = #tpu.dot_dimension_numbers<[1], [0], [0], [1], [0, 0, 1, 1], [], []>} : vector<128x32xbf16>, vector<32x256xbf16>, vector<128x256xf32> -> vector<128x256xf32>
    %c3_109 = arith.constant 3 : index
    %c0_110 = arith.constant 0 : index
    %c0_111 = arith.constant 0 : index
    %174 = vector.load %arg6[%c3_109, %c0_110, %c0_111] : memref<4x128x1xf32, #tpu.memory_space<vmem>>, vector<1x128x1xf32>
    %175 = vector.shape_cast %174 : vector<1x128x1xf32> to vector<128x1xf32>
    %176 = vector.broadcast %175 : vector<128x1xf32> to vector<128x256xf32>
    %177 = arith.addf %176, %173 : vector<128x256xf32>
    %cst_112 = arith.constant dense<0x7F800000> : vector<256xf32>
    %178 = vector.multi_reduction <minimumf>, %177, %cst_112 [0] : vector<128x256xf32> to vector<256xf32>
    %179 = vector.shape_cast %178 : vector<256xf32> to vector<1x256xf32>
    %180 = vector.broadcast %179 : vector<1x256xf32> to vector<128x256xf32>
    %181 = arith.cmpf oeq, %177, %180 : vector<128x256xf32>
    %c128_i32_113 = arith.constant 128 : i32
    %182 = vector.broadcast %c128_i32_113 : i32 to vector<128x256xi32>
    %183 = arith.select %181, %9, %182 : vector<128x256xi1>, vector<128x256xi32>
    %cst_114 = arith.constant dense<2147483647> : vector<256xi32>
    %184 = vector.multi_reduction <minsi>, %183, %cst_114 [0] : vector<128x256xi32> to vector<256xi32>
    %185 = vector.shape_cast %184 : vector<256xi32> to vector<1x256xi32>
    %186 = vector.broadcast %185 : vector<1x256xi32> to vector<128x256xi32>
    %187 = arith.cmpi eq, %9, %186 : vector<128x256xi32>
    %188 = arith.extui %187 : vector<128x256xi1> to vector<128x256xi32>
    %189 = arith.sitofp %188 : vector<128x256xi32> to vector<128x256xf32>
    %190 = arith.truncf %189 : vector<128x256xf32> to vector<128x256xbf16>
    %c3_115 = arith.constant 3 : index
    %c0_116 = arith.constant 0 : index
    %c0_117 = arith.constant 0 : index
    %191 = vector.load %arg4[%c3_115, %c0_116, %c0_117] : memref<4x32x128xbf16, #tpu.memory_space<vmem>>, vector<1x32x128xbf16>
    %192 = vector.shape_cast %191 : vector<1x32x128xbf16> to vector<32x128xbf16>
    %cst_118 = arith.constant dense<0.000000e+00> : vector<32x256xf32>
    %193 = tpu.matmul %192, %190, %cst_118 {dimension_numbers = #tpu.dot_dimension_numbers<[1], [0], [0], [1], [0, 0, 1, 1], [], []>} : vector<32x128xbf16>, vector<128x256xbf16>, vector<32x256xf32> -> vector<32x256xf32>
    %c3_119 = arith.constant 3 : index
    %c0_120 = arith.constant 0 : index
    %c0_121 = arith.constant 0 : index
    %194 = vector.load %arg5[%c3_119, %c0_120, %c0_121] : memref<4x32x128xbf16, #tpu.memory_space<vmem>>, vector<1x32x128xbf16>
    %195 = vector.shape_cast %194 : vector<1x32x128xbf16> to vector<32x128xbf16>
    %cst_122 = arith.constant dense<0.000000e+00> : vector<32x256xf32>
    %196 = tpu.matmul %195, %190, %cst_122 {dimension_numbers = #tpu.dot_dimension_numbers<[1], [0], [0], [1], [0, 0, 1, 1], [], []>} : vector<32x128xbf16>, vector<128x256xbf16>, vector<32x256xf32> -> vector<32x256xf32>
    %197 = arith.addf %193, %196 : vector<32x256xf32>
    %c0_123 = arith.constant 0 : index
    %c3_124 = arith.constant 3 : index
    %c0_125 = arith.constant 0 : index
    %c0_126 = arith.constant 0 : index
    %198 = vector.load %arg7[%c0_123, %c3_124, %c0_125, %c0_126] : memref<1x4x32x256xf32, #tpu.memory_space<vmem>>, vector<1x1x32x256xf32>
    %199 = vector.shape_cast %198 : vector<1x1x32x256xf32> to vector<32x256xf32>
    %200 = vector.shape_cast %197 : vector<32x256xf32> to vector<1x1x32x256xf32>
    tpu.vector_store %arg7[%c0_123, %c3_124, %c0_125, %c0_126], %200 {strides = array<i32>} : memref<1x4x32x256xf32, #tpu.memory_space<vmem>>, vector<1x1x32x256xf32>,
    %c0_127 = arith.constant 0 : index
    %c3_128 = arith.constant 3 : index
    %c0_129 = arith.constant 0 : index
    %201 = vector.load %arg8[%c0_127, %c3_128, %c0_129] : memref<1x4x256xi32, #tpu.memory_space<vmem>>, vector<1x1x256xi32>
    %202 = vector.shape_cast %201 : vector<1x1x256xi32> to vector<1x256xi32>
    %203 = vector.shape_cast %185 : vector<1x256xi32> to vector<1x1x256xi32>
    tpu.vector_store %arg8[%c0_127, %c3_128, %c0_129], %203 {strides = array<i32>} : memref<1x4x256xi32, #tpu.memory_space<vmem>>, vector<1x1x256xi32>,
    %204 = arith.subf %197, %169 : vector<32x256xf32>
    %205 = vector.broadcast %7 : vector<1x256xf32> to vector<32x256xf32>
    %206 = arith.mulf %204, %205 : vector<32x256xf32>
    %207 = arith.mulf %206, %206 : vector<32x256xf32>
    %208 = vector.shape_cast %207 : vector<32x256xf32> to vector<1x32x256xf32>
    %cst_130 = arith.constant dense<0.000000e+00> : vector<1xf32>
    %209 = vector.multi_reduction <add>, %208, %cst_130 [1, 2] : vector<1x32x256xf32> to vector<1xf32>
    %210 = vector.shape_cast %209 : vector<1xf32> to vector<1x1x1xf32>
    %211 = vector.extract %210[0, 0, 0] : f32 from vector<1x1x1xf32>
    %c3_i32 = arith.constant 3 : i32
    %212 = vector.broadcast %c3_i32 : i32 to vector<1x128xi32>
    %213 = arith.cmpi eq, %10, %212 : vector<1x128xi32>
    %214 = vector.broadcast %211 : f32 to vector<1x128xf32>
    %215 = arith.select %213, %214, %163 : vector<1x128xi1>, vector<1x128xf32>
    %cst_131 = arith.constant dense<0.000000e+00> : vector<1x128xf32>
    %216 = tpu.matmul %8, %190, %cst_131 {dimension_numbers = #tpu.dot_dimension_numbers<[1], [1], [0], [0], [0, 0, 1, 0], [], []>} : vector<1x256xbf16>, vector<128x256xbf16>, vector<1x128xf32> -> vector<1x128xf32>
    %c0_132 = arith.constant 0 : index
    %c0_133 = arith.constant 0 : index
    %c3_134 = arith.constant 3 : index
    %c0_135 = arith.constant 0 : index
    %217 = vector.load %arg9[%c0_132, %c0_133, %c3_134, %c0_135] : memref<1x1x5x128xf32, #tpu.memory_space<vmem>>, vector<1x1x1x128xf32>
    %218 = vector.shape_cast %217 : vector<1x1x1x128xf32> to vector<1x128xf32>
    %219 = vector.shape_cast %216 : vector<1x128xf32> to vector<1x1x1x128xf32>
    tpu.vector_store %arg9[%c0_132, %c0_133, %c3_134, %c0_135], %219 {strides = array<i32>} : memref<1x1x5x128xf32, #tpu.memory_space<vmem>>, vector<1x1x1x128xf32>,
    %c0_136 = arith.constant 0 : index
    %c0_137 = arith.constant 0 : index
    %c4 = arith.constant 4 : index
    %c0_138 = arith.constant 0 : index
    %220 = vector.load %arg9[%c0_136, %c0_137, %c4, %c0_138] : memref<1x1x5x128xf32, #tpu.memory_space<vmem>>, vector<1x1x1x128xf32>
    %221 = vector.shape_cast %220 : vector<1x1x1x128xf32> to vector<1x128xf32>
    %222 = vector.shape_cast %215 : vector<1x128xf32> to vector<1x1x1x128xf32>
    tpu.vector_store %arg9[%c0_136, %c0_137, %c4, %c0_138], %222 {strides = array<i32>} : memref<1x1x5x128xf32, #tpu.memory_space<vmem>>, vector<1x1x1x128xf32>,
    return
  }
  func.func @transform_0(%arg0: i32, %arg1: i32) -> (i32, i32, i32, i32) {
    %c0_i32 = arith.constant 0 : i32
    %c0_i32_0 = arith.constant 0 : i32
    %c0_i32_1 = arith.constant 0 : i32
    return %arg0, %c0_i32, %c0_i32_0, %arg1 : i32, i32, i32, i32
  }
  func.func @transform_1(%arg0: i32, %arg1: i32) -> (i32, i32, i32) {
    %c0_i32 = arith.constant 0 : i32
    %c0_i32_0 = arith.constant 0 : i32
    %c0_i32_1 = arith.constant 0 : i32
    %c0_i32_2 = arith.constant 0 : i32
    return %c0_i32, %c0_i32_0, %c0_i32_1 : i32, i32, i32
  }
  func.func @transform_2(%arg0: i32, %arg1: i32) -> (i32, i32, i32) {
    %c0_i32 = arith.constant 0 : i32
    %c0_i32_0 = arith.constant 0 : i32
    %c0_i32_1 = arith.constant 0 : i32
    %c0_i32_2 = arith.constant 0 : i32
    return %c0_i32, %c0_i32_0, %c0_i32_1 : i32, i32, i32
  }
  func.func @transform_3(%arg0: i32, %arg1: i32) -> (i32, i32, i32) {
    %c0_i32 = arith.constant 0 : i32
    %c0_i32_0 = arith.constant 0 : i32
    %c0_i32_1 = arith.constant 0 : i32
    %c0_i32_2 = arith.constant 0 : i32
    return %c0_i32, %c0_i32_0, %c0_i32_1 : i32, i32, i32
  }
  func.func @transform_4(%arg0: i32, %arg1: i32) -> (i32, i32, i32) {
    %c0_i32 = arith.constant 0 : i32
    %c0_i32_0 = arith.constant 0 : i32
    %c0_i32_1 = arith.constant 0 : i32
    %c0_i32_2 = arith.constant 0 : i32
    return %c0_i32, %c0_i32_0, %c0_i32_1 : i32, i32, i32
  }
  func.func @transform_5(%arg0: i32, %arg1: i32) -> (i32, i32, i32, i32) {
    %c0_i32 = arith.constant 0 : i32
    %c0_i32_0 = arith.constant 0 : i32
    %c0_i32_1 = arith.constant 0 : i32
    return %arg0, %c0_i32, %c0_i32_0, %arg1 : i32, i32, i32, i32
  }
  func.func @transform_6(%arg0: i32, %arg1: i32) -> (i32, i32, i32) {
    %c0_i32 = arith.constant 0 : i32
    %c0_i32_0 = arith.constant 0 : i32
    return %arg0, %c0_i32, %arg1 : i32, i32, i32
  }
  func.func @transform_7(%arg0: i32, %arg1: i32) -> (i32, i32, i32, i32) {
    %c0_i32 = arith.constant 0 : i32
    %c0_i32_0 = arith.constant 0 : i32
    %c0_i32_1 = arith.constant 0 : i32
    return %arg0, %arg1, %c0_i32, %c0_i32_0 : i32, i32, i32, i32
  }
}

</mosaic_0001>

<bundles_post_ra>
// kernel: tpu_custom_call.1
= control target key start
LH: loop header
LB: loop body
LE: loop exit
PB: predicated region body
PF: predicated region fallthrough
CT: control target
= control target key end

     0   :  { %s8079_s0 = inlined_call_operand.vmem [shape: f32[2,4,32,256], index: 0, kind: input, shape index: {}]   ;;  %s8080_s1 = inlined_call_operand.vmem [shape: bf16[4,128,32], index: 1, kind: input, shape index: {}]   ;;  %s8081_s2 = inlined_call_operand.vmem [shape: bf16[4,32,128], index: 2, kind: input, shape index: {}]   ;;  %s8082_s3 = inlined_call_operand.vmem [shape: bf16[4,32,128], index: 3, kind: input, shape index: {}]   ;;  %s8083_s4 = inlined_call_operand.vmem [shape: f32[4,128,1], index: 4, kind: input, shape index: {}]   ;;  %s8084_s5 = inlined_call_operand.hbm [shape: f32[2,4,32,256], index: 5, kind: output, shape index: {0}]   ;;  %s8085_s6 = inlined_call_operand.hbm [shape: s32[2,4,256], index: 6, kind: output, shape index: {1}]   ;;  %s8086_s7 = inlined_call_operand.vmem [shape: f32[2,1,5,128], index: 7, kind: output, shape index: {2}]  }
   0x1   :  { %8164 = sst [smem:[#allocation23_spill]] %s8079_s0 }
   0x2   :  { %8165 = sst [smem:[#allocation24_spill]] %s8080_s1 }
   0x3   :  { %8166 = sst [smem:[#allocation25_spill]] %s8081_s2 }
   0x4   :  { %8167 = sst [smem:[#allocation26_spill]] %s8082_s3 }
   0x5   :  { %8168 = sst [smem:[#allocation27_spill]] %s8083_s4 }
   0x6   :  { %13 = vsyncpa [#allocation3], 0 }
   0x7   :  { %15 = vsyncpa [#allocation3 + $0x1], 0 }
   0x8   :  { %16 = vsyncpa [#allocation5], 0 }
   0x9   :  { %18 = vsyncpa [#allocation5 + $0x1], 0  ;;  %s5181_s24 = smov 0   ;;  %s5183_s25 = smov 0  }
   0xa   :  { %s5185_s26 = smov 0   ;;  %s5187_s27 = smov 0  }
   0xb   :  { %s5189_s28 = smov 0   ;;  %s5191_s29 = smov 0  }
   0xc LB: > { %s4092_s30 = sadd.s32 4294967295, %s5132_s29   ;;  %s4093_s8 = sadd.s32 4294967294, %s5132_s29   ;;  %s5132_s29 = sphi %s5191_s29, %s24_s29   ;;  %s5128_s28 = sphi %s5189_s28, %s8422_s28   ;;  %s5124_s27 = sphi %s5187_s27, %s8421_s27   ;;  %s5120_s26 = sphi %s5185_s26, %s8420_s26   ;;  %s5116_s25 = sphi %s5183_s25, %s8419_s25   ;;  %s5112_s24 = sphi %s5181_s24, %s8418_s24  }
   0xd   : > { %s36_s9 = sadd.s32 1, %s5128_s28  ;;  %s157_s10 = sadd.s32 1, %s5120_s26 }
   0xe   : > { %p38_p0 = scmp.ge.s32.totalorder %s36_s9, 2  ;;  %p167_p1 = scmp.ne.s32.totalorder %s5120_s26, %s5116_s25 }
   0xf   : > { %p168_p2 = scmp.eq.s32.totalorder %s4092_s30, 1  ;;  %p173_p3 = scmp.ne.s32.totalorder %s5116_s25, %s5112_s24 }
  0x10   : > { %s8424_s9 = smov (%p38_p0, %s36_s9), 0  ;;  %p174_p5 = scmp.eq.s32.totalorder %s4093_s8, 1 }
  0x11   : > { %p5221_p4 = por %p168_p2, %p167_p1  ;;  %s152_s12 = ssub.s32 %s5128_s28, %s8424_s9 }
  0x12   : > { %p4096_p6 = scmp.ge.s32.totalorder %s5132_s29, 1  ;;  %p155_p7 = scmp.eq.s32.totalorder %s152_s12, 0 }
  0x13   : > { %p5228_p8 = por %p174_p5, %p173_p3  ;;  %p273_p9 = scmp.lt.s32.totalorder %s5132_s29, 3 }
  0x14   : > { %s5234_s14 = scalar_select %p155_p7, %s5120_s26, %s157_s10  }
  0x15   : > { %p274_p10 = pnand %p4096_p6, %p273_p9 }
  0x17   : > { %277 = sbr.rel (%p274_p10) target bundleno = 2039 (0x7f7), region = 40 }
  0x1c   : > { %s8171_s4 = sld [smem:[#allocation27_spill]]  ;;  %p322_p11 = scmp.lt.s32.totalorder %s5124_s27, 1  ;;  %v8096_v2 = vmov 0   ;;  %vm8087_vm0 = vcmask 261120  }
  0x1d   : > { %4950 = vset.pattern.permute.xlu1 %v8096_v2  ;;  %4949 = vset.pattern.permute.xlu0 %v8096_v2  ;;  %s8172_s0 = sld [smem:[#allocation23_spill]]  ;;  %s5803_s20 = sand.u32 1, %s5116_s25  }
  0x1e   : > { %s5246_s19 = scalar_select %p322_p11, %s5124_s27, 1  ;;  %498 = vmatprep.mubr.bf16.mxu0 %v8096_v2  ;;  %1055 = vmatprep.mubr.bf16.mxu1 %v8096_v2 }
  0x1f   : > { %s8173_s1 = sld [smem:[#allocation24_spill]]  ;;  %s4098_s21 = sshll.u32 %s5803_s20, 3 }
  0x20   : > { %s4873_s30 = sshll.u32 %s5246_s19, 8  ;;  %s5878_s22 = scalar_lea.vmem [#allocation4], %s4098_s21 }
  0x21   : > { %s8210_s3 = sld [smem:[#allocation26_spill]]  ;;  %s4101_s17 = sshll.u32 %s5246_s19, 3 }
  0x22   : > { %v581_v0 = vld [vmem:[%s8171_s4 + $0x10] sm:$0xff]  ;;  %v579_v1 = vld [vmem:[%s8171_s4] sm:$0xff]  ;;  %v582_v3 = vld [vmem:[%s8171_s4 + $0x18] sm:$0xff]  ;;  %s8223_s2 = sld [smem:[#allocation25_spill]]  ;;  %s6149_s23 = scalar_lea.vmem %s8086_s7, %s4101_s17 }
  0x23   : > { %607 = vperm.xlu1 %4950, %v581_v0   ;;  %597 = vperm.xlu0 %4949, %v579_v1   ;;  %v580_v4 = vld [vmem:[%s8171_s4 + $0x8] sm:$0xff]  ;;  %s5260_s12 = scalar_lea.vmem %s8172_s0, %s4873_s30  ;;  %v583_v6 = vld [vmem:[%s8171_s4 + $0x20] sm:$0xff]  ;;  %v586_v18 = vld [vmem:[%s8171_s4 + $0x38] sm:$0xff]  ;;  %s4097_s19 = sshll.u32 %s5803_s20, 8 }
  0x24   : > { %v584_v5 = vld [vmem:[%s8171_s4 + $0x28] sm:$0xff]  ;;  %v380_v8 = vld [vmem:[%s5260_s12 + $0x38] sm:$0xff]  ;;  %v377_v9 = vld [vmem:[%s5260_s12 + $0x20] sm:$0xff]  ;;  %s6570_s30 = scalar_lea.vmem [#allocation2], %s4097_s19  ;;  %s4874_s8 = sshll.u32 %s5124_s27, 12 }
  0x25   : > { %v378_v7 = vld [vmem:[%s5260_s12 + $0x28] sm:$0xff]  ;;  %v379_v11 = vld [vmem:[%s5260_s12 + $0x30] sm:$0xff]  ;;  %v376_v13 = vld [vmem:[%s5260_s12 + $0x18] sm:$0xff]  ;;  %s8009_s16 = scalar_lea.hbm %s8084_s5, %s4874_s8  ;;  %s3928_s17 = sshll.u32 %s6570_s30, 4  ;;  %s8012_s17 = int_to_ptr.vmem [resolvable:$true] %s3928_s17 }
  0x26   : > { %v400_v10 = vpack.c.bf16 %v380_v8, %v378_v7  ;;  %v374_v12 = vld [vmem:[%s5260_s12 + $0x8] sm:$0xff]  ;;  %v399_v14 = vpack.c.bf16 %v379_v11, %v377_v9  ;;  %v373_v16 = vld [vmem:[%s5260_s12] sm:$0xff]  ;;  %v375_v17 = vld [vmem:[%s5260_s12 + $0x10] sm:$0xff]  ;;  %s5026_s18 = scalar_lea.vmem %s8012_s17, 4096  ;;  %s5137_s21 = smov [#allocation2]  }
  0x27   : > { %612 = vperm.xlu1 %4950, %v582_v3   ;;  %602 = vperm.xlu0 %4949, %v580_v4   ;;  %v398_v15 = vpack.c.bf16 %v376_v13, %v374_v12  ;;  %v585_v19 = vld [vmem:[%s8171_s4 + $0x30] sm:$0xff]  ;;  %v397_v20 = vpack.c.bf16 %v375_v17, %v373_v16  ;;  %v4951_v21 = vld [vmem:[%s8173_s1] sm:$0xff]   ;;  %v588_v22 = vld [vmem:[%s8171_s4 + $0x48] sm:$0xff]  ;;  %p5027_p12 = scmp.ne.s32.totalorder %s8012_s17, %s5026_s18  ;;  %s5030_s19 = sshll.u32 %s5137_s21, 4  ;;  %s5031_s19 = int_to_ptr.vmem [resolvable:$false] %s5030_s19 }
  0x28   : > { %478 = vmatprep.subr.bf16.mxu0 %v400_v10  ;;  %v587_v23 = vld [vmem:[%s8171_s4 + $0x40] sm:$0xff]  ;;  %v590_v24 = vld [vmem:[%s8171_s4 + $0x58] sm:$0xff]  ;;  %v589_v25 = vld [vmem:[%s8171_s4 + $0x50] sm:$0xff]  ;;  %s5032_s0 = scalar_lea.vmem %s5031_s19, 8192  ;;  %p5033_p1 = scmp.lt.s32.totalorder %s8012_s17, %s5031_s19 }
  0x29   : > { %479 = vmatpush1.bf16.msra.mxu0 %v399_v14  ;;  %v4952_v26 = vld [vmem:[%s8173_s1 + $0x8] sm:$0xff]   ;;  %v591_v28 = vld [vmem:[%s8171_s4 + $0x60] sm:$0xff]  ;;  %v594_v29 = vld [vmem:[%s8171_s4 + $0x78] sm:$0xff]  ;;  %p5028_p13 = pnand %p5027_p12, %p5221_p4  ;;  %p5034_p2 = scmp.lt.s32.totalorder %s5032_s0, %s5026_s18 }
  0x2a   : > { %480 = vmatprep.subr.bf16.mxu0 %v398_v15  ;;  %v592_v27 = vld [vmem:[%s8171_s4 + $0x68] sm:$0xff]  ;;  %v593_v30 = vld [vmem:[%s8171_s4 + $0x70] sm:$0xff]  ;;  %v4290_v33 = vld [vmem:[%s8171_s4 + $0x80] sm:$0xff] }
  0x2b   : > { %622 = vperm.xlu1 %4950, %v584_v5   ;;  %617 = vperm.xlu0 %4949, %v583_v6   ;;  %v4953_v31 = vld [vmem:[%s8173_s1 + $0x10] sm:$0xff]   ;;  %v4291_v32 = vld [vmem:[%s8171_s4 + $0x88] sm:$0xff]  ;;  %v4293_v34 = vld [vmem:[%s8171_s4 + $0x98] sm:$0xff]  ;;  %p5029_p0 = pneg %p5028_p13  ;;  %p5035_p3 = por %p5034_p2, %p5033_p1 }
  0x2c   : > { %v4292_v35 = vld [vmem:[%s8171_s4 + $0x90] sm:$0xff]  ;;  %v4954_v36 = vld [vmem:[%s8173_s1 + $0x18] sm:$0xff]   ;;  %v4295_v37 = vld [vmem:[%s8171_s4 + $0xa8] sm:$0xff] }
  0x2d   : > { %481 = vmatpush1.bf16.msra.mxu0 %v397_v20  ;;  %v4294_v38 = vld [vmem:[%s8171_s4 + $0xa0] sm:$0xff]  ;;  %v4297_v39 = vld [vmem:[%s8171_s4 + $0xb8] sm:$0xff]  ;;  %v4296_v40 = vld [vmem:[%s8171_s4 + $0xb0] sm:$0xff]  ;;  %p5036_p5 = pnand %p5035_p3, %p5029_p0 }
  0x2e   : > { %v4955_v41 = vld [vmem:[%s8173_s1 + $0x20] sm:$0xff]   ;;  %v4299_v42 = vld [vmem:[%s8171_s4 + $0xc8] sm:$0xff]  ;;  %v4301_v44 = vld [vmem:[%s8171_s4 + $0xd8] sm:$0xff] }
  0x2f   : > { %632 = vperm.xlu1 %4950, %v586_v18   ;;  %627 = vperm.xlu0 %4949, %v585_v19   ;;  %v4298_v43 = vld [vmem:[%s8171_s4 + $0xc0] sm:$0xff]  ;;  %v4300_v45 = vld [vmem:[%s8171_s4 + $0xd0] sm:$0xff]  ;;  %v4956_v46 = vld [vmem:[%s8173_s1 + $0x28] sm:$0xff]  }
  0x30   : > { %4110 = vmatmul.mubr.msk.bf16.vlgmr.msra.gmra.mxu0 %vm8087_vm0, %v4951_v21  ;;  %v4303_v47 = vld [vmem:[%s8171_s4 + $0xe8] sm:$0xff]  ;;  %v4302_v48 = vld [vmem:[%s8171_s4 + $0xe0] sm:$0xff]  ;;  %v4305_v49 = vld [vmem:[%s8171_s4 + $0xf8] sm:$0xff] }
  0x31   : > { %508 = vmatprep.mubr.bf16.mxu0 %v8096_v2  ;;  %v4304_v50 = vld [vmem:[%s8171_s4 + $0xf0] sm:$0xff]  ;;  %v4496_v52 = vld [vmem:[%s8171_s4 + $0x108] sm:$0xff]  ;;  %v4495_v53 = vld [vmem:[%s8171_s4 + $0x100] sm:$0xff] }
  0x32   : > { %v4957_v51 = vld [vmem:[%s8173_s1 + $0x30] sm:$0xff]   ;;  %v4498_v54 = vld [vmem:[%s8171_s4 + $0x118] sm:$0xff]  ;;  %v4500_v57 = vld [vmem:[%s8171_s4 + $0x128] sm:$0xff] }
  0x33   : > { %642 = vperm.xlu1 %4950, %v588_v22   ;;  %637 = vperm.xlu0 %4949, %v587_v23   ;;  %v4497_v55 = vld [vmem:[%s8171_s4 + $0x110] sm:$0xff]  ;;  %v4958_v56 = vld [vmem:[%s8173_s1 + $0x38] sm:$0xff]   ;;  %v4499_v58 = vld [vmem:[%s8171_s4 + $0x120] sm:$0xff] }
  0x34   : > { %v4502_v59 = vld [vmem:[%s8171_s4 + $0x138] sm:$0xff]  ;;  %v4501_v60 = vld [vmem:[%s8171_s4 + $0x130] sm:$0xff]  ;;  %v4504_v61 = vld [vmem:[%s8171_s4 + $0x148] sm:$0xff] }
  0x35   : > { %v4503_v62 = vld [vmem:[%s8171_s4 + $0x140] sm:$0xff]  ;;  %v4506_v63 = vld [vmem:[%s8171_s4 + $0x158] sm:$0xff]  ;;  %v4505_v0 = vld [vmem:[%s8171_s4 + $0x150] sm:$0xff] }
  0x36   : > { %v4508_v1 = vld [vmem:[%s8171_s4 + $0x168] sm:$0xff]  ;;  %v4507_v3 = vld [vmem:[%s8171_s4 + $0x160] sm:$0xff]  ;;  %v4510_v4 = vld [vmem:[%s8171_s4 + $0x178] sm:$0xff] }
  0x37   : > { %652 = vperm.xlu1 %4950, %v590_v24   ;;  %647 = vperm.xlu0 %4949, %v589_v25   ;;  %v4509_v5 = vld [vmem:[%s8171_s4 + $0x170] sm:$0xff]  ;;  %v4701_v6 = vld [vmem:[%s8171_s4 + $0x188] sm:$0xff]  ;;  %v4700_v7 = vld [vmem:[%s8171_s4 + $0x180] sm:$0xff] }
  0x38   : > { %4111 = vmatmul.mubr.msk.bf16.gmra.mxu0 %vm8087_vm0, %v4952_v26  ;;  %v4703_v8 = vld [vmem:[%s8171_s4 + $0x198] sm:$0xff]  ;;  %v4702_v9 = vld [vmem:[%s8171_s4 + $0x190] sm:$0xff]  ;;  %v4705_v10 = vld [vmem:[%s8171_s4 + $0x1a8] sm:$0xff]  ;;  %v8098_v26 = vmov 1.0|1.0  }
  0x39   : > { %518 = vmatprep.mubr.bf16.mxu0 %v8096_v2  ;;  %v4704_v11 = vld [vmem:[%s8171_s4 + $0x1a0] sm:$0xff]  ;;  %v4707_v12 = vld [vmem:[%s8171_s4 + $0x1b8] sm:$0xff]  ;;  %v4706_v13 = vld [vmem:[%s8171_s4 + $0x1b0] sm:$0xff] }
  0x3a   : > { %v4709_v14 = vld [vmem:[%s8171_s4 + $0x1c8] sm:$0xff]  ;;  %v4708_v15 = vld [vmem:[%s8171_s4 + $0x1c0] sm:$0xff]  ;;  %v4711_v16 = vld [vmem:[%s8171_s4 + $0x1d8] sm:$0xff] }
  0x3b   : > { %662 = vperm.xlu1 %4950, %v592_v27   ;;  %657 = vperm.xlu0 %4949, %v591_v28   ;;  %v4710_v17 = vld [vmem:[%s8171_s4 + $0x1d0] sm:$0xff]  ;;  %v4713_v18 = vld [vmem:[%s8171_s4 + $0x1e8] sm:$0xff]  ;;  %v4712_v19 = vld [vmem:[%s8171_s4 + $0x1e0] sm:$0xff] }
  0x3c   : > { %v4715_v20 = vld [vmem:[%s8171_s4 + $0x1f8] sm:$0xff]  ;;  %v4714_v21 = vld [vmem:[%s8171_s4 + $0x1f0] sm:$0xff] }
  0x3f   : > { %672 = vperm.xlu1 %4950, %v594_v29   ;;  %667 = vperm.xlu0 %4949, %v593_v30  }
  0x40   : > { %4112 = vmatmul.mubr.msk.bf16.gmra.mxu0 %vm8087_vm0, %v4953_v31 }
  0x41   : > { %528 = vmatprep.mubr.bf16.mxu0 %v8096_v2 }
  0x43   : > { %1484 = vperm.xlu1 %4950, %v4291_v32   ;;  %1479 = vperm.xlu0 %4949, %v4290_v33  }
  0x47   : > { %1494 = vperm.xlu1 %4950, %v4293_v34   ;;  %1489 = vperm.xlu0 %4949, %v4292_v35  }
  0x48   : > { %4113 = vmatmul.mubr.msk.bf16.gmra.mxu0 %vm8087_vm0, %v4954_v36 }
  0x49   : > { %538 = vmatprep.mubr.bf16.mxu0 %v8096_v2 }
  0x4b   : > { %1504 = vperm.xlu1 %4950, %v4295_v37   ;;  %1499 = vperm.xlu0 %4949, %v4294_v38  }
  0x4f   : > { %1514 = vperm.xlu1 %4950, %v4297_v39   ;;  %1509 = vperm.xlu0 %4949, %v4296_v40  }
  0x50   : > { %4114 = vmatmul.mubr.msk.bf16.gmra.mxu0 %vm8087_vm0, %v4955_v41 }
  0x51   : > { %548 = vmatprep.mubr.bf16.mxu0 %v8096_v2 }
  0x53   : > { %1524 = vperm.xlu1 %4950, %v4299_v42   ;;  %1519 = vperm.xlu0 %4949, %v4298_v43  }
  0x57   : > { %1534 = vperm.xlu1 %4950, %v4301_v44   ;;  %1529 = vperm.xlu0 %4949, %v4300_v45  }
  0x58   : > { %4115 = vmatmul.mubr.msk.bf16.gmra.mxu0 %vm8087_vm0, %v4956_v46 }
  0x59   : > { %558 = vmatprep.mubr.bf16.mxu0 %v8096_v2 }
  0x5b   : > { %1544 = vperm.xlu1 %4950, %v4303_v47   ;;  %1539 = vperm.xlu0 %4949, %v4302_v48  }
  0x5f   : > { %1554 = vperm.xlu1 %4950, %v4305_v49   ;;  %1549 = vperm.xlu0 %4949, %v4304_v50  }
  0x60   : > { %4116 = vmatmul.mubr.msk.bf16.gmra.mxu0 %vm8087_vm0, %v4957_v51 }
  0x61   : > { %568 = vmatprep.mubr.bf16.mxu0 %v8096_v2 }
  0x63   : > { %2366 = vperm.xlu1 %4950, %v4496_v52   ;;  %2361 = vperm.xlu0 %4949, %v4495_v53  }
  0x67   : > { %2376 = vperm.xlu1 %4950, %v4498_v54   ;;  %2371 = vperm.xlu0 %4949, %v4497_v55  }
  0x68   : > { %4117 = vmatmul.mubr.msk.bf16.gmra.mxu0 %vm8087_vm0, %v4958_v56 }
  0x69   : > { %1244 = vmatprep.mubr.bf16.mxu0 %v8098_v26 }
  0x6b   : > { %2386 = vperm.xlu1 %4950, %v4500_v57   ;;  %2381 = vperm.xlu0 %4949, %v4499_v58  }
  0x6f   : > { %2396 = vperm.xlu1 %4950, %v4502_v59   ;;  %2391 = vperm.xlu0 %4949, %v4501_v60  }
  0x73   : > { %2406 = vperm.xlu1 %4950, %v4504_v61   ;;  %2401 = vperm.xlu0 %4949, %v4503_v62  }
  0x77   : > { %2416 = vperm.xlu1 %4950, %v4506_v63   ;;  %2411 = vperm.xlu0 %4949, %v4505_v0  }
  0x7b   : > { %2426 = vperm.xlu1 %4950, %v4508_v1   ;;  %2421 = vperm.xlu0 %4949, %v4507_v3  }
  0x7f   : > { %2436 = vperm.xlu1 %4950, %v4510_v4   ;;  %2431 = vperm.xlu0 %4949, %v4509_v5  }
  0x83   : > { %3248 = vperm.xlu1 %4950, %v4701_v6   ;;  %3243 = vperm.xlu0 %4949, %v4700_v7  }
  0x87   : > { %3258 = vperm.xlu1 %4950, %v4703_v8   ;;  %3253 = vperm.xlu0 %4949, %v4702_v9  }
  0x8b   : > { %3268 = vperm.xlu1 %4950, %v4705_v10   ;;  %3263 = vperm.xlu0 %4949, %v4704_v11  }
  0x8f   : > { %3278 = vperm.xlu1 %4950, %v4707_v12   ;;  %3273 = vperm.xlu0 %4949, %v4706_v13  }
  0x93   : > { %3288 = vperm.xlu1 %4950, %v4709_v14   ;;  %3283 = vperm.xlu0 %4949, %v4708_v15  }
  0x97   : > { %3298 = vperm.xlu1 %4950, %v4711_v16   ;;  %3293 = vperm.xlu0 %4949, %v4710_v17  }
  0x9b   : > { %3308 = vperm.xlu1 %4950, %v4713_v18   ;;  %3303 = vperm.xlu0 %4949, %v4712_v19  }
  0x9e   : > { %v598_v31 = vpop.permute.xlu0 %597  ;;  %v608_v33 = vpop.permute.xlu1 %607 }
  0x9f   : > { %3318 = vperm.xlu1 %4950, %v4715_v20   ;;  %3313 = vperm.xlu0 %4949, %v4714_v21  }
  0xa2   : > { %v603_v36 = vpop.permute.xlu0 %602  ;;  %v613_v38 = vpop.permute.xlu1 %612 }
  0xa6   : > { %v618_v41 = vpop.permute.xlu0 %617  ;;  %v623_v43 = vpop.permute.xlu1 %622 }
  0xaa   : > { %v628_v46 = vpop.permute.xlu0 %627  ;;  %v633_v48 = vpop.permute.xlu1 %632 }
  0xae   : > { %v638_v51 = vpop.permute.xlu0 %637  ;;  %v643_v53 = vpop.permute.xlu1 %642 }
  0xb2   : > { %v648_v56 = vpop.permute.xlu0 %647  ;;  %v653_v60 = vpop.permute.xlu1 %652 }
  0xb6   : > { %v658_v14 = vpop.permute.xlu0 %657 }
  0xf0   : > { %v500_v22 = vpop.f32.mrf.mxu0 }
  0xf1   : > { %v5498_v0 = vadd.f32 %v598_v31, %v500_v22 }
  0xf2   : > { %v502_v23 = vpop.f32.mrf.mxu0 }
  0xf3   : > { %v5506_v5 = vadd.f32 %v598_v31, %v502_v23 }
  0xf4   : > { %v504_v24 = vpop.f32.mrf.mxu0 }
  0xf5   : > { %v5500_v1 = vadd.f32 %v603_v36, %v504_v24  ;;  %v663_v24 = vpop.permute.xlu1 %662 }
  0xf6   : > { %v506_v25 = vpop.f32.mrf.mxu0 }
  0xf7   : > { %v5508_v6 = vadd.f32 %v603_v36, %v506_v25 }
  0xf8   : > { %v510_v27 = vpop.f32.mrf.mxu0 }
  0xf9   : > { %v5490_v58 = vadd.f32 %v608_v33, %v510_v27 }
  0xfa   : > { %v512_v28 = vpop.f32.mrf.mxu0 }
  0xfb   : > { %v5494_v61 = vadd.f32 %v608_v33, %v512_v28  ;;  %v707_v10 = vmin.f32 %v5498_v0, %v5490_v58 }
  0xfc   : > { %v514_v29 = vpop.f32.mrf.mxu0 }
  0xfd   : > { %v5492_v59 = vadd.f32 %v613_v38, %v514_v29  ;;  %v728_v15 = vmin.f32 %v5506_v5, %v5494_v61 }
  0xfe   : > { %v516_v30 = vpop.f32.mrf.mxu0 }
  0xff   : > { %v5496_v62 = vadd.f32 %v613_v38, %v516_v30  ;;  %v708_v11 = vmin.f32 %v5500_v1, %v5492_v59 }
 0x100   : > { %v520_v32 = vpop.f32.mrf.mxu0 }
 0x101   : > { %v5502_v3 = vadd.f32 %v618_v41, %v520_v32  ;;  %v729_v16 = vmin.f32 %v5508_v6, %v5496_v62 }
 0x102   : > { %v522_v34 = vpop.f32.mrf.mxu0 }
 0x103   : > { %v5510_v7 = vadd.f32 %v618_v41, %v522_v34  ;;  %v709_v20 = vmin.f32 %v707_v10, %v5502_v3 }
 0x104   : > { %v524_v35 = vpop.f32.mrf.mxu0 }
 0x105   : > { %v5504_v4 = vadd.f32 %v623_v43, %v524_v35  ;;  %v730_v25 = vmin.f32 %v728_v15, %v5510_v7 }
 0x106   : > { %v526_v37 = vpop.f32.mrf.mxu0 }
 0x107   : > { %v5512_v8 = vadd.f32 %v623_v43, %v526_v37  ;;  %v710_v21 = vmin.f32 %v708_v11, %v5504_v4 }
 0x108   : > { %v530_v39 = vpop.f32.mrf.mxu0 }
 0x109   : > { %v5518_v12 = vadd.f32 %v628_v46, %v530_v39  ;;  %v731_v27 = vmin.f32 %v729_v16, %v5512_v8 }
 0x10a   : > { %v532_v40 = vpop.f32.mrf.mxu0 }
 0x10b   : > { %v5526_v17 = vadd.f32 %v628_v46, %v532_v40  ;;  %v711_v31 = vmin.f32 %v709_v20, %v5518_v12 }
 0x10c   : > { %v534_v42 = vpop.f32.mrf.mxu0 }
 0x10d   : > { %v5520_v13 = vadd.f32 %v633_v48, %v534_v42  ;;  %v732_v35 = vmin.f32 %v730_v25, %v5526_v17 }
 0x10e   : > { %v536_v44 = vpop.f32.mrf.mxu0 }
 0x10f   : > { %v5528_v18 = vadd.f32 %v633_v48, %v536_v44  ;;  %v712_v32 = vmin.f32 %v710_v21, %v5520_v13  ;;  %v668_v44 = vpop.permute.xlu0 %667 }
 0x110   : > { %v540_v45 = vpop.f32.mrf.mxu0 }
 0x111   : > { %v5532_v22 = vadd.f32 %v638_v51, %v540_v45  ;;  %v733_v36 = vmin.f32 %v731_v27, %v5528_v18 }
 0x112   : > { %v542_v47 = vpop.f32.mrf.mxu0 }
 0x113   : > { %v5538_v28 = vadd.f32 %v638_v51, %v542_v47  ;;  %v713_v40 = vmin.f32 %v711_v31, %v5532_v22 }
 0x114   : > { %v544_v49 = vpop.f32.mrf.mxu0 }
 0x115   : > { %v5534_v23 = vadd.f32 %v643_v53, %v544_v49  ;;  %v734_v45 = vmin.f32 %v732_v35, %v5538_v28 }
 0x116   : > { %v546_v50 = vpop.f32.mrf.mxu0 }
 0x117   : > { %v5540_v29 = vadd.f32 %v643_v53, %v546_v50  ;;  %v714_v41 = vmin.f32 %v712_v32, %v5534_v23  ;;  %v673_v53 = vpop.permute.xlu1 %672  ;;  %v8095_v32 = vlaneseq }
 0x118   : > { %v550_v52 = vpop.f32.mrf.mxu0 }
 0x119   : > { %v5544_v33 = vadd.f32 %v648_v56, %v550_v52  ;;  %v735_v46 = vmin.f32 %v733_v36, %v5540_v29 }
 0x11a   : > { %v552_v54 = vpop.f32.mrf.mxu0 }
 0x11b   : > { %v5550_v37 = vadd.f32 %v648_v56, %v552_v54  ;;  %v715_v49 = vmin.f32 %v713_v40, %v5544_v33  ;;  %v5587_v40 = vshrl.u32 %v8095_v32, 7 }
 0x11c   : > { %v554_v55 = vpop.f32.mrf.mxu0 }
 0x11d   : > { %v5546_v34 = vadd.f32 %v653_v60, %v554_v55  ;;  %v736_v54 = vmin.f32 %v734_v45, %v5550_v37 }
 0x11e   : > { %v556_v57 = vpop.f32.mrf.mxu0 }
 0x11f   : > { %v5552_v38 = vadd.f32 %v653_v60, %v556_v57  ;;  %v716_v50 = vmin.f32 %v714_v41, %v5546_v34 }
 0x120   : > { %v560_v63 = vpop.f32.mrf.mxu0 }
 0x121   : > { %v5556_v42 = vadd.f32 %v658_v14, %v560_v63  ;;  %v737_v55 = vmin.f32 %v735_v46, %v5552_v38  ;;  %v5592_v46 = vadd.s32 8, %v5587_v40 }
 0x122   : > { %v562_v9 = vpop.f32.mrf.mxu0 }
 0x123   : > { %v5562_v47 = vadd.f32 %v658_v14, %v562_v9  ;;  %v717_v57 = vmin.f32 %v715_v49, %v5556_v42  ;;  %v5598_v49 = vadd.s32 24, %v5587_v40 }
 0x124   : > { %v564_v19 = vpop.f32.mrf.mxu0 }
 0x125   : > { %v5558_v43 = vadd.f32 %v663_v24, %v564_v19  ;;  %v738_v10 = vmin.f32 %v736_v54, %v5562_v47  ;;  %v5607_v54 = vadd.s32 48, %v5587_v40 }
 0x126   : > { %v566_v30 = vpop.f32.mrf.mxu0 }
 0x127   : > { %v5566_v51 = vadd.f32 %v663_v24, %v566_v30  ;;  %v718_v60 = vmin.f32 %v716_v50, %v5558_v43  ;;  %v5601_v50 = vadd.s32 32, %v5587_v40 }
 0x128   : > { %v570_v39 = vpop.f32.mrf.mxu0 }
 0x129   : > { %v5568_v52 = vadd.f32 %v668_v44, %v570_v39  ;;  %v739_v14 = vmin.f32 %v737_v55, %v5566_v51  ;;  %v5618_v55 = vadd.s32 56, %v5587_v40 }
 0x12a   : > { %v572_v48 = vpop.f32.mrf.mxu0 }
 0x12b   : > { %v5574_v63 = vadd.f32 %v668_v44, %v572_v48  ;;  %v719_v15 = vmin.f32 %v717_v57, %v5568_v52  ;;  %v5595_v48 = vadd.s32 16, %v5587_v40  ;;  %v5624_v57 = vadd.s32 72, %v5587_v40 }
 0x12c   : > { %v574_v56 = vpop.f32.mrf.mxu0 }
 0x12d   : > { %v5576_v9 = vadd.f32 %v673_v53, %v574_v56  ;;  %v740_v20 = vmin.f32 %v738_v10, %v5574_v63  ;;  %v5621_v56 = vadd.s32 64, %v5587_v40 }
 0x12e   : > { %v576_v11 = vpop.f32.mrf.mxu0 }
 0x12f   : > { %v720_v16 = vmin.f32 %v718_v60, %v5576_v9  ;;  %v5582_v19 = vadd.f32 %v673_v53, %v576_v11  ;;  %v5604_v53 = vadd.s32 40, %v5587_v40 }
 0x131   : > { %v721_v21 = vmin.f32 %v719_v15, %v720_v16  ;;  %v741_v24 = vmin.f32 %v739_v14, %v5582_v19  ;;  %v5643_v16 = vadd.s32 112, %v5587_v40 }
 0x133   : > { %v722_v25 = vrot.slane %v721_v21, 4  ;;  %v742_v27 = vmin.f32 %v740_v20, %v741_v24  ;;  %v5646_v20 = vadd.s32 120, %v5587_v40 }
 0x135   : > { %v723_v30 = vmin.f32 %v721_v21, %v722_v25  ;;  %v743_v31 = vrot.slane %v742_v27, 4 }
 0x137   : > { %v724_v35 = vrot.slane %v723_v30, 2  ;;  %v744_v39 = vmin.f32 %v742_v27, %v743_v31 }
 0x139   : > { %v725_v36 = vmin.f32 %v723_v30, %v724_v35  ;;  %v745_v45 = vrot.slane %v744_v39, 2 }
 0x13b   : > { %v726_v41 = vrot.slane %v725_v36, 1  ;;  %v746_v60 = vmin.f32 %v744_v39, %v745_v45 }
 0x13d   : > { %v5589_v44 = vmin.f32 %v725_v36, %v726_v41  ;;  %v747_v21 = vrot.slane %v746_v60, 1 }
 0x13f   : > { %vm749_vm1 = vcmp.eq.f32.partialorder %v5498_v0, %v5589_v44  ;;  %vm751_vm2 = vcmp.eq.f32.partialorder %v5500_v1, %v5589_v44  ;;  %vm753_vm3 = vcmp.eq.f32.partialorder %v5490_v58, %v5589_v44  ;;  %vm755_vm4 = vcmp.eq.f32.partialorder %v5492_v59, %v5589_v44 }
 0x140   : > { %v5627_v0 = vadd.s32 80, %v5587_v40  ;;  %v5630_v1 = vadd.s32 88, %v5587_v40  ;;  %v5633_v58 = vadd.s32 96, %v5587_v40  ;;  %v5636_v59 = vadd.s32 104, %v5587_v40 }
 0x141   : > { %v781_v10 = vsel %vm749_vm1, %v5587_v40, 128  ;;  %v783_v11 = vsel %vm751_vm2, %v5592_v46, 128  ;;  %v785_v14 = vsel %vm753_vm3, %v5595_v48, 128  ;;  %v787_v15 = vsel %vm755_vm4, %v5598_v49, 128 }
 0x142   : > { %vm757_vm5 = vcmp.eq.f32.partialorder %v5502_v3, %v5589_v44  ;;  %vm759_vm6 = vcmp.eq.f32.partialorder %v5504_v4, %v5589_v44  ;;  %vm761_vm7 = vcmp.eq.f32.partialorder %v5518_v12, %v5589_v44  ;;  %vm763_vm8 = vcmp.eq.f32.partialorder %v5520_v13, %v5589_v44 }
 0x143   : > { %vm765_vm9 = vcmp.eq.f32.partialorder %v5532_v22, %v5589_v44  ;;  %vm767_vm10 = vcmp.eq.f32.partialorder %v5534_v23, %v5589_v44  ;;  %vm769_vm11 = vcmp.eq.f32.partialorder %v5544_v33, %v5589_v44  ;;  %vm813_vm12 = vcmp.lt.s32.totalorder %v781_v10, %v785_v14 }
 0x144   : > { %vm815_vm13 = vcmp.lt.s32.totalorder %v783_v11, %v787_v15  ;;  %v789_v3 = vsel %vm757_vm5, %v5601_v50, 128  ;;  %v791_v4 = vsel %vm759_vm6, %v5604_v53, 128  ;;  %v814_v24 = vsel %vm813_vm12, %v781_v10, %v785_v14 }
 0x145   : > { %v816_v25 = vsel %vm815_vm13, %v783_v11, %v787_v15  ;;  %vm771_vm14 = vcmp.eq.f32.partialorder %v5546_v34, %v5589_v44  ;;  %vm773_vm15 = vcmp.eq.f32.partialorder %v5556_v42, %v5589_v44  ;;  %vm817_vm1 = vcmp.lt.s32.totalorder %v814_v24, %v789_v3 }
 0x146   : > { %vm819_vm2 = vcmp.lt.s32.totalorder %v816_v25, %v791_v4  ;;  %v793_v27 = vsel %vm761_vm7, %v5607_v54, 128  ;;  %v795_v30 = vsel %vm763_vm8, %v5618_v55, 128  ;;  %v818_v31 = vsel %vm817_vm1, %v814_v24, %v789_v3 }
 0x147   : > { %v820_v35 = vsel %vm819_vm2, %v816_v25, %v791_v4  ;;  %vm775_vm3 = vcmp.eq.f32.partialorder %v5558_v43, %v5589_v44  ;;  %vm777_vm4 = vcmp.eq.f32.partialorder %v5568_v52, %v5589_v44  ;;  %vm821_vm5 = vcmp.lt.s32.totalorder %v818_v31, %v793_v27 }
 0x148   : > { %vm823_vm6 = vcmp.lt.s32.totalorder %v820_v35, %v795_v30  ;;  %v797_v12 = vsel %vm765_vm9, %v5621_v56, 128  ;;  %v799_v13 = vsel %vm767_vm10, %v5624_v57, 128  ;;  %v822_v36 = vsel %vm821_vm5, %v818_v31, %v793_v27 }
 0x149   : > { %v824_v39 = vsel %vm823_vm6, %v820_v35, %v795_v30  ;;  %vm779_vm7 = vcmp.eq.f32.partialorder %v5576_v9, %v5589_v44  ;;  %vm825_vm8 = vcmp.lt.s32.totalorder %v822_v36, %v797_v12  ;;  %v5690_v41 = vmin.f32 %v746_v60, %v747_v21 }
 0x14a   : > { %vm827_vm12 = vcmp.lt.s32.totalorder %v824_v39, %v799_v13  ;;  %v801_v22 = vsel %vm769_vm11, %v5627_v0, 128  ;;  %v803_v23 = vsel %vm771_vm14, %v5630_v1, 128  ;;  %v826_v45 = vsel %vm825_vm8, %v822_v36, %v797_v12 }
 0x14b   : > { %v828_v10 = vsel %vm827_vm12, %v824_v39, %v799_v13  ;;  %v805_v9 = vsel %vm773_vm15, %v5633_v58, 128  ;;  %v807_v60 = vsel %vm775_vm3, %v5636_v59, 128  ;;  %vm829_vm9 = vcmp.lt.s32.totalorder %v826_v45, %v801_v22 }
 0x14c   : > { %vm831_vm10 = vcmp.lt.s32.totalorder %v828_v10, %v803_v23  ;;  %v809_v33 = vsel %vm777_vm4, %v5643_v16, 128  ;;  %v811_v34 = vsel %vm779_vm7, %v5646_v20, 128  ;;  %v830_v11 = vsel %vm829_vm9, %v826_v45, %v801_v22 }
 0x14d   : > { %v832_v14 = vsel %vm831_vm10, %v828_v10, %v803_v23  ;;  %vm833_vm11 = vcmp.lt.s32.totalorder %v830_v11, %v805_v9  ;;  %vm750_vm14 = vcmp.eq.f32.partialorder %v5506_v5, %v5690_v41  ;;  %vm754_vm15 = vcmp.eq.f32.partialorder %v5494_v61, %v5690_v41 }
 0x14e   : > { %vm835_vm13 = vcmp.lt.s32.totalorder %v832_v14, %v807_v60  ;;  %v834_v42 = vsel %vm833_vm11, %v830_v11, %v805_v9  ;;  %vm752_vm1 = vcmp.eq.f32.partialorder %v5508_v6, %v5690_v41  ;;  %vm756_vm2 = vcmp.eq.f32.partialorder %v5496_v62, %v5690_v41 }
 0x14f   : > { %v836_v43 = vsel %vm835_vm13, %v832_v14, %v807_v60  ;;  %vm837_vm3 = vcmp.lt.s32.totalorder %v834_v42, %v809_v33  ;;  %v782_v15 = vsel %vm750_vm14, %v5587_v40, 128  ;;  %v786_v21 = vsel %vm754_vm15, %v5595_v48, 128 }
 0x150   : > { %vm839_vm4 = vcmp.lt.s32.totalorder %v836_v43, %v811_v34  ;;  %v838_v52 = vsel %vm837_vm3, %v834_v42, %v809_v33  ;;  %vm758_vm6 = vcmp.eq.f32.partialorder %v5510_v7, %v5690_v41  ;;  %v784_v61 = vsel %vm752_vm1, %v5592_v46, 128 }
 0x151   : > { %v840_v44 = vsel %vm839_vm4, %v836_v43, %v811_v34  ;;  %v788_v5 = vsel %vm756_vm2, %v5598_v49, 128  ;;  %vm760_vm7 = vcmp.eq.f32.partialorder %v5512_v8, %v5690_v41  ;;  %vm762_vm8 = vcmp.eq.f32.partialorder %v5526_v17, %v5690_v41 }
 0x152   : > { %vm841_vm5 = vcmp.lt.s32.totalorder %v838_v52, %v840_v44  ;;  %vm764_vm12 = vcmp.eq.f32.partialorder %v5528_v18, %v5690_v41  ;;  %vm766_vm9 = vcmp.eq.f32.partialorder %v5538_v28, %v5690_v41  ;;  %vm768_vm10 = vcmp.eq.f32.partialorder %v5540_v29, %v5690_v41 }
 0x153   : > { %v842_v6 = vsel %vm841_vm5, %v838_v52, %v840_v44  ;;  %vm852_vm11 = vcmp.lt.s32.totalorder %v782_v15, %v786_v21  ;;  %vm770_vm13 = vcmp.eq.f32.partialorder %v5550_v37, %v5690_v41  ;;  %v790_v7 = vsel %vm758_vm6, %v5601_v50, 128 }
 0x154   : > { %v843_v62 = vrot.slane %v842_v6, 4  ;;  %v853_v8 = vsel %vm852_vm11, %v782_v15, %v786_v21  ;;  %vm854_vm14 = vcmp.lt.s32.totalorder %v784_v61, %v788_v5  ;;  %v792_v17 = vsel %vm760_vm7, %v5604_v53, 128 }
 0x155   : > { %v855_v3 = vsel %vm854_vm14, %v784_v61, %v788_v5  ;;  %vm856_vm1 = vcmp.lt.s32.totalorder %v853_v8, %v790_v7  ;;  %vm772_vm2 = vcmp.eq.f32.partialorder %v5552_v38, %v5690_v41  ;;  %v794_v4 = vsel %vm762_vm8, %v5607_v54, 128 }
 0x156   : > { %vm844_vm15 = vcmp.lt.s32.totalorder %v842_v6, %v843_v62  ;;  %v857_v24 = vsel %vm856_vm1, %v853_v8, %v790_v7  ;;  %vm858_vm3 = vcmp.lt.s32.totalorder %v855_v3, %v792_v17  ;;  %vm774_vm4 = vcmp.eq.f32.partialorder %v5562_v47, %v5690_v41 }
 0x157   : > { %v796_v25 = vsel %vm764_vm12, %v5618_v55, 128  ;;  %v859_v27 = vsel %vm858_vm3, %v855_v3, %v792_v17  ;;  %vm860_vm5 = vcmp.lt.s32.totalorder %v857_v24, %v794_v4  ;;  %v845_v30 = vsel %vm844_vm15, %v842_v6, %v843_v62 }
 0x158   : > { %v798_v31 = vsel %vm766_vm9, %v5621_v56, 128  ;;  %v861_v35 = vsel %vm860_vm5, %v857_v24, %v794_v4  ;;  %vm862_vm6 = vcmp.lt.s32.totalorder %v859_v27, %v796_v25  ;;  %vm776_vm7 = vcmp.eq.f32.partialorder %v5566_v51, %v5690_v41 }
 0x159   : > { %v800_v12 = vsel %vm768_vm10, %v5624_v57, 128  ;;  %v863_v18 = vsel %vm862_vm6, %v859_v27, %v796_v25  ;;  %vm864_vm8 = vcmp.lt.s32.totalorder %v861_v35, %v798_v31  ;;  %vm778_vm12 = vcmp.eq.f32.partialorder %v5574_v63, %v5690_v41 }
 0x15a   : > { %v802_v28 = vsel %vm770_vm13, %v5627_v0, 128  ;;  %v865_v13 = vsel %vm864_vm8, %v861_v35, %v798_v31  ;;  %vm866_vm9 = vcmp.lt.s32.totalorder %v863_v18, %v800_v12  ;;  %v846_v36 = vrot.slane %v845_v30, 2  ;;  %v1480_v35 = vpop.permute.xlu0 %1479 }
 0x15b   : > { %v804_v39 = vsel %vm772_vm2, %v5630_v1, 128  ;;  %v867_v29 = vsel %vm866_vm9, %v863_v18, %v800_v12  ;;  %vm868_vm10 = vcmp.lt.s32.totalorder %v865_v13, %v802_v28  ;;  %vm780_vm11 = vcmp.eq.f32.partialorder %v5582_v19, %v5690_v41  ;;  %v1485_v18 = vpop.permute.xlu1 %1484 }
 0x15c   : > { %v806_v63 = vsel %vm774_vm4, %v5633_v58, 128  ;;  %v869_v37 = vsel %vm868_vm10, %v865_v13, %v802_v28  ;;  %vm870_vm13 = vcmp.lt.s32.totalorder %v867_v29, %v804_v39  ;;  %v808_v22 = vsel %vm776_vm7, %v5636_v59, 128 }
 0x15d   : > { %v871_v23 = vsel %vm870_vm13, %v867_v29, %v804_v39  ;;  %vm872_vm14 = vcmp.lt.s32.totalorder %v869_v37, %v806_v63  ;;  %v810_v38 = vsel %vm778_vm12, %v5643_v16, 128  ;;  %vm847_vm1 = vcmp.lt.s32.totalorder %v845_v30, %v846_v36  ;;  %v4959_v29 = vld [vmem:[%s8210_s3] sm:$0xff]  }
 0x15e   : > { %v873_v45 = vsel %vm872_vm14, %v869_v37, %v806_v63  ;;  %vm874_vm15 = vcmp.lt.s32.totalorder %v871_v23, %v808_v22  ;;  %v812_v19 = vsel %vm780_vm11, %v5646_v20, 128  ;;  %v848_v60 = vsel %vm847_vm1, %v845_v30, %v846_v36  ;;  %v4255_v63 = vld [vmem:[%s5260_s12 + $0x68] sm:$0xff]  ;;  %v4257_v37 = vld [vmem:[%s5260_s12 + $0x78] sm:$0xff]  ;;  %v1490_v36 = vpop.permute.xlu0 %1489 }
 0x15f   : > { %v875_v10 = vsel %vm874_vm15, %v871_v23, %v808_v22  ;;  %vm876_vm2 = vcmp.lt.s32.totalorder %v873_v45, %v810_v38  ;;  %v849_v51 = vrot.slane %v848_v60, 1  ;;  %v5136_v14 = vmov 1966171168   ;;  %v4254_v23 = vld [vmem:[%s5260_s12 + $0x60] sm:$0xff] }
 0x160   : > { %v877_v47 = vsel %vm876_vm2, %v873_v45, %v810_v38  ;;  %vm878_vm3 = vcmp.lt.s32.totalorder %v875_v10, %v812_v19  ;;  %v1151_v42 = vunpack.c.l.s4 %v5136_v14  ;;  %v8183_v3 = vmov 0  ;;  %v4256_v38 = vld [vmem:[%s5260_s12 + $0x70] sm:$0xff]  ;;  %v4251_v45 = vld [vmem:[%s5260_s12 + $0x48] sm:$0xff]  ;;  %v4964_v14 = vld [vmem:[%s8173_s1 + $0x60] sm:$0xff]  }
 0x161   : > { %v879_v9 = vsel %vm878_vm3, %v875_v10, %v812_v19  ;;  %vm850_vm6 = vcmp.lt.s32.totalorder %v848_v60, %v849_v51  ;;  %v8185_v4 = vmov 0  ;;  %v8188_v25 = vmov 0  ;;  %v4253_v19 = vld [vmem:[%s5260_s12 + $0x58] sm:$0xff] }
 0x162   : > { %vm880_vm4 = vcmp.lt.s32.totalorder %v877_v47, %v879_v9  ;;  %v5782_v52 = vsel %vm850_vm6, %v848_v60, %v849_v51  ;;  %v1152_v15 = vunpack.c.0.s8 %v1151_v42  ;;  %v8190_v27 = vmov 0  ;;  %v4252_v60 = vld [vmem:[%s5260_s12 + $0x50] sm:$0xff]  ;;  %v4961_v51 = vld [vmem:[%s8173_s1 + $0x48] sm:$0xff]  }
 0x163   : > { %v881_v33 = vsel %vm880_vm4, %v877_v47, %v879_v9  ;;  %vm919_vm12 = vcmp.eq.s32.totalorder %v5643_v16, %v5782_v52  ;;  %vm921_vm9 = vcmp.eq.s32.totalorder %v5646_v20, %v5782_v52  ;;  %vm915_vm3 = vcmp.eq.s32.totalorder %v5633_v58, %v5782_v52  ;;  %v4250_v9 = vld [vmem:[%s5260_s12 + $0x40] sm:$0xff]  ;;  %v4965_v42 = vld [vmem:[%s8173_s1 + $0x68] sm:$0xff]  }
 0x164   : > { %v882_v34 = vrot.slane %v881_v33, 4  ;;  %vm5811_vm1 = vmpackc.low %vm921_vm9, %vm919_vm12  ;;  %v5816_v6 = vsub.s32 %v1152_v15, %v5587_v40  ;;  %vm917_vm4 = vcmp.eq.s32.totalorder %v5636_v59, %v5782_v52  ;;  %vm911_vm12 = vcmp.eq.s32.totalorder %v5627_v0, %v5782_v52  ;;  %v4969_v15 = vld [vmem:[%s8223_s2] sm:$0xff]  }
 0x165   : > { %vm913_vm9 = vcmp.eq.s32.totalorder %v5630_v1, %v5782_v52  ;;  %vm905_vm0 = vcmp.eq.s32.totalorder %v5618_v55, %v5782_v52  ;;  %v8202_v28 = vmov 0  ;;  %v1282_v22 = vpack.c.bf16 %v4257_v37, %v4255_v63 }
 0x166   : > { %vm883_vm5 = vcmp.lt.s32.totalorder %v881_v33, %v882_v34  ;;  %8178 = vst [vmem:[#allocation8_spill] sm:$0xff] %v5816_v6  ;;  %v1281_v10 = vpack.c.bf16 %v4256_v38, %v4254_v23  ;;  %v1280_v47 = vpack.c.bf16 %v4253_v19, %v4251_v45 }
 0x167   : > { %v884_v41 = vsel %vm883_vm5, %v881_v33, %v882_v34  ;;  %v1279_v33 = vpack.c.bf16 %v4252_v60, %v4250_v9  ;;  %v4960_v34 = vld [vmem:[%s8173_s1 + $0x40] sm:$0xff]  }
 0x168   : > { %v885_v11 = vrot.slane %v884_v41, 2 }
 0x16a   : > { %vm886_vm7 = vcmp.lt.s32.totalorder %v884_v41, %v885_v11 }
 0x16b   : > { %v887_v43 = vsel %vm886_vm7, %v884_v41, %v885_v11  ;;  %vm5845_vm7 = vmpackc.low %vm917_vm4, %vm915_vm3  ;;  %vm907_vm4 = vcmp.eq.s32.totalorder %v5621_v56, %v5782_v52  ;;  %v4962_v41 = vld [vmem:[%s8173_s1 + $0x50] sm:$0xff]   ;;  %v4963_v11 = vld [vmem:[%s8173_s1 + $0x58] sm:$0xff]  }
 0x16c   : > { %v888_v44 = vrot.slane %v887_v43, 1 }
 0x16e   : > { %vm889_vm8 = vcmp.lt.s32.totalorder %v887_v43, %v888_v44 }
 0x16f   : > { %v5784_v21 = vsel %vm889_vm8, %v887_v43, %v888_v44  ;;  %v4966_v43 = vld [vmem:[%s8173_s1 + $0x70] sm:$0xff]   ;;  %v4968_v44 = vld [vmem:[%s8210_s3 + $0x8] sm:$0xff]  }
 0x170   : > { %vm920_vm10 = vcmp.eq.s32.totalorder %v5643_v16, %v5784_v21  ;;  %vm922_vm11 = vcmp.eq.s32.totalorder %v5646_v20, %v5784_v21  ;;  %vm916_vm13 = vcmp.eq.s32.totalorder %v5633_v58, %v5784_v21  ;;  %vm918_vm14 = vcmp.eq.s32.totalorder %v5636_v59, %v5784_v21 }
 0x171   : > { %vm5798_vm15 = vmpackc.low %vm922_vm11, %vm920_vm10  ;;  %vm912_vm5 = vcmp.eq.s32.totalorder %v5627_v0, %v5784_v21  ;;  %vm914_vm6 = vcmp.eq.s32.totalorder %v5630_v1, %v5784_v21  ;;  %v1149_v7 = vcombine.low %v5782_v52, %v5784_v21  ;;  %vm5862_vm10 = vcmp.lt.s32.totalorder %v8095_v32, 256 }
 0x172   : > { %4153 = vmatprep.subr.msk.bf16.mxu1 %vm5798_vm15, %v8098_v26  ;;  %4219 = vmatprep.subr.msk.bf16.mxu0 %vm5798_vm15, %v8098_v26  ;;  %vm5824_vm2 = vmpackc.low %vm918_vm14, %vm916_vm13  ;;  %v8186_v4 = vsel %vm5862_vm10, 4294967295, %v8185_v4  ;;  %vm908_vm11 = vcmp.eq.s32.totalorder %v5621_v56, %v5784_v21  ;;  %vm910_vm13 = vcmp.eq.s32.totalorder %v5624_v57, %v5784_v21 }
 0x173   : > { %4155 = vmatpush1.bf16.msk.msra.mxu1 %vm5811_vm1, %v8098_v26  ;;  %4221 = vmatpush1.bf16.xpose.msk.msra.mxu0 %vm5811_vm1, %v8098_v26  ;;  %v1156_v17 = vrot.slane %v1149_v7, %v5816_v6  ;;  %vm5853_vm8 = vmpackc.low %vm914_vm6, %vm912_vm5  ;;  %8187 = vst [vmem:[#allocation9_spill] sm:$0xff] %v8186_v4  ;;  %vm909_vm5 = vcmp.eq.s32.totalorder %v5624_v57, %v5782_v52 }
 0x174   : > { %4157 = vmatprep.subr.msk.bf16.mxu1 %vm5824_vm2, %v8098_v26  ;;  %4223 = vmatprep.subr.msk.bf16.mxu0 %vm5824_vm2, %v8098_v26  ;;  %v8184_v3 = vsel %vm5853_vm8, 4294967295, %v8183_v3  ;;  %vm5874_vm14 = vmpackc.low %vm913_vm9, %vm911_vm12  ;;  %vm904_vm6 = vcmp.eq.s32.totalorder %v5607_v54, %v5784_v21  ;;  %vm906_vm12 = vcmp.eq.s32.totalorder %v5618_v55, %v5784_v21 }
 0x175   : > { %v1163_v24 = vrot.slane %v1156_v17, %v5816_v6  ;;  %v8189_v25 = vsel %vm5874_vm14, 4294967295, %v8188_v25  ;;  %vm5889_vm3 = vmpackc.low %vm910_vm13, %vm908_vm11  ;;  %vm903_vm13 = vcmp.eq.s32.totalorder %v5607_v54, %v5782_v52 }
 0x176   : > { %v8191_v27 = vsel %vm5889_vm3, 4294967295, %v8190_v27  ;;  %vm5907_vm9 = vmpackc.low %vm909_vm5, %vm907_vm4  ;;  %vm900_vm4 = vcmp.eq.s32.totalorder %v5601_v50, %v5784_v21  ;;  %vm902_vm5 = vcmp.eq.s32.totalorder %v5604_v53, %v5784_v21 }
 0x177   : > { %4159 = vmatpush1.bf16.msk.msra.mxu1 %vm5845_vm7, %v8098_v26  ;;  %1168 = vst.msk [vmem:[%s5878_s22] ss:$4 sm:$0x3] %vm5862_vm10, %v1163_v24  ;;  %vm5914_vm11 = vmpackc.low %vm906_vm12, %vm904_vm6  ;;  %vm899_vm10 = vcmp.eq.s32.totalorder %v5601_v50, %v5782_v52 }
 0x178   : > { %4161 = vmatprep.subr.msk.bf16.mxu1 %vm5853_vm8, %v8098_v26  ;;  %vm5929_vm6 = vmpackc.low %vm905_vm0, %vm903_vm13  ;;  %vm901_vm0 = vcmp.eq.s32.totalorder %v5604_v53, %v5782_v52  ;;  %vm896_vm13 = vcmp.eq.s32.totalorder %v5595_v48, %v5784_v21 }
 0x179   : > { %vm5939_vm12 = vmpackc.low %vm902_vm5, %vm900_vm4  ;;  %vm898_vm4 = vcmp.eq.s32.totalorder %v5598_v49, %v5784_v21 }
 0x17a   : > { %vm5957_vm5 = vmpackc.low %vm901_vm0, %vm899_vm10  ;;  %vm892_vm10 = vcmp.eq.s32.totalorder %v5587_v40, %v5784_v21  ;;  %vm894_vm0 = vcmp.eq.s32.totalorder %v5592_v46, %v5784_v21  ;;  %v4970_v21 = vld [vmem:[%s8223_s2 + $0x8] sm:$0xff]  }
 0x17b   : > { %4163 = vmatpush1.bf16.msk.msra.mxu1 %vm5874_vm14, %v8098_v26  ;;  %4225 = vmatpush1.bf16.xpose.msk.msra.mxu0 %vm5845_vm7, %v8098_v26 }
 0x17c   : > { %4165 = vmatprep.subr.msk.bf16.mxu1 %vm5889_vm3, %v8098_v26  ;;  %4227 = vmatprep.subr.msk.bf16.mxu0 %vm5853_vm8, %v8098_v26  ;;  %vm897_vm8 = vcmp.eq.s32.totalorder %v5598_v49, %v5782_v52 }
 0x17f   : > { %4167 = vmatpush1.bf16.msk.msra.mxu1 %vm5907_vm9, %v8098_v26 }
 0x180   : > { %4169 = vmatprep.subr.msk.bf16.mxu1 %vm5914_vm11, %v8098_v26 }
 0x183   : > { %4171 = vmatpush1.bf16.msk.msra.mxu1 %vm5929_vm6, %v8098_v26  ;;  %4229 = vmatpush1.bf16.xpose.msk.msra.mxu0 %vm5874_vm14, %v8098_v26  ;;  %vm5964_vm14 = vmpackc.low %vm898_vm4, %vm896_vm13 }
 0x184   : > { %4173 = vmatprep.subr.msk.bf16.mxu1 %vm5939_vm12, %v8098_v26  ;;  %4231 = vmatprep.subr.msk.bf16.mxu0 %vm5889_vm3, %v8098_v26  ;;  %v8203_v28 = vsel %vm5964_vm14, 4294967295, %v8202_v28  ;;  %vm895_vm3 = vcmp.eq.s32.totalorder %v5595_v48, %v5782_v52  ;;  %vm5989_vm4 = vmpackc.low %vm894_vm0, %vm892_vm10 }
 0x185   : > { %vm5979_vm13 = vmpackc.low %vm897_vm8, %vm895_vm3  ;;  %vm893_vm8 = vcmp.eq.s32.totalorder %v5592_v46, %v5782_v52 }
 0x187   : > { %4175 = vmatpush1.bf16.msk.msra.mxu1 %vm5957_vm5, %v8098_v26 }
 0x188   : > { %4177 = vmatprep.subr.msk.bf16.mxu1 %vm5964_vm14, %v8098_v26  ;;  %vm891_vm14 = vcmp.eq.s32.totalorder %v5587_v40, %v5782_v52  ;;  %v4967_v52 = vld [vmem:[%s8173_s1 + $0x78] sm:$0xff]  }
 0x189   : > { %vm6003_vm3 = vmpackc.low %vm893_vm8, %vm891_vm14  ;;  %vm8214_vm14 = vnez %v8203_v28 }
 0x18b   : > { %4179 = vmatpush1.bf16.msk.msra.mxu1 %vm5979_vm13, %v8098_v26  ;;  %4233 = vmatpush1.bf16.xpose.msk.msra.mxu0 %vm5907_vm9, %v8098_v26 }
 0x18c   : > { %4181 = vmatprep.subr.msk.bf16.mxu1 %vm5989_vm4, %v8098_v26  ;;  %4235 = vmatprep.subr.msk.bf16.mxu0 %vm5914_vm11, %v8098_v26 }
 0x18f   : > { %4183 = vmatpush1.bf16.msk.msra.mxu1 %vm6003_vm3, %v8098_v26 }
 0x190   : > { %4187 = vmatprep.subr.msk.bf16.mxu1 %vm5798_vm15, %v8098_v26  ;;  %vm8211_vm15 = vnez %v8184_v3 }
 0x192   : > { %1056 = vmatmul.mubr.bf16.vlgmr.msra.gmra.mxu1 %v4959_v29  ;;  %v1495_v29 = vpop.permute.xlu1 %1494 }
 0x193   : > { %4189 = vmatpush1.bf16.msk.msra.mxu1 %vm5811_vm1, %v8098_v26  ;;  %4237 = vmatpush1.bf16.xpose.msk.msra.mxu0 %vm5929_vm6, %v8098_v26  ;;  %vm8212_vm1 = vnez %v8189_v25 }
 0x194   : > { %4191 = vmatprep.subr.msk.bf16.mxu1 %vm5824_vm2, %v8098_v26  ;;  %4239 = vmatprep.subr.msk.bf16.mxu0 %vm5939_vm12, %v8098_v26  ;;  %vm8213_vm2 = vnez %v8191_v27 }
 0x195   : > { %1065 = vmatprep.mubr.bf16.mxu1 %v8096_v2 }
 0x196   : > { %v1505_v38 = vpop.permute.xlu1 %1504 }
 0x197   : > { %4193 = vmatpush1.bf16.msk.msra.mxu1 %vm5845_vm7, %v8098_v26  ;;  %vm8215_vm7 = vcmask 261120  }
 0x198   : > { %4195 = vmatprep.subr.msk.bf16.mxu1 %vm8211_vm15, %v8098_v26 }
 0x19a   : > { %1066 = vmatmul.mubr.bf16.gmra.mxu1 %v4968_v44  ;;  %v1515_v9 = vpop.permute.xlu1 %1514 }
 0x19b   : > { %4197 = vmatpush1.bf16.msk.msra.mxu1 %vm8212_vm1, %v8098_v26  ;;  %4241 = vmatpush1.bf16.xpose.msk.msra.mxu0 %vm5957_vm5, %v8098_v26 }
 0x19c   : > { %4199 = vmatprep.subr.msk.bf16.mxu1 %vm8213_vm2, %v8098_v26  ;;  %4243 = vmatprep.subr.msk.bf16.mxu0 %vm8214_vm14, %v8098_v26 }
 0x19d   : > { %1120 = vmatprep.mubr.bf16.mxu1 %v8096_v2 }
 0x19f   : > { %4201 = vmatpush1.bf16.msk.msra.mxu1 %vm5907_vm9, %v8098_v26  ;;  %vm8216_vm9 = vmmov %vm8215_vm7 }
 0x1a0   : > { %4203 = vmatprep.subr.msk.bf16.mxu1 %vm5914_vm11, %v8098_v26  ;;  %vm8217_vm11 = vmmov %vm8215_vm7 }
 0x1a3   : > { %4205 = vmatpush1.bf16.msk.msra.mxu1 %vm5929_vm6, %v8098_v26  ;;  %4245 = vmatpush1.bf16.xpose.msk.msra.mxu0 %vm5979_vm13, %v8098_v26  ;;  %vm8218_vm6 = vmmov %vm8215_vm7 }
 0x1a4   : > { %4207 = vmatprep.subr.msk.bf16.mxu1 %vm5939_vm12, %v8098_v26  ;;  %4247 = vmatprep.subr.msk.bf16.mxu0 %vm5989_vm4, %v8098_v26  ;;  %vm8219_vm12 = vmmov %vm8218_vm6 }
 0x1a7   : > { %4209 = vmatpush1.bf16.msk.msra.mxu1 %vm5957_vm5, %v8098_v26  ;;  %vm8220_vm5 = vmmov %vm8218_vm6 }
 0x1a8   : > { %4211 = vmatprep.subr.msk.bf16.mxu1 %vm8214_vm14, %v8098_v26  ;;  %vm8221_vm10 = vmmov %vm8220_vm5 }
 0x1a9   : > { %vm8222_vm0 = vmmov %vm8220_vm5 }
 0x1ab   : > { %4213 = vmatpush1.bf16.msk.msra.mxu1 %vm5979_vm13, %v8098_v26  ;;  %4249 = vmatpush1.bf16.xpose.msk.msra.mxu0 %vm6003_vm3, %v8098_v26 }
 0x1ac   : > { %4215 = vmatprep.subr.msk.bf16.mxu1 %vm5989_vm4, %v8098_v26  ;;  %1359 = vmatprep.subr.bf16.mxu0 %v1282_v22  ;;  %v1500_v22 = vpop.permute.xlu0 %1499 }
 0x1af   : > { %4217 = vmatpush1.bf16.msk.msra.mxu1 %vm6003_vm3, %v8098_v26 }
 0x1b2   : > { %1245 = vmatmul.mubr.bf16.vlgmr.msra.gmra.mxu0 %v8098_v26  ;;  %1121 = vmatmul.mubr.bf16.vlgmr.msra.gmra.mxu1 %v4969_v15 }
 0x1b3   : > { %1360 = vmatpush1.bf16.msra.mxu0 %v1281_v10  ;;  %1379 = vmatprep.mubr.bf16.mxu0 %v8096_v2  ;;  %v1510_v10 = vpop.permute.xlu0 %1509 }
 0x1b4   : > { %1361 = vmatprep.subr.bf16.mxu0 %v1280_v47  ;;  %1130 = vmatprep.mubr.bf16.mxu1 %v8096_v2 }
 0x1b7   : > { %1362 = vmatpush1.bf16.msra.mxu0 %v1279_v33 }
 0x1ba   : > { %4282 = vmatmul.mubr.msk.bf16.vlgmr.msra.gmra.mxu0 %vm8215_vm7, %v4960_v34  ;;  %1131 = vmatmul.mubr.bf16.gmra.mxu1 %v4970_v21  ;;  %v1520_v34 = vpop.permute.xlu0 %1519 }
 0x1bb   : > { %1389 = vmatprep.mubr.bf16.mxu0 %v8096_v2  ;;  %1939 = vmatprep.mubr.bf16.mxu1 %v8096_v2 }
 0x1c2   : > { %4283 = vmatmul.mubr.msk.bf16.gmra.mxu0 %vm8216_vm9, %v4961_v51 }
 0x1c3   : > { %1399 = vmatprep.mubr.bf16.mxu0 %v8096_v2 }
 0x1ca   : > { %4284 = vmatmul.mubr.msk.bf16.gmra.mxu0 %vm8217_vm11, %v4962_v41  ;;  %v1525_v41 = vpop.permute.xlu1 %1524 }
 0x1cb   : > { %1409 = vmatprep.mubr.bf16.mxu0 %v8096_v2 }
 0x1ce   : > { %v1535_v15 = vpop.permute.xlu1 %1534 }
 0x1d2   : > { %4285 = vmatmul.mubr.msk.bf16.gmra.mxu0 %vm8218_vm6, %v4963_v11 }
 0x1d3   : > { %1419 = vmatprep.mubr.bf16.mxu0 %v8096_v2 }
 0x1da   : > { %4286 = vmatmul.mubr.msk.bf16.gmra.mxu0 %vm8219_vm12, %v4964_v14 }
 0x1db   : > { %1429 = vmatprep.mubr.bf16.mxu0 %v8096_v2 }
 0x1e2   : > { %4287 = vmatmul.mubr.msk.bf16.gmra.mxu0 %vm8220_vm5, %v4965_v42  ;;  %v1530_v42 = vpop.permute.xlu0 %1529 }
 0x1e3   : > { %1439 = vmatprep.mubr.bf16.mxu0 %v8096_v2 }
 0x1ea   : > { %4288 = vmatmul.mubr.msk.bf16.gmra.mxu0 %vm8221_vm10, %v4966_v43 }
 0x1eb   : > { %1449 = vmatprep.mubr.bf16.mxu0 %v8096_v2 }
 0x1f2   : > { %4289 = vmatmul.mubr.msk.bf16.gmra.mxu0 %vm8222_vm0, %v4967_v52 }
 0x1f3   : > { %2126 = vmatprep.mubr.bf16.mxu0 %v8098_v26 }
 0x272   : > { %v1246_v61 = vpop.f32.mrf.mxu0 }
 0x273   : > { %1252 = vst [vmem:[%s6149_s23] sm:$0x1] %v1246_v61 }
 0x274   : > { %v1248_v5 = vpop.f32.mrf.mxu0 }
 0x276   : > { %v1249_v62 = vpop.f32.mrf.mxu0 }
 0x278   : > { %v1250_v7 = vpop.f32.mrf.mxu0 }
 0x27a   : > { %v1381_v8 = vpop.f32.mrf.mxu0 }
 0x27b   : > { %v6160_v62 = vadd.f32 %v1480_v35, %v1381_v8 }
 0x27c   : > { %v1383_v17 = vpop.f32.mrf.mxu0 }
 0x27d   : > { %v6168_v26 = vadd.f32 %v1480_v35, %v1383_v17 }
 0x27e   : > { %v1385_v3 = vpop.f32.mrf.mxu0 }
 0x27f   : > { %v6162_v7 = vadd.f32 %v1485_v18, %v1385_v3 }
 0x280   : > { %v1387_v24 = vpop.f32.mrf.mxu0 }
 0x282   : > { %v1391_v25 = vpop.f32.mrf.mxu0 }
 0x283   : > { %v6152_v52 = vadd.f32 %v1490_v36, %v1391_v25  ;;  %v6170_v25 = vadd.f32 %v1485_v18, %v1387_v24 }
 0x284   : > { %v1393_v27 = vpop.f32.mrf.mxu0 }
 0x285   : > { %v6156_v21 = vadd.f32 %v1490_v36, %v1393_v27 }
 0x286   : > { %v1395_v30 = vpop.f32.mrf.mxu0 }
 0x287   : > { %v6154_v44 = vadd.f32 %v1495_v29, %v1395_v30  ;;  %v1610_v17 = vmin.f32 %v6168_v26, %v6156_v21 }
 0x288   : > { %v1397_v31 = vpop.f32.mrf.mxu0 }
 0x289   : > { %v6158_v61 = vadd.f32 %v1495_v29, %v1397_v31  ;;  %v1589_v31 = vmin.f32 %v6160_v62, %v6152_v52  ;;  %v1590_v8 = vmin.f32 %v6162_v7, %v6154_v44 }
 0x28a   : > { %v1401_v12 = vpop.f32.mrf.mxu0 }
 0x28b   : > { %v6164_v32 = vadd.f32 %v1500_v22, %v1401_v12  ;;  %v1611_v24 = vmin.f32 %v6170_v25, %v6158_v61 }
 0x28c   : > { %v1403_v28 = vpop.f32.mrf.mxu0 }
 0x28d   : > { %v6172_v30 = vadd.f32 %v1500_v22, %v1403_v28  ;;  %v1591_v36 = vmin.f32 %v1589_v31, %v6164_v32  ;;  %v1545_v22 = vpop.permute.xlu1 %1544 }
 0x28e   : > { %v1405_v13 = vpop.f32.mrf.mxu0 }
 0x28f   : > { %v6166_v2 = vadd.f32 %v1505_v38, %v1405_v13  ;;  %v1540_v13 = vpop.permute.xlu0 %1539 }
 0x290   : > { %v1407_v39 = vpop.f32.mrf.mxu0 }
 0x291   : > { %v6174_v4 = vadd.f32 %v1505_v38, %v1407_v39  ;;  %v1592_v39 = vmin.f32 %v1590_v8, %v6166_v2 }
 0x292   : > { %v1411_v63 = vpop.f32.mrf.mxu0 }
 0x293   : > { %v6180_v3 = vadd.f32 %v1510_v10, %v1411_v63  ;;  %v1613_v38 = vmin.f32 %v1611_v24, %v6174_v4 }
 0x294   : > { %v1413_v37 = vpop.f32.mrf.mxu0 }
 0x295   : > { %v6188_v35 = vadd.f32 %v1510_v10, %v1413_v37  ;;  %v1593_v10 = vmin.f32 %v1591_v36, %v6180_v3 }
 0x296   : > { %v1415_v23 = vpop.f32.mrf.mxu0 }
 0x297   : > { %v6182_v12 = vadd.f32 %v1515_v9, %v1415_v23  ;;  %v1612_v23 = vmin.f32 %v1610_v17, %v6172_v30 }
 0x298   : > { %v1417_v45 = vpop.f32.mrf.mxu0 }
 0x299   : > { %v6190_v18 = vadd.f32 %v1515_v9, %v1417_v45  ;;  %v1594_v9 = vmin.f32 %v1592_v39, %v6182_v12 }
 0x29a   : > { %v1421_v19 = vpop.f32.mrf.mxu0 }
 0x29b   : > { %v6194_v29 = vadd.f32 %v1520_v34, %v1421_v19  ;;  %v1615_v8 = vmin.f32 %v1613_v38, %v6190_v18 }
 0x29c   : > { %v1423_v47 = vpop.f32.mrf.mxu0 }
 0x29d   : > { %v6200_v6 = vadd.f32 %v1520_v34, %v1423_v47 }
 0x29e   : > { %v1425_v60 = vpop.f32.mrf.mxu0 }
 0x29f   : > { %v6196_v63 = vadd.f32 %v1525_v41, %v1425_v60  ;;  %v1614_v60 = vmin.f32 %v1612_v23, %v6188_v35 }
 0x2a0   : > { %v1427_v33 = vpop.f32.mrf.mxu0 }
 0x2a1   : > { %v6202_v37 = vadd.f32 %v1525_v41, %v1427_v33  ;;  %v1595_v33 = vmin.f32 %v1593_v10, %v6194_v29  ;;  %v1596_v34 = vmin.f32 %v1594_v9, %v6196_v63 }
 0x2a2   : > { %v1431_v51 = vpop.f32.mrf.mxu0 }
 0x2a3   : > { %8224 = vst [vmem:[#allocation10_spill] sm:$0xff] %v6202_v37  ;;  %v6206_v31 = vadd.f32 %v1530_v42, %v1431_v51  ;;  %v1550_v51 = vpop.permute.xlu0 %1549  ;;  %v1617_v39 = vmin.f32 %v1615_v8, %v6202_v37 }
 0x2a4   : > { %v1433_v11 = vpop.f32.mrf.mxu0 }
 0x2a5   : > { %v6212_v17 = vadd.f32 %v1530_v42, %v1433_v11  ;;  %v1597_v42 = vmin.f32 %v1595_v33, %v6206_v31 }
 0x2a6   : > { %v1435_v14 = vpop.f32.mrf.mxu0 }
 0x2a7   : > { %v6208_v19 = vadd.f32 %v1535_v15, %v1435_v14  ;;  %8225 = vst [vmem:[#allocation11_spill] sm:$0xff] %v6212_v17  ;;  %v1616_v14 = vmin.f32 %v1614_v60, %v6200_v6 }
 0x2a8   : > { %v1437_v43 = vpop.f32.mrf.mxu0 }
 0x2a9   : > { %v6214_v24 = vadd.f32 %v1535_v15, %v1437_v43  ;;  %v1598_v43 = vmin.f32 %v1596_v34, %v6208_v19 }
 0x2aa   : > { %v1441_v5 = vpop.f32.mrf.mxu0 }
 0x2ab   : > { %8226 = vst [vmem:[#allocation12_spill] sm:$0xff] %v6214_v24  ;;  %v6218_v41 = vadd.f32 %v1540_v13, %v1441_v5  ;;  %v1555_v5 = vpop.permute.xlu1 %1554  ;;  %v1619_v10 = vmin.f32 %v1617_v39, %v6214_v24 }
 0x2ac   : > { %v1443_v27 = vpop.f32.mrf.mxu0 }
 0x2ad   : > { %v6224_v23 = vadd.f32 %v1540_v13, %v1443_v27  ;;  %v1599_v60 = vmin.f32 %v1597_v42, %v6218_v41 }
 0x2ae   : > { %v1445_v28 = vpop.f32.mrf.mxu0 }
 0x2af   : > { %v6220_v36 = vadd.f32 %v1545_v22, %v1445_v28  ;;  %8227 = vst [vmem:[#allocation13_spill] sm:$0xff] %v6224_v23  ;;  %v1618_v28 = vmin.f32 %v1616_v14, %v6212_v17 }
 0x2b0   : > { %v1447_v45 = vpop.f32.mrf.mxu0 }
 0x2b1   : > { %v6228_v15 = vadd.f32 %v1545_v22, %v1447_v45  ;;  %v1600_v27 = vmin.f32 %v1598_v43, %v6220_v36  ;;  %v1620_v33 = vmin.f32 %v1618_v28, %v6224_v23 }
 0x2b2   : > { %v1451_v47 = vpop.f32.mrf.mxu0 }
 0x2b3   : > { %8228 = vst [vmem:[#allocation14_spill] sm:$0xff] %v6228_v15  ;;  %v6230_v38 = vadd.f32 %v1550_v51, %v1451_v47  ;;  %v1621_v45 = vmin.f32 %v1619_v10, %v6228_v15 }
 0x2b4   : > { %v1453_v11 = vpop.f32.mrf.mxu0 }
 0x2b5   : > { %v6236_v13 = vadd.f32 %v1550_v51, %v1453_v11  ;;  %v1601_v47 = vmin.f32 %v1599_v60, %v6230_v38 }
 0x2b6   : > { %v1455_v9 = vpop.f32.mrf.mxu0 }
 0x2b7   : > { %v6238_v8 = vadd.f32 %v1555_v5, %v1455_v9  ;;  %v1622_v39 = vmin.f32 %v1620_v33, %v6236_v13 }
 0x2b8   : > { %v1457_v22 = vpop.f32.mrf.mxu0 }
 0x2b9   : > { %v1602_v34 = vmin.f32 %v1600_v27, %v6238_v8  ;;  %v6244_v14 = vadd.f32 %v1555_v5, %v1457_v22 }
 0x2bb   : > { %v1603_v42 = vmin.f32 %v1601_v47, %v1602_v34  ;;  %v1623_v43 = vmin.f32 %v1621_v45, %v6244_v14 }
 0x2bd   : > { %v1604_v51 = vrot.slane %v1603_v42, 4  ;;  %v1624_v11 = vmin.f32 %v1622_v39, %v1623_v43 }
 0x2bf   : > { %v1605_v9 = vmin.f32 %v1603_v42, %v1604_v51  ;;  %v1625_v24 = vrot.slane %v1624_v11, 4 }
 0x2c1   : > { %v1606_v17 = vrot.slane %v1605_v9, 2  ;;  %v1626_v23 = vmin.f32 %v1624_v11, %v1625_v24 }
 0x2c3   : > { %v1607_v28 = vmin.f32 %v1605_v9, %v1606_v17  ;;  %v1627_v15 = vrot.slane %v1626_v23, 2 }
 0x2c5   : > { %v1608_v37 = vrot.slane %v1607_v28, 1  ;;  %v1628_v5 = vmin.f32 %v1626_v23, %v1627_v15 }
 0x2c7   : > { %v1609_v10 = vmin.f32 %v1607_v28, %v1608_v37  ;;  %v8230_v28 = vld [vmem:[#allocation11_spill] sm:$0xff] }
 0x2c9   : > { %vm1631_vm13 = vcmp.eq.f32.partialorder %v6160_v62, %v1609_v10  ;;  %vm1633_vm4 = vcmp.eq.f32.partialorder %v6162_v7, %v1609_v10  ;;  %vm1635_vm8 = vcmp.eq.f32.partialorder %v6152_v52, %v1609_v10  ;;  %vm1637_vm3 = vcmp.eq.f32.partialorder %v6154_v44, %v1609_v10 }
 0x2ca   : > { %v1663_v60 = vsel %vm1631_vm13, %v5587_v40, 128  ;;  %v1665_v27 = vsel %vm1633_vm4, %v5592_v46, 128  ;;  %v1667_v33 = vsel %vm1635_vm8, %v5595_v48, 128  ;;  %v1669_v17 = vsel %vm1637_vm3, %v5598_v49, 128 }
 0x2cb   : > { %vm1639_vm15 = vcmp.eq.f32.partialorder %v6164_v32, %v1609_v10  ;;  %vm1641_vm1 = vcmp.eq.f32.partialorder %v6166_v2, %v1609_v10  ;;  %vm1643_vm2 = vcmp.eq.f32.partialorder %v6180_v3, %v1609_v10  ;;  %vm1645_vm14 = vcmp.eq.f32.partialorder %v6182_v12, %v1609_v10 }
 0x2cc   : > { %vm1647_vm7 = vcmp.eq.f32.partialorder %v6194_v29, %v1609_v10  ;;  %v1629_v52 = vrot.slane %v1628_v5, 1  ;;  %vm1649_vm9 = vcmp.eq.f32.partialorder %v6196_v63, %v1609_v10  ;;  %vm1651_vm11 = vcmp.eq.f32.partialorder %v6206_v31, %v1609_v10 }
 0x2cd   : > { %vm1695_vm6 = vcmp.lt.s32.totalorder %v1663_v60, %v1667_v33  ;;  %vm1697_vm12 = vcmp.lt.s32.totalorder %v1665_v27, %v1669_v17  ;;  %v1671_v44 = vsel %vm1639_vm15, %v5601_v50, 128  ;;  %v1673_v62 = vsel %vm1641_vm1, %v5604_v53, 128 }
 0x2ce   : > { %v1696_v32 = vsel %vm1695_vm6, %v1663_v60, %v1667_v33  ;;  %v1698_v7 = vsel %vm1697_vm12, %v1665_v27, %v1669_v17  ;;  %vm1653_vm5 = vcmp.eq.f32.partialorder %v6208_v19, %v1609_v10  ;;  %vm1655_vm10 = vcmp.eq.f32.partialorder %v6218_v41, %v1609_v10  ;;  %v8231_v60 = vld [vmem:[#allocation12_spill] sm:$0xff]  ;;  %v8232_v17 = vld [vmem:[#allocation13_spill] sm:$0xff] }
 0x2cf   : > { %vm1699_vm0 = vcmp.lt.s32.totalorder %v1696_v32, %v1671_v44  ;;  %vm1701_vm13 = vcmp.lt.s32.totalorder %v1698_v7, %v1673_v62  ;;  %v1675_v2 = vsel %vm1643_vm2, %v5607_v54, 128  ;;  %v1677_v37 = vsel %vm1645_vm14, %v5618_v55, 128 }
 0x2d0   : > { %v1700_v24 = vsel %vm1699_vm0, %v1696_v32, %v1671_v44  ;;  %v1702_v23 = vsel %vm1701_vm13, %v1698_v7, %v1673_v62  ;;  %vm1657_vm4 = vcmp.eq.f32.partialorder %v6220_v36, %v1609_v10  ;;  %vm1659_vm8 = vcmp.eq.f32.partialorder %v6230_v38, %v1609_v10 }
 0x2d1   : > { %vm1703_vm3 = vcmp.lt.s32.totalorder %v1700_v24, %v1675_v2  ;;  %vm1705_vm15 = vcmp.lt.s32.totalorder %v1702_v23, %v1677_v37  ;;  %v1679_v15 = vsel %vm1647_vm7, %v5621_v56, 128  ;;  %v1681_v3 = vsel %vm1649_vm9, %v5624_v57, 128 }
 0x2d2   : > { %v1704_v22 = vsel %vm1703_vm3, %v1700_v24, %v1675_v2  ;;  %v1706_v45 = vsel %vm1705_vm15, %v1702_v23, %v1677_v37  ;;  %vm1661_vm1 = vcmp.eq.f32.partialorder %v6238_v8, %v1609_v10  ;;  %v6282_v12 = vmin.f32 %v1628_v5, %v1629_v52  ;;  %v8233_v2 = vld [vmem:[#allocation14_spill] sm:$0xff] }
 0x2d3   : > { %vm1707_vm2 = vcmp.lt.s32.totalorder %v1704_v22, %v1679_v15  ;;  %vm1709_vm14 = vcmp.lt.s32.totalorder %v1706_v45, %v1681_v3  ;;  %v1683_v47 = vsel %vm1651_vm11, %v5627_v0, 128  ;;  %v1685_v29 = vsel %vm1653_vm5, %v5630_v1, 128 }
 0x2d4   : > { %v1708_v34 = vsel %vm1707_vm2, %v1704_v22, %v1679_v15  ;;  %v1710_v39 = vsel %vm1709_vm14, %v1706_v45, %v1681_v3  ;;  %v1687_v63 = vsel %vm1655_vm10, %v5633_v58, 128  ;;  %v1689_v8 = vsel %vm1657_vm4, %v5636_v59, 128 }
 0x2d5   : > { %vm1711_vm7 = vcmp.lt.s32.totalorder %v1708_v34, %v1683_v47  ;;  %vm1713_vm9 = vcmp.lt.s32.totalorder %v1710_v39, %v1685_v29  ;;  %v1691_v31 = vsel %vm1659_vm8, %v5643_v16, 128  ;;  %v1693_v42 = vsel %vm1661_vm1, %v5646_v20, 128 }
 0x2d6   : > { %v1712_v19 = vsel %vm1711_vm7, %v1708_v34, %v1683_v47  ;;  %v1714_v43 = vsel %vm1713_vm9, %v1710_v39, %v1685_v29  ;;  %vm1632_vm12 = vcmp.eq.f32.partialorder %v6168_v26, %v6282_v12  ;;  %vm1636_vm5 = vcmp.eq.f32.partialorder %v6156_v21, %v6282_v12 }
 0x2d7   : > { %vm1715_vm11 = vcmp.lt.s32.totalorder %v1712_v19, %v1687_v63  ;;  %vm1717_vm6 = vcmp.lt.s32.totalorder %v1714_v43, %v1689_v8  ;;  %vm1634_vm10 = vcmp.eq.f32.partialorder %v6170_v25, %v6282_v12  ;;  %vm1638_vm0 = vcmp.eq.f32.partialorder %v6158_v61, %v6282_v12 }
 0x2d8   : > { %v1716_v41 = vsel %vm1715_vm11, %v1712_v19, %v1687_v63  ;;  %v1718_v36 = vsel %vm1717_vm6, %v1714_v43, %v1689_v8  ;;  %v1664_v11 = vsel %vm1632_vm12, %v5587_v40, 128  ;;  %v1668_v9 = vsel %vm1636_vm5, %v5595_v48, 128 }
 0x2d9   : > { %vm1719_vm13 = vcmp.lt.s32.totalorder %v1716_v41, %v1691_v31  ;;  %vm1721_vm4 = vcmp.lt.s32.totalorder %v1718_v36, %v1693_v42  ;;  %vm1640_vm3 = vcmp.eq.f32.partialorder %v6172_v30, %v6282_v12  ;;  %v1666_v26 = vsel %vm1634_vm10, %v5592_v46, 128  ;;  %v8229_v30 = vld [vmem:[#allocation10_spill] sm:$0xff] }
 0x2da   : > { %v1720_v38 = vsel %vm1719_vm13, %v1716_v41, %v1691_v31  ;;  %v1722_v51 = vsel %vm1721_vm4, %v1718_v36, %v1693_v42  ;;  %v1670_v21 = vsel %vm1638_vm0, %v5598_v49, 128  ;;  %vm1642_vm15 = vcmp.eq.f32.partialorder %v6174_v4, %v6282_v12 }
 0x2db   : > { %vm1723_vm8 = vcmp.lt.s32.totalorder %v1720_v38, %v1722_v51  ;;  %vm1644_vm1 = vcmp.eq.f32.partialorder %v6188_v35, %v6282_v12  ;;  %vm1646_vm2 = vcmp.eq.f32.partialorder %v6190_v18, %v6282_v12  ;;  %vm1648_vm14 = vcmp.eq.f32.partialorder %v6200_v6, %v6282_v12 }
 0x2dc   : > { %v1724_v25 = vsel %vm1723_vm8, %v1720_v38, %v1722_v51  ;;  %vm1650_vm7 = vcmp.eq.f32.partialorder %v8229_v30, %v6282_v12  ;;  %vm1734_vm9 = vcmp.lt.s32.totalorder %v1664_v11, %v1668_v9  ;;  %vm1652_vm11 = vcmp.eq.f32.partialorder %v8230_v28, %v6282_v12 }
 0x2dd   : > { %v1725_v61 = vrot.slane %v1724_v25, 4  ;;  %v1672_v10 = vsel %vm1640_vm3, %v5601_v50, 128  ;;  %v1735_v4 = vsel %vm1734_vm9, %v1664_v11, %v1668_v9  ;;  %vm1736_vm6 = vcmp.lt.s32.totalorder %v1666_v26, %v1670_v21 }
 0x2de   : > { %v1674_v35 = vsel %vm1642_vm15, %v5604_v53, 128  ;;  %v1737_v5 = vsel %vm1736_vm6, %v1666_v26, %v1670_v21  ;;  %vm1738_vm5 = vcmp.lt.s32.totalorder %v1735_v4, %v1672_v10  ;;  %vm1654_vm10 = vcmp.eq.f32.partialorder %v8231_v60, %v6282_v12  ;;  %v5004_v21 = vld [vmem:[%s5260_s12 + $0x28] sm:$0xff] }
 0x2df   : > { %vm1726_vm12 = vcmp.lt.s32.totalorder %v1724_v25, %v1725_v61  ;;  %v1676_v27 = vsel %vm1644_vm1, %v5607_v54, 128  ;;  %v1739_v33 = vsel %vm1738_vm5, %v1735_v4, %v1672_v10  ;;  %vm1740_vm0 = vcmp.lt.s32.totalorder %v1737_v5, %v1674_v35  ;;  %v8243_v4 = vld [vmem:[#allocation8_spill] sm:$0xff] }
 0x2e0   : > { %vm1656_vm13 = vcmp.eq.f32.partialorder %v8232_v17, %v6282_v12  ;;  %v1678_v52 = vsel %vm1646_vm2, %v5618_v55, 128  ;;  %v1741_v44 = vsel %vm1740_vm0, %v1737_v5, %v1674_v35  ;;  %vm1742_vm4 = vcmp.lt.s32.totalorder %v1739_v33, %v1676_v27  ;;  %v8248_v17 = vld [vmem:[#allocation9_spill] sm:$0xff] }
 0x2e1   : > { %v1727_v62 = vsel %vm1726_vm12, %v1724_v25, %v1725_v61  ;;  %v1680_v32 = vsel %vm1648_vm14, %v5621_v56, 128  ;;  %v1743_v7 = vsel %vm1742_vm4, %v1739_v33, %v1676_v27  ;;  %vm1744_vm8 = vcmp.lt.s32.totalorder %v1741_v44, %v1678_v52  ;;  %v6399_v25 = vpop.f32.mrf.mxu1  ;;  %v4972_v61 = vld [vmem:[%s8210_s3 + $0x18] sm:$0xff]  }
 0x2e2   : > { %vm1658_vm3 = vcmp.eq.f32.partialorder %v8233_v2, %v6282_v12  ;;  %v1682_v37 = vsel %vm1650_vm7, %v5624_v57, 128  ;;  %v1745_v18 = vsel %vm1744_vm8, %v1741_v44, %v1678_v52  ;;  %vm1746_vm15 = vcmp.lt.s32.totalorder %v1743_v7, %v1680_v32 }
 0x2e3   : > { %vm1660_vm1 = vcmp.eq.f32.partialorder %v6236_v13, %v6282_v12  ;;  %v1684_v6 = vsel %vm1652_vm11, %v5627_v0, 128  ;;  %v1747_v24 = vsel %vm1746_vm15, %v1743_v7, %v1680_v32  ;;  %vm1748_vm2 = vcmp.lt.s32.totalorder %v1745_v18, %v1682_v37  ;;  %v1059_v10 = vpop.f32.mrf.mxu1  ;;  %v4459_v7 = vld [vmem:[%s5260_s12 + $0xa0] sm:$0xff] }
 0x2e4   : > { %v1728_v23 = vrot.slane %v1727_v62, 2  ;;  %v1686_v15 = vsel %vm1654_vm10, %v5630_v1, 128  ;;  %v1749_v3 = vsel %vm1748_vm2, %v1745_v18, %v1682_v37  ;;  %vm1750_vm14 = vcmp.lt.s32.totalorder %v1747_v24, %v1684_v6  ;;  %v4461_v37 = vld [vmem:[%s5260_s12 + $0xb0] sm:$0xff] }
 0x2e5   : > { %vm1662_vm7 = vcmp.eq.f32.partialorder %v6244_v14, %v6282_v12  ;;  %v1688_v13 = vsel %vm1656_vm13, %v5633_v58, 128  ;;  %v1751_v22 = vsel %vm1750_vm14, %v1747_v24, %v1684_v6  ;;  %vm1752_vm9 = vcmp.lt.s32.totalorder %v1749_v3, %v1686_v15  ;;  %v6455_v33 = vpop.f32.mrf.mxu1  ;;  %v4456_v6 = vld [vmem:[%s5260_s12 + $0x88] sm:$0xff] }
 0x2e6   : > { %v1690_v45 = vsel %vm1658_vm3, %v5636_v59, 128  ;;  %v1753_v47 = vsel %vm1752_vm9, %v1749_v3, %v1686_v15  ;;  %vm1754_vm11 = vcmp.lt.s32.totalorder %v1751_v22, %v1688_v13  ;;  %v1692_v29 = vsel %vm1660_vm1, %v5643_v16, 128 }
 0x2e7   : > { %v1755_v34 = vsel %vm1754_vm11, %v1751_v22, %v1688_v13  ;;  %vm1756_vm6 = vcmp.lt.s32.totalorder %v1753_v47, %v1690_v45  ;;  %vm1729_vm12 = vcmp.lt.s32.totalorder %v1727_v62, %v1728_v23  ;;  %v1694_v14 = vsel %vm1662_vm7, %v5646_v20, 128  ;;  %v1063_v44 = vpop.f32.mrf.mxu1 }
 0x2e8   : > { %v1757_v39 = vsel %vm1756_vm6, %v1753_v47, %v1690_v45  ;;  %vm1758_vm5 = vcmp.lt.s32.totalorder %v1755_v34, %v1692_v29  ;;  %v1730_v31 = vsel %vm1729_vm12, %v1727_v62, %v1728_v23  ;;  %v8236_v26 = vmov 1.0|1.0   ;;  %v4999_v47 = vld [vmem:[%s5260_s12] sm:$0xff]  ;;  %v4973_v23 = vld [vmem:[%s8223_s2 + $0x10] sm:$0xff]  }
 0x2e9   : > { %v1759_v63 = vsel %vm1758_vm5, %v1755_v34, %v1692_v29  ;;  %vm1760_vm10 = vcmp.lt.s32.totalorder %v1757_v39, %v1694_v14  ;;  %v1731_v12 = vrot.slane %v1730_v31, 1  ;;  %v8244_v5 = vmov 0  ;;  %v6488_v32 = vpop.f32.mrf.mxu1 }
 0x2ea   : > { %v1761_v8 = vsel %vm1760_vm10, %v1757_v39, %v1694_v14  ;;  %v8246_v27 = vmov 0  ;;  %v8250_v52 = vmov 0  ;;  %v2163_v15 = vpack.c.bf16 %v4461_v37, %v4459_v7 }
 0x2eb   : > { %vm1762_vm0 = vcmp.lt.s32.totalorder %v1759_v63, %v1761_v8  ;;  %vm1732_vm4 = vcmp.lt.s32.totalorder %v1730_v31, %v1731_v12  ;;  %v6508_v2 = vpop.f32.mrf.mxu1 }
 0x2ec   : > { %v1763_v42 = vsel %vm1762_vm0, %v1759_v63, %v1761_v8  ;;  %v6369_v38 = vsel %vm1732_vm4, %v1730_v31, %v1731_v12  ;;  %v5000_v8 = vld [vmem:[%s5260_s12 + $0x8] sm:$0xff]  ;;  %v4974_v12 = vld [vmem:[%s8223_s2 + $0x18] sm:$0xff]  }
 0x2ed   : > { %v1764_v19 = vrot.slane %v1763_v42, 4  ;;  %vm1801_vm15 = vcmp.eq.s32.totalorder %v5643_v16, %v6369_v38  ;;  %vm1803_vm1 = vcmp.eq.s32.totalorder %v5646_v20, %v6369_v38  ;;  %vm1797_vm5 = vcmp.eq.s32.totalorder %v5633_v58, %v6369_v38  ;;  %v6514_v18 = vpop.f32.mrf.mxu1 }
 0x2ee   : > { %vm6395_vm6 = vmpackc.low %vm1803_vm1, %vm1801_vm15  ;;  %vm1799_vm10 = vcmp.eq.s32.totalorder %v5636_v59, %v6369_v38  ;;  %vm1795_vm15 = vcmp.eq.s32.totalorder %v5630_v1, %v6369_v38 }
 0x2ef   : > { %vm1765_vm13 = vcmp.lt.s32.totalorder %v1763_v42, %v1764_v19  ;;  %vm6427_vm4 = vmpackc.low %vm1799_vm10, %vm1797_vm5  ;;  %vm1789_vm5 = vcmp.eq.s32.totalorder %v5621_v56, %v6369_v38  ;;  %vm1791_vm10 = vcmp.eq.s32.totalorder %v5624_v57, %v6369_v38  ;;  %v6540_v24 = vpop.f32.mrf.mxu1 }
 0x2f0   : > { %v1766_v43 = vsel %vm1765_vm13, %v1763_v42, %v1764_v19 }
 0x2f1   : > { %v1767_v41 = vrot.slane %v1766_v43, 2  ;;  %v1122_v3 = vpop.f32.mrf.mxu1 }
 0x2f2   : > { %v1123_v13 = vadd.f32 %v1122_v3, %v6399_v25 }
 0x2f3   : > { %vm1768_vm8 = vcmp.lt.s32.totalorder %v1766_v43, %v1767_v41  ;;  %v1124_v22 = vpop.f32.mrf.mxu1 }
 0x2f4   : > { %v1769_v36 = vsel %vm1768_vm8, %v1766_v43, %v1767_v41  ;;  %1141 = vst [vmem:[%s6570_s30] sm:$0xff] %v1123_v13  ;;  %v1169_v29 = vsub.f32 %v1123_v13, %v4999_v47  ;;  %v1125_v34 = vadd.f32 %v1124_v22, %v1059_v10  ;;  %v4971_v43 = vld [vmem:[%s8210_s3 + $0x10] sm:$0xff]   ;;  %v5002_v10 = vld [vmem:[%s5260_s12 + $0x18] sm:$0xff]  ;;  %v5003_v13 = vld [vmem:[%s5260_s12 + $0x20] sm:$0xff] }
 0x2f5   : > { %v1770_v51 = vrot.slane %v1769_v36, 1  ;;  %v1126_v39 = vpop.f32.mrf.mxu1 }
 0x2f6   : > { %v1185_v63 = vmul.f32 %v1169_v29, %v1169_v29  ;;  %1142 = vst [vmem:[%s6570_s30 + $0x8] sm:$0xff] %v1125_v34  ;;  %v1170_v31 = vsub.f32 %v1125_v34, %v5000_v8  ;;  %v1127_v42 = vadd.f32 %v1126_v39, %v6455_v33  ;;  %v8270_v34 = vmov 0  }
 0x2f7   : > { %vm1771_vm3 = vcmp.lt.s32.totalorder %v1769_v36, %v1770_v51  ;;  %v1128_v19 = vpop.f32.mrf.mxu1 }
 0x2f8   : > { %v6371_v11 = vsel %vm1771_vm3, %v1769_v36, %v1770_v51  ;;  %vm1793_vm3 = vcmp.eq.s32.totalorder %v5627_v0, %v6369_v38  ;;  %v1186_v41 = vmul.f32 %v1170_v31, %v1170_v31  ;;  %1143 = vst [vmem:[%s6570_s30 + $0x10] sm:$0xff] %v1127_v42  ;;  %v5001_v36 = vld [vmem:[%s5260_s12 + $0x10] sm:$0xff]  ;;  %v1129_v51 = vadd.f32 %v1128_v19, %v1063_v44 }
 0x2f9   : > { %vm1802_vm2 = vcmp.eq.s32.totalorder %v5643_v16, %v6371_v11  ;;  %vm1804_vm14 = vcmp.eq.s32.totalorder %v5646_v20, %v6371_v11  ;;  %vm1798_vm7 = vcmp.eq.s32.totalorder %v5633_v58, %v6371_v11  ;;  %vm1800_vm9 = vcmp.eq.s32.totalorder %v5636_v59, %v6371_v11  ;;  %v5005_v19 = vld [vmem:[%s5260_s12 + $0x30] sm:$0xff] }
 0x2fa   : > { %vm6385_vm11 = vmpackc.low %vm1804_vm14, %vm1802_vm2  ;;  %vm1794_vm0 = vcmp.eq.s32.totalorder %v5627_v0, %v6371_v11  ;;  %vm1796_vm13 = vcmp.eq.s32.totalorder %v5630_v1, %v6371_v11  ;;  %v2034_v30 = vcombine.low %v6369_v38, %v6371_v11  ;;  %vm1790_vm1 = vcmp.eq.s32.totalorder %v5621_v56, %v6371_v11  ;;  %1144 = vst [vmem:[%s6570_s30 + $0x18] sm:$0xff] %v1129_v51 }
 0x2fb   : > { %4349 = vmatprep.subr.msk.bf16.mxu1 %vm6385_vm11, %v8236_v26  ;;  %4424 = vmatprep.subr.msk.bf16.mxu0 %vm6385_vm11, %v8236_v26  ;;  %vm6407_vm12 = vmpackc.low %vm1800_vm9, %vm1798_vm7  ;;  %vm1792_vm2 = vcmp.eq.s32.totalorder %v5624_v57, %v6371_v11  ;;  %vm8249_vm7 = vnez %v8248_v17  ;;  %v1193_v25 = vadd.f32 %v1186_v41, %v1185_v63  ;;  %v5006_v41 = vld [vmem:[%s5260_s12 + $0x38] sm:$0xff] }
 0x2fc   : > { %4351 = vmatpush1.bf16.msk.msra.mxu1 %vm6395_vm6, %v8236_v26  ;;  %4426 = vmatpush1.bf16.xpose.msk.msra.mxu0 %vm6395_vm6, %v8236_v26  ;;  %v2041_v35 = vrot.slane %v2034_v30, %v8243_v4  ;;  %vm6435_vm8 = vmpackc.low %vm1796_vm13, %vm1794_vm0  ;;  %vm1786_vm0 = vcmp.eq.s32.totalorder %v5607_v54, %v6371_v11  ;;  %vm1788_vm13 = vcmp.eq.s32.totalorder %v5618_v55, %v6371_v11 }
 0x2fd   : > { %4353 = vmatprep.subr.msk.bf16.mxu1 %vm6407_vm12, %v8236_v26  ;;  %4428 = vmatprep.subr.msk.bf16.mxu0 %vm6407_vm12, %v8236_v26  ;;  %v8245_v5 = vsel %vm6435_vm8, 4294967295, %v8244_v5  ;;  %vm6451_vm14 = vmpackc.low %vm1795_vm15, %vm1793_vm3 }
 0x2fe   : > { %v2048_v60 = vrot.slane %v2041_v35, %v8243_v4  ;;  %v8247_v27 = vsel %vm6451_vm14, 4294967295, %v8246_v27  ;;  %vm6466_vm9 = vmpackc.low %vm1792_vm2, %vm1790_vm1  ;;  %vm1785_vm1 = vcmp.eq.s32.totalorder %v5607_v54, %v6369_v38  ;;  %vm1787_vm2 = vcmp.eq.s32.totalorder %v5618_v55, %v6369_v38 }
 0x2ff   : > { %v8251_v52 = vsel %vm6466_vm9, 4294967295, %v8250_v52  ;;  %vm6484_vm3 = vmpackc.low %vm1791_vm10, %vm1789_vm5  ;;  %vm1782_vm5 = vcmp.eq.s32.totalorder %v5601_v50, %v6371_v11  ;;  %vm1784_vm10 = vcmp.eq.s32.totalorder %v5604_v53, %v6371_v11  ;;  %v1172_v35 = vsub.f32 %v1129_v51, %v5002_v10  ;;  %v4976_v10 = vld [vmem:[%s8173_s1 + $0x88] sm:$0xff]  }
 0x300   : > { %4355 = vmatpush1.bf16.msk.msra.mxu1 %vm6427_vm4, %v8236_v26  ;;  %4422 = vst.msk [vmem:[%s5878_s22 + $0x1] ss:$4 sm:$0x3] %vm8249_vm7, %v2048_v60  ;;  %vm6493_vm15 = vmpackc.low %vm1788_vm13, %vm1786_vm0 }
 0x301   : > { %4357 = vmatprep.subr.msk.bf16.mxu1 %vm6435_vm8, %v8236_v26  ;;  %vm6510_vm0 = vmpackc.low %vm1787_vm2, %vm1785_vm1  ;;  %vm1781_vm1 = vcmp.eq.s32.totalorder %v5601_v50, %v6369_v38  ;;  %vm1783_vm2 = vcmp.eq.s32.totalorder %v5604_v53, %v6369_v38  ;;  %v1188_v3 = vmul.f32 %v1172_v35, %v1172_v35  ;;  %v6724_v35 = vpop.permute.xlu0 %2361 }
 0x302   : > { %vm6522_vm13 = vmpackc.low %vm1784_vm10, %vm1782_vm5  ;;  %vm1778_vm5 = vcmp.eq.s32.totalorder %v5595_v48, %v6371_v11  ;;  %vm1780_vm10 = vcmp.eq.s32.totalorder %v5598_v49, %v6371_v11 }
 0x303   : > { %vm6543_vm7 = vmpackc.low %vm1783_vm2, %vm1781_vm1  ;;  %vm1774_vm1 = vcmp.eq.s32.totalorder %v5587_v40, %v6371_v11  ;;  %vm1776_vm2 = vcmp.eq.s32.totalorder %v5592_v46, %v6371_v11  ;;  %v1132_v11 = vpop.f32.mrf.mxu1 }
 0x304   : > { %4359 = vmatpush1.bf16.msk.msra.mxu1 %vm6451_vm14, %v8236_v26  ;;  %4430 = vmatpush1.bf16.xpose.msk.msra.mxu0 %vm6427_vm4, %v8236_v26  ;;  %v1133_v60 = vadd.f32 %v1132_v11, %v6488_v32  ;;  %v4455_v11 = vld [vmem:[%s5260_s12 + $0x80] sm:$0xff] }
 0x305   : > { %4361 = vmatprep.subr.msk.bf16.mxu1 %vm6466_vm9, %v8236_v26  ;;  %4432 = vmatprep.subr.msk.bf16.mxu0 %vm6435_vm8, %v8236_v26  ;;  %vm1779_vm8 = vcmp.eq.s32.totalorder %v5598_v49, %v6369_v38  ;;  %v1134_v33 = vpop.f32.mrf.mxu1 }
 0x306   : > { %1145 = vst [vmem:[%s6570_s30 + $0x20] sm:$0xff] %v1133_v60  ;;  %v1173_v22 = vsub.f32 %v1133_v60, %v5003_v13  ;;  %v1135_v47 = vadd.f32 %v1134_v33, %v6508_v2  ;;  %v4977_v60 = vld [vmem:[%s8173_s1 + $0x90] sm:$0xff]   ;;  %v6730_v33 = vpop.permute.xlu0 %2371 }
 0x307   : > { %v1136_v9 = vpop.f32.mrf.mxu1 }
 0x308   : > { %4363 = vmatpush1.bf16.msk.msra.mxu1 %vm6484_vm3, %v8236_v26  ;;  %v1189_v2 = vmul.f32 %v1173_v22, %v1173_v22  ;;  %1146 = vst [vmem:[%s6570_s30 + $0x28] sm:$0xff] %v1135_v47  ;;  %v1174_v29 = vsub.f32 %v1135_v47, %v5004_v21  ;;  %v1137_v39 = vadd.f32 %v1136_v9, %v6514_v18  ;;  %v4979_v22 = vld [vmem:[%s8173_s1 + $0xa0] sm:$0xff]   ;;  %v4980_v9 = vld [vmem:[%s8173_s1 + $0xa8] sm:$0xff]  }
 0x309   : > { %4365 = vmatprep.subr.msk.bf16.mxu1 %vm6493_vm15, %v8236_v26  ;;  %v1138_v63 = vpop.f32.mrf.mxu1 }
 0x30a   : > { %v1190_v31 = vmul.f32 %v1174_v29, %v1174_v29  ;;  %1147 = vst [vmem:[%s6570_s30 + $0x30] sm:$0xff] %v1137_v39 }
 0x30c   : > { %4367 = vmatpush1.bf16.msk.msra.mxu1 %vm6510_vm0, %v8236_v26  ;;  %4434 = vmatpush1.bf16.xpose.msk.msra.mxu0 %vm6451_vm14, %v8236_v26  ;;  %vm6550_vm14 = vmpackc.low %vm1780_vm10, %vm1778_vm5  ;;  %vm1775_vm10 = vcmp.eq.s32.totalorder %v5592_v46, %v6369_v38 }
 0x30d   : > { %4369 = vmatprep.subr.msk.bf16.mxu1 %vm6522_vm13, %v8236_v26  ;;  %4436 = vmatprep.subr.msk.bf16.mxu0 %vm6466_vm9, %v8236_v26  ;;  %vm1777_vm9 = vcmp.eq.s32.totalorder %v5595_v48, %v6369_v38 }
 0x30e   : > { %vm6566_vm5 = vmpackc.low %vm1779_vm8, %vm1777_vm9  ;;  %vm1773_vm9 = vcmp.eq.s32.totalorder %v5587_v40, %v6369_v38  ;;  %v1171_v38 = vsub.f32 %v1127_v42, %v5001_v36  ;;  %v1139_v42 = vadd.f32 %v1138_v63, %v6540_v24  ;;  %v4458_v24 = vld [vmem:[%s5260_s12 + $0x98] sm:$0xff] }
 0x30f   : > { %vm6580_vm8 = vmpackc.low %vm1776_vm2, %vm1774_vm1  ;;  %v2162_v45 = vpack.c.bf16 %v4458_v24, %v4456_v6 }
 0x310   : > { %4371 = vmatpush1.bf16.msk.msra.mxu1 %vm6543_vm7, %v8236_v26  ;;  %vm6597_vm1 = vmpackc.low %vm1775_vm10, %vm1773_vm9  ;;  %v1187_v30 = vmul.f32 %v1171_v38, %v1171_v38  ;;  %1148 = vst [vmem:[%s6570_s30 + $0x38] sm:$0xff] %v1139_v42  ;;  %v1176_v36 = vsub.f32 %v1139_v42, %v5006_v41 }
 0x311   : > { %4373 = vmatprep.subr.msk.bf16.mxu1 %vm6550_vm14, %v8236_v26 }
 0x312   : > { %v1194_v44 = vadd.f32 %v1193_v25, %v1187_v30  ;;  %v1192_v51 = vmul.f32 %v1176_v36, %v1176_v36  ;;  %v4457_v25 = vld [vmem:[%s5260_s12 + $0x90] sm:$0xff]  ;;  %v4975_v30 = vld [vmem:[%s8173_s1 + $0x80] sm:$0xff]  }
 0x313   : > { %v2161_v14 = vpack.c.bf16 %v4457_v25, %v4455_v11 }
 0x314   : > { %4375 = vmatpush1.bf16.msk.msra.mxu1 %vm6566_vm5, %v8236_v26  ;;  %4438 = vmatpush1.bf16.xpose.msk.msra.mxu0 %vm6484_vm3, %v8236_v26  ;;  %v1195_v32 = vadd.f32 %v1194_v44, %v1188_v3  ;;  %v4978_v44 = vld [vmem:[%s8173_s1 + $0x98] sm:$0xff]   ;;  %v6737_v3 = vpop.permute.xlu0 %2381 }
 0x315   : > { %4377 = vmatprep.subr.msk.bf16.mxu1 %vm6580_vm8, %v8236_v26  ;;  %4440 = vmatprep.subr.msk.bf16.mxu0 %vm6493_vm15, %v8236_v26 }
 0x316   : > { %v1196_v8 = vadd.f32 %v1195_v32, %v1189_v2  ;;  %v4981_v2 = vld [vmem:[%s8173_s1 + $0xb0] sm:$0xff]  }
 0x318   : > { %4379 = vmatpush1.bf16.msk.msra.mxu1 %vm6597_vm1, %v8236_v26  ;;  %v1197_v18 = vadd.f32 %v1196_v8, %v1190_v31  ;;  %v6741_v13 = vpop.permute.xlu0 %2391 }
 0x319   : > { %4383 = vmatprep.subr.msk.bf16.mxu1 %vm6385_vm11, %v8236_v26  ;;  %vm8271_vm11 = vnez %v8245_v5 }
 0x31b   : > { %1940 = vmatmul.mubr.bf16.vlgmr.msra.gmra.mxu1 %v4971_v43  ;;  %v1175_v43 = vsub.f32 %v1137_v39, %v5005_v19  ;;  %v4982_v39 = vld [vmem:[%s8173_s1 + $0xb8] sm:$0xff]  }
 0x31c   : > { %4385 = vmatpush1.bf16.msk.msra.mxu1 %vm6395_vm6, %v8236_v26  ;;  %4442 = vmatpush1.bf16.xpose.msk.msra.mxu0 %vm6510_vm0, %v8236_v26  ;;  %vm8272_vm6 = vnez %v8247_v27  ;;  %v4460_v27 = vld [vmem:[%s5260_s12 + $0xa8] sm:$0xff]  ;;  %v6747_v47 = vpop.permute.xlu0 %2401 }
 0x31d   : > { %4387 = vmatprep.subr.msk.bf16.mxu1 %vm6407_vm12, %v8236_v26  ;;  %4444 = vmatprep.subr.msk.bf16.mxu0 %vm6522_vm13, %v8236_v26  ;;  %v1191_v38 = vmul.f32 %v1175_v43, %v1175_v43  ;;  %vm8273_vm12 = vnez %v8251_v52  ;;  %v4462_v52 = vld [vmem:[%s5260_s12 + $0xb8] sm:$0xff] }
 0x31e   : > { %1949 = vmatprep.mubr.bf16.mxu1 %v8270_v34  ;;  %v2164_v62 = vpack.c.bf16 %v4462_v52, %v4460_v27 }
 0x31f   : > { %v1198_v28 = vadd.f32 %v1197_v18, %v1191_v38 }
 0x320   : > { %4389 = vmatpush1.bf16.msk.msra.mxu1 %vm6427_vm4, %v8236_v26  ;;  %vm8274_vm4 = vcmask 261120   ;;  %v6753_v32 = vpop.permute.xlu0 %2411 }
 0x321   : > { %4391 = vmatprep.subr.msk.bf16.mxu1 %vm8271_vm11, %v8236_v26  ;;  %v1199_v5 = vadd.f32 %v1198_v28, %v1192_v51 }
 0x323   : > { %1950 = vmatmul.mubr.bf16.gmra.mxu1 %v4972_v61  ;;  %1200 = vadd.xlane.f32.xlu0 %v1199_v5 }
 0x324   : > { %4393 = vmatpush1.bf16.msk.msra.mxu1 %vm8272_vm6, %v8236_v26  ;;  %4446 = vmatpush1.bf16.xpose.msk.msra.mxu0 %vm6543_vm7, %v8236_v26  ;;  %v6760_v21 = vpop.permute.xlu0 %2421 }
 0x325   : > { %4395 = vmatprep.subr.msk.bf16.mxu1 %vm8273_vm12, %v8236_v26  ;;  %4448 = vmatprep.subr.msk.bf16.mxu0 %vm6550_vm14, %v8236_v26 }
 0x326   : > { %2004 = vmatprep.mubr.bf16.mxu1 %v8270_v34 }
 0x328   : > { %4397 = vmatpush1.bf16.msk.msra.mxu1 %vm6484_vm3, %v8236_v26  ;;  %vm8277_vm3 = vmmov %vm8274_vm4  ;;  %v6764_v29 = vpop.permute.xlu0 %2431 }
 0x329   : > { %4399 = vmatprep.subr.msk.bf16.mxu1 %vm6493_vm15, %v8236_v26  ;;  %vm8278_vm15 = vmmov %vm8277_vm3 }
 0x32c   : > { %4401 = vmatpush1.bf16.msk.msra.mxu1 %vm6510_vm0, %v8236_v26  ;;  %4450 = vmatpush1.bf16.xpose.msk.msra.mxu0 %vm6566_vm5, %v8236_v26  ;;  %vm8279_vm0 = vmmov %vm8277_vm3  ;;  %v6770_v63 = vpop.permute.xlu0 %3243 }
 0x32d   : > { %4403 = vmatprep.subr.msk.bf16.mxu1 %vm6522_vm13, %v8236_v26  ;;  %4452 = vmatprep.subr.msk.bf16.mxu0 %vm6580_vm8, %v8236_v26  ;;  %vm8280_vm13 = vmmov %vm8279_vm0  ;;  %8282 = vst [vmem:[#allocation10_spill] sm:$0xff] %v6770_v63 }
 0x32e   : > { %vm8281_vm2 = vmmov %vm8279_vm0 }
 0x330   : > { %4405 = vmatpush1.bf16.msk.msra.mxu1 %vm6543_vm7, %v8236_v26  ;;  %vm8276_vm7 = vmmov %vm8274_vm4  ;;  %v6773_v61 = vpop.permute.xlu0 %3253 }
 0x331   : > { %4407 = vmatprep.subr.msk.bf16.mxu1 %vm6550_vm14, %v8236_v26  ;;  %vm8275_vm14 = vmmov %vm8274_vm4  ;;  %8283 = vst [vmem:[#allocation11_spill] sm:$0xff] %v6773_v61 }
 0x334   : > { %4409 = vmatpush1.bf16.msk.msra.mxu1 %vm6566_vm5, %v8236_v26  ;;  %4454 = vmatpush1.bf16.xpose.msk.msra.mxu0 %vm6597_vm1, %v8236_v26  ;;  %v6775_v8 = vpop.permute.xlu0 %3263 }
 0x335   : > { %4411 = vmatprep.subr.msk.bf16.mxu1 %vm6580_vm8, %v8236_v26  ;;  %8284 = vst [vmem:[#allocation12_spill] sm:$0xff] %v6775_v8 }
 0x338   : > { %4413 = vmatpush1.bf16.msk.msra.mxu1 %vm6597_vm1, %v8236_v26  ;;  %v6777_v31 = vpop.permute.xlu0 %3273 }
 0x339   : > { %2241 = vmatprep.subr.bf16.mxu1 %v2164_v62  ;;  %8285 = vst [vmem:[#allocation13_spill] sm:$0xff] %v6777_v31 }
 0x33b   : > { %2005 = vmatmul.mubr.bf16.vlgmr.msra.gmra.mxu1 %v4973_v23  ;;  %2127 = vmatmul.mubr.bf16.vlgmr.msra.gmra.mxu0 %v8236_v26 }
 0x33c   : > { %2242 = vmatpush1.bf16.msra.mxu1 %v2163_v15  ;;  %2014 = vmatprep.mubr.bf16.mxu1 %v8270_v34  ;;  %v6779_v42 = vpop.permute.xlu0 %3283 }
 0x33d   : > { %2243 = vmatprep.subr.bf16.mxu1 %v2162_v45  ;;  %2821 = vmatprep.mubr.bf16.mxu0 %v8270_v34  ;;  %8286 = vst [vmem:[#allocation14_spill] sm:$0xff] %v6779_v42 }
 0x340   : > { %2244 = vmatpush1.bf16.msra.mxu1 %v2161_v14  ;;  %v6781_v19 = vpop.permute.xlu0 %3293  ;;  %v5007_v14 = vld [vmem:[%s5260_s12 + $0x40] sm:$0xff] }
 0x341   : > { %8287 = vst [vmem:[#allocation15_spill] sm:$0xff] %v6781_v19 }
 0x343   : > { %2015 = vmatmul.mubr.bf16.gmra.mxu1 %v4974_v12 }
 0x344   : > { %2261 = vmatprep.mubr.bf16.mxu1 %v8270_v34  ;;  %v6783_v43 = vpop.permute.xlu0 %3303 }
 0x345   : > { %8288 = vst [vmem:[#allocation16_spill] sm:$0xff] %v6783_v43 }
 0x348   : > { %v6785_v18 = vpop.permute.xlu0 %3313 }
 0x349   : > { %8289 = vst [vmem:[#allocation17_spill] sm:$0xff] %v6785_v18 }
 0x34b   : > { %4487 = vmatmul.mubr.msk.bf16.vlgmr.msra.gmra.mxu1 %vm8274_vm4, %v4975_v30 }
 0x34c   : > { %2271 = vmatprep.mubr.bf16.mxu1 %v8270_v34 }
 0x353   : > { %4488 = vmatmul.mubr.msk.bf16.gmra.mxu1 %vm8275_vm14, %v4976_v10 }
 0x354   : > { %2281 = vmatprep.mubr.bf16.mxu1 %v8270_v34 }
 0x35b   : > { %4489 = vmatmul.mubr.msk.bf16.gmra.mxu1 %vm8276_vm7, %v4977_v60  ;;  %v5008_v60 = vld [vmem:[%s5260_s12 + $0x48] sm:$0xff] }
 0x35c   : > { %2291 = vmatprep.mubr.bf16.mxu1 %v8270_v34 }
 0x363   : > { %4490 = vmatmul.mubr.msk.bf16.gmra.mxu1 %vm8277_vm3, %v4978_v44 }
 0x364   : > { %2301 = vmatprep.mubr.bf16.mxu1 %v8270_v34 }
 0x36b   : > { %4491 = vmatmul.mubr.msk.bf16.gmra.mxu1 %vm8278_vm15, %v4979_v22 }
 0x36c   : > { %2311 = vmatprep.mubr.bf16.mxu1 %v8270_v34 }
 0x373   : > { %4492 = vmatmul.mubr.msk.bf16.gmra.mxu1 %vm8279_vm0, %v4980_v9 }
 0x374   : > { %2321 = vmatprep.mubr.bf16.mxu1 %v8270_v34 }
 0x37b   : > { %4493 = vmatmul.mubr.msk.bf16.gmra.mxu1 %vm8280_vm13, %v4981_v2 }
 0x37c   : > { %2331 = vmatprep.mubr.bf16.mxu1 %v8270_v34 }
 0x383   : > { %4494 = vmatmul.mubr.msk.bf16.gmra.mxu1 %vm8281_vm2, %v4982_v39 }
 0x384   : > { %3008 = vmatprep.mubr.bf16.mxu1 %v8236_v26 }
 0x3ac   : > { %v1201_v41 = vpop.xlane.xlu0 %1200 }
 0x3ad   : > { %v1202_v36 = vrot.slane %v1201_v41, 4 }
 0x3af   : > { %v1203_v38 = vadd.f32 %v1202_v36, %v1201_v41  ;;  %v5009_v41 = vld [vmem:[%s5260_s12 + $0x50] sm:$0xff] }
 0x3b1   : > { %v1204_v51 = vrot.slane %v1203_v38, 2 }
 0x3b3   : > { %v1205_v28 = vadd.f32 %v1204_v51, %v1203_v38 }
 0x3b5   : > { %v1206_v5 = vrot.slane %v1205_v28, 1 }
 0x3b7   : > { %v1207_v27 = vadd.f32 %v1206_v5, %v1205_v28 }
 0x3b9   : > { %4876 = vpush %v1207_v27  ;;  %v5010_v27 = vld [vmem:[%s5260_s12 + $0x58] sm:$0xff] }
 0x3db   : > { %v1941_v52 = vpop.f32.mrf.mxu1 }
 0x3dd   : > { %v1943_v62 = vpop.f32.mrf.mxu1 }
 0x3df   : > { %v1945_v7 = vpop.f32.mrf.mxu1 }
 0x3e1   : > { %v1947_v37 = vpop.f32.mrf.mxu1 }
 0x3e3   : > { %v1951_v6 = vpop.f32.mrf.mxu1 }
 0x3e5   : > { %v1953_v24 = vpop.f32.mrf.mxu1 }
 0x3e7   : > { %v1955_v23 = vpop.f32.mrf.mxu1 }
 0x3e9   : > { %v1957_v15 = vpop.f32.mrf.mxu1 }
 0x3fb   : > { %v2006_v45 = vpop.f32.mrf.mxu1 }
 0x3fc   : > { %v2007_v11 = vadd.f32 %v2006_v45, %v1941_v52 }
 0x3fd   : > { %v2008_v25 = vpop.f32.mrf.mxu1 }
 0x3fe   : > { %4414 = vst [vmem:[%s6570_s30 + $0x40] sm:$0xff] %v2007_v11  ;;  %v2051_v12 = vsub.f32 %v2007_v11, %v5007_v14  ;;  %v2009_v30 = vadd.f32 %v2008_v25, %v1943_v62  ;;  %v5011_v25 = vld [vmem:[%s5260_s12 + $0x60] sm:$0xff] }
 0x3ff   : > { %v2010_v10 = vpop.f32.mrf.mxu1 }
 0x400   : > { %4415 = vst [vmem:[%s6570_s30 + $0x48] sm:$0xff] %v2009_v30  ;;  %v2052_v44 = vsub.f32 %v2009_v30, %v5008_v60  ;;  %v2011_v22 = vadd.f32 %v2010_v10, %v1945_v7  ;;  %v2067_v2 = vmul.f32 %v2051_v12, %v2051_v12  ;;  %v5012_v60 = vld [vmem:[%s5260_s12 + $0x68] sm:$0xff] }
 0x401   : > { %v2012_v9 = vpop.f32.mrf.mxu1 }
 0x402   : > { %v2068_v39 = vmul.f32 %v2052_v44, %v2052_v44  ;;  %4416 = vst [vmem:[%s6570_s30 + $0x50] sm:$0xff] %v2011_v22  ;;  %v2053_v36 = vsub.f32 %v2011_v22, %v5009_v41  ;;  %v2013_v38 = vadd.f32 %v2012_v9, %v1947_v37 }
 0x403   : > { %v2016_v51 = vpop.f32.mrf.mxu1 }
 0x404   : > { %v2075_v28 = vadd.f32 %v2068_v39, %v2067_v2  ;;  %v2069_v5 = vmul.f32 %v2053_v36, %v2053_v36  ;;  %4417 = vst [vmem:[%s6570_s30 + $0x58] sm:$0xff] %v2013_v38  ;;  %v2054_v52 = vsub.f32 %v2013_v38, %v5010_v27  ;;  %v2017_v62 = vadd.f32 %v2016_v51, %v1951_v6  ;;  %v5013_v39 = vld [vmem:[%s5260_s12 + $0x70] sm:$0xff] }
 0x405   : > { %v2018_v45 = vpop.f32.mrf.mxu1 }
 0x406   : > { %v2076_v7 = vadd.f32 %v2075_v28, %v2069_v5  ;;  %v2070_v11 = vmul.f32 %v2054_v52, %v2054_v52  ;;  %4418 = vst [vmem:[%s6570_s30 + $0x60] sm:$0xff] %v2017_v62  ;;  %v2055_v14 = vsub.f32 %v2017_v62, %v5011_v25  ;;  %v2019_v12 = vadd.f32 %v2018_v45, %v1953_v24  ;;  %v5014_v24 = vld [vmem:[%s5260_s12 + $0x78] sm:$0xff] }
 0x407   : > { %v2020_v30 = vpop.f32.mrf.mxu1 }
 0x408   : > { %v2077_v37 = vadd.f32 %v2076_v7, %v2070_v11  ;;  %v2071_v10 = vmul.f32 %v2055_v14, %v2055_v14  ;;  %4419 = vst [vmem:[%s6570_s30 + $0x68] sm:$0xff] %v2019_v12  ;;  %v2056_v44 = vsub.f32 %v2019_v12, %v5012_v60  ;;  %v2021_v22 = vadd.f32 %v2020_v30, %v1955_v23 }
 0x409   : > { %v2022_v9 = vpop.f32.mrf.mxu1 }
 0x40a   : > { %v2078_v6 = vadd.f32 %v2077_v37, %v2071_v10  ;;  %v2072_v2 = vmul.f32 %v2056_v44, %v2056_v44  ;;  %4420 = vst [vmem:[%s6570_s30 + $0x70] sm:$0xff] %v2021_v22  ;;  %v2057_v41 = vsub.f32 %v2021_v22, %v5013_v39  ;;  %v2023_v36 = vadd.f32 %v2022_v9, %v1957_v15  ;;  %v2367_v37 = vpop.permute.xlu1 %2366 }
 0x40b   : > { %v2263_v38 = vpop.f32.mrf.mxu1 }
 0x40c   : > { %v2079_v51 = vadd.f32 %v2078_v6, %v2072_v2  ;;  %v2073_v28 = vmul.f32 %v2057_v41, %v2057_v41  ;;  %4421 = vst [vmem:[%s6570_s30 + $0x78] sm:$0xff] %v2023_v36  ;;  %v2058_v5 = vsub.f32 %v2023_v36, %v5014_v24  ;;  %v6814_v61 = vadd.f32 %v6724_v35, %v2263_v38 }
 0x40d   : > { %v2265_v27 = vpop.f32.mrf.mxu1 }
 0x40e   : > { %v2074_v52 = vmul.f32 %v2058_v5, %v2058_v5  ;;  %v2080_v62 = vadd.f32 %v2079_v51, %v2073_v28  ;;  %v2377_v44 = vpop.permute.xlu1 %2376 }
 0x40f   : > { %v2267_v45 = vpop.f32.mrf.mxu1 }
 0x410   : > { %v2081_v7 = vadd.f32 %v2080_v62, %v2074_v52  ;;  %v6816_v34 = vadd.f32 %v2367_v37, %v2267_v45 }
 0x411   : > { %v2269_v11 = vpop.f32.mrf.mxu1 }
 0x412   : > { %2082 = vadd.xlane.f32.xlu1 %v2081_v7  ;;  %v2387_v2 = vpop.permute.xlu1 %2386 }
 0x413   : > { %v2273_v23 = vpop.f32.mrf.mxu1 }
 0x414   : > { %v6804_v43 = vadd.f32 %v6730_v33, %v2273_v23  ;;  %v6824_v23 = vadd.f32 %v6724_v35, %v2265_v27 }
 0x415   : > { %v2275_v25 = vpop.f32.mrf.mxu1 }
 0x416   : > { %v2397_v51 = vpop.permute.xlu1 %2396  ;;  %v6809_v31 = vadd.f32 %v6730_v33, %v2275_v25  ;;  %v2471_v38 = vmin.f32 %v6814_v61, %v6804_v43 }
 0x417   : > { %v2277_v14 = vpop.f32.mrf.mxu1 }
 0x418   : > { %v6806_v19 = vadd.f32 %v2377_v44, %v2277_v14  ;;  %v6826_v14 = vadd.f32 %v2367_v37, %v2269_v11  ;;  %v2492_v35 = vmin.f32 %v6824_v23, %v6809_v31 }
 0x419   : > { %v2279_v12 = vpop.f32.mrf.mxu1 }
 0x41a   : > { %v2407_v52 = vpop.permute.xlu1 %2406  ;;  %v6811_v8 = vadd.f32 %v2377_v44, %v2279_v12  ;;  %v2472_v45 = vmin.f32 %v6816_v34, %v6806_v19 }
 0x41b   : > { %v2283_v30 = vpop.f32.mrf.mxu1 }
 0x41c   : > { %v6819_v17 = vadd.f32 %v6737_v3, %v2283_v30 }
 0x41d   : > { %v2285_v15 = vpop.f32.mrf.mxu1 }
 0x41e   : > { %v2417_v42 = vpop.permute.xlu1 %2416  ;;  %v6829_v33 = vadd.f32 %v6737_v3, %v2285_v15  ;;  %v2493_v3 = vmin.f32 %v6826_v14, %v6811_v8  ;;  %v2473_v15 = vmin.f32 %v2471_v38, %v6819_v17 }
 0x41f   : > { %v2287_v10 = vpop.f32.mrf.mxu1 }
 0x420   : > { %v6821_v4 = vadd.f32 %v2387_v2, %v2287_v10 }
 0x421   : > { %v2289_v60 = vpop.f32.mrf.mxu1 }
 0x422   : > { %v6831_v25 = vadd.f32 %v2387_v2, %v2289_v60  ;;  %v2474_v60 = vmin.f32 %v2472_v45, %v6821_v4  ;;  %v2494_v2 = vmin.f32 %v2492_v35, %v6829_v33 }
 0x423   : > { %v2293_v22 = vpop.f32.mrf.mxu1 }
 0x424   : > { %v6838_v30 = vadd.f32 %v6741_v13, %v2293_v22  ;;  %v2495_v26 = vmin.f32 %v2493_v3, %v6831_v25 }
 0x425   : > { %v2295_v9 = vpop.f32.mrf.mxu1 }
 0x426   : > { %v6847_v27 = vadd.f32 %v6741_v13, %v2295_v9 }
 0x427   : > { %v2297_v6 = vpop.f32.mrf.mxu1 }
 0x428   : > { %v6840_v10 = vadd.f32 %v2397_v51, %v2297_v6  ;;  %v2427_v6 = vpop.permute.xlu1 %2426  ;;  %v2496_v45 = vmin.f32 %v2494_v2, %v6847_v27 }
 0x429   : > { %v2299_v39 = vpop.f32.mrf.mxu1 }
 0x42a   : > { %v6849_v11 = vadd.f32 %v2397_v51, %v2299_v39  ;;  %v2475_v51 = vmin.f32 %v2473_v15, %v6838_v30  ;;  %v2476_v38 = vmin.f32 %v2474_v60, %v6840_v10 }
 0x42b   : > { %v2303_v41 = vpop.f32.mrf.mxu1 }
 0x42c   : > { %v6854_v44 = vadd.f32 %v6747_v47, %v2303_v41  ;;  %v2497_v35 = vmin.f32 %v2495_v26, %v6849_v11 }
 0x42d   : > { %v2305_v36 = vpop.f32.mrf.mxu1 }
 0x42e   : > { %v6861_v13 = vadd.f32 %v6747_v47, %v2305_v36 }
 0x42f   : > { %v2307_v28 = vpop.f32.mrf.mxu1 }
 0x430   : > { %v6856_v22 = vadd.f32 %v2407_v52, %v2307_v28 }
 0x431   : > { %v2309_v24 = vpop.f32.mrf.mxu1 }
 0x432   : > { %v6863_v9 = vadd.f32 %v2407_v52, %v2309_v24  ;;  %v2477_v24 = vmin.f32 %v2475_v51, %v6854_v44  ;;  %v2478_v52 = vmin.f32 %v2476_v38, %v6856_v22 }
 0x433   : > { %v2313_v5 = vpop.f32.mrf.mxu1 }
 0x434   : > { %8290 = vst [vmem:[#allocation18_spill] sm:$0xff] %v6863_v9  ;;  %v6868_v41 = vadd.f32 %v6753_v32, %v2313_v5  ;;  %v2499_v60 = vmin.f32 %v2497_v35, %v6863_v9 }
 0x435   : > { %v2315_v62 = vpop.f32.mrf.mxu1 }
 0x436   : > { %v6875_v3 = vadd.f32 %v6753_v32, %v2315_v62 }
 0x437   : > { %v2317_v7 = vpop.f32.mrf.mxu1 }
 0x438   : > { %v6870_v28 = vadd.f32 %v2417_v42, %v2317_v7  ;;  %8291 = vst [vmem:[#allocation19_spill] sm:$0xff] %v6875_v3  ;;  %v2498_v7 = vmin.f32 %v2496_v45, %v6861_v13 }
 0x439   : > { %v2319_v18 = vpop.f32.mrf.mxu1 }
 0x43a   : > { %v6877_v47 = vadd.f32 %v2417_v42, %v2319_v18  ;;  %v2479_v42 = vmin.f32 %v2477_v24, %v6868_v41  ;;  %v2480_v18 = vmin.f32 %v2478_v52, %v6870_v28 }
 0x43b   : > { %v2323_v63 = vpop.f32.mrf.mxu1 }
 0x43c   : > { %8292 = vst [vmem:[#allocation20_spill] sm:$0xff] %v6877_v47  ;;  %v6882_v15 = vadd.f32 %v6760_v21, %v2323_v63  ;;  %v2437_v63 = vpop.permute.xlu1 %2436  ;;  %v2501_v51 = vmin.f32 %v2499_v60, %v6877_v47 }
 0x43d   : > { %v2325_v12 = vpop.f32.mrf.mxu1 }
 0x43e   : > { %v6889_v26 = vadd.f32 %v6760_v21, %v2325_v12  ;;  %v2481_v45 = vmin.f32 %v2479_v42, %v6882_v15 }
 0x43f   : > { %v2327_v37 = vpop.f32.mrf.mxu1 }
 0x440   : > { %v6884_v5 = vadd.f32 %v2427_v6, %v2327_v37  ;;  %8293 = vst [vmem:[#allocation21_spill] sm:$0xff] %v6889_v26  ;;  %v2500_v37 = vmin.f32 %v2498_v7, %v6875_v3 }
 0x441   : > { %v2329_v39 = vpop.f32.mrf.mxu1 }
 0x442   : > { %v6893_v62 = vadd.f32 %v2427_v6, %v2329_v39  ;;  %v2482_v21 = vmin.f32 %v2480_v18, %v6884_v5  ;;  %v2502_v6 = vmin.f32 %v2500_v37, %v6889_v26 }
 0x443   : > { %v2333_v36 = vpop.f32.mrf.mxu1 }
 0x444   : > { %8294 = vst [vmem:[#allocation22_spill] sm:$0xff] %v6893_v62  ;;  %v6896_v2 = vadd.f32 %v6764_v29, %v2333_v36  ;;  %v2503_v36 = vmin.f32 %v2501_v51, %v6893_v62 }
 0x445   : > { %v2335_v32 = vpop.f32.mrf.mxu1 }
 0x446   : > { %v6903_v12 = vadd.f32 %v6764_v29, %v2335_v32  ;;  %v2483_v24 = vmin.f32 %v2481_v45, %v6896_v2 }
 0x447   : > { %v2337_v38 = vpop.f32.mrf.mxu1 }
 0x448   : > { %v6905_v35 = vadd.f32 %v2437_v63, %v2337_v38  ;;  %v2504_v60 = vmin.f32 %v2502_v6, %v6903_v12 }
 0x449   : > { %v2339_v39 = vpop.f32.mrf.mxu1 }
 0x44a   : > { %v2484_v52 = vmin.f32 %v2482_v21, %v6905_v35  ;;  %v6911_v7 = vadd.f32 %v2437_v63, %v2339_v39 }
 0x44c   : > { %v2485_v42 = vmin.f32 %v2483_v24, %v2484_v52  ;;  %v2505_v18 = vmin.f32 %v2503_v36, %v6911_v7 }
 0x44e   : > { %v2486_v29 = vrot.slane %v2485_v42, 4  ;;  %v2506_v32 = vmin.f32 %v2504_v60, %v2505_v18 }
 0x450   : > { %v2487_v38 = vmin.f32 %v2485_v42, %v2486_v29  ;;  %v2507_v47 = vrot.slane %v2506_v32, 4 }
 0x452   : > { %v2488_v3 = vrot.slane %v2487_v38, 2  ;;  %v2508_v26 = vmin.f32 %v2506_v32, %v2507_v47 }
 0x454   : > { %v2489_v37 = vmin.f32 %v2487_v38, %v2488_v3  ;;  %v2509_v62 = vrot.slane %v2508_v26, 2 }
 0x456   : > { %v2490_v9 = vrot.slane %v2489_v37, 1  ;;  %v2510_v63 = vmin.f32 %v2508_v26, %v2509_v62 }
 0x458   : > { %v2491_v51 = vmin.f32 %v2489_v37, %v2490_v9 }
 0x45a   : > { %vm2513_vm5 = vcmp.eq.f32.partialorder %v6814_v61, %v2491_v51  ;;  %vm2515_vm8 = vcmp.eq.f32.partialorder %v6816_v34, %v2491_v51  ;;  %vm2517_vm9 = vcmp.eq.f32.partialorder %v6804_v43, %v2491_v51  ;;  %vm2519_vm10 = vcmp.eq.f32.partialorder %v6806_v19, %v2491_v51 }
 0x45b   : > { %v2545_v45 = vsel %vm2513_vm5, %v5587_v40, 128  ;;  %v2547_v21 = vsel %vm2515_vm8, %v5592_v46, 128  ;;  %v2549_v6 = vsel %vm2517_vm9, %v5595_v48, 128  ;;  %v2551_v3 = vsel %vm2519_vm10, %v5598_v49, 128 }
 0x45c   : > { %vm2521_vm1 = vcmp.eq.f32.partialorder %v6819_v17, %v2491_v51  ;;  %vm2523_vm11 = vcmp.eq.f32.partialorder %v6821_v4, %v2491_v51  ;;  %vm2525_vm6 = vcmp.eq.f32.partialorder %v6838_v30, %v2491_v51  ;;  %vm2527_vm12 = vcmp.eq.f32.partialorder %v6840_v10, %v2491_v51 }
 0x45d   : > { %vm2529_vm4 = vcmp.eq.f32.partialorder %v6854_v44, %v2491_v51  ;;  %v2511_v34 = vrot.slane %v2510_v63, 1  ;;  %vm2531_vm14 = vcmp.eq.f32.partialorder %v6856_v22, %v2491_v51  ;;  %vm2533_vm7 = vcmp.eq.f32.partialorder %v6868_v41, %v2491_v51 }
 0x45e   : > { %vm2577_vm3 = vcmp.lt.s32.totalorder %v2545_v45, %v2549_v6  ;;  %vm2579_vm15 = vcmp.lt.s32.totalorder %v2547_v21, %v2551_v3  ;;  %v2553_v61 = vsel %vm2521_vm1, %v5601_v50, 128  ;;  %v2555_v19 = vsel %vm2523_vm11, %v5604_v53, 128 }
 0x45f   : > { %v2578_v17 = vsel %vm2577_vm3, %v2545_v45, %v2549_v6  ;;  %v2580_v43 = vsel %vm2579_vm15, %v2547_v21, %v2551_v3  ;;  %vm2535_vm0 = vcmp.eq.f32.partialorder %v6870_v28, %v2491_v51  ;;  %vm2537_vm13 = vcmp.eq.f32.partialorder %v6882_v15, %v2491_v51  ;;  %v6971_v15 = vpop.permute.xlu1 %3248  ;;  %v8297_v3 = vld [vmem:[#allocation20_spill] sm:$0xff] }
 0x460   : > { %vm2581_vm2 = vcmp.lt.s32.totalorder %v2578_v17, %v2553_v61  ;;  %vm2583_vm5 = vcmp.lt.s32.totalorder %v2580_v43, %v2555_v19  ;;  %v2557_v4 = vsel %vm2525_vm6, %v5607_v54, 128  ;;  %v2559_v9 = vsel %vm2527_vm12, %v5618_v55, 128 }
 0x461   : > { %v2582_v47 = vsel %vm2581_vm2, %v2578_v17, %v2553_v61  ;;  %v2584_v26 = vsel %vm2583_vm5, %v2580_v43, %v2555_v19  ;;  %vm2539_vm8 = vcmp.eq.f32.partialorder %v6884_v5, %v2491_v51  ;;  %vm2541_vm9 = vcmp.eq.f32.partialorder %v6896_v2, %v2491_v51  ;;  %v8298_v19 = vld [vmem:[#allocation21_spill] sm:$0xff] }
 0x462   : > { %vm2585_vm10 = vcmp.lt.s32.totalorder %v2582_v47, %v2557_v4  ;;  %vm2587_vm1 = vcmp.lt.s32.totalorder %v2584_v26, %v2559_v9  ;;  %v2561_v62 = vsel %vm2529_vm4, %v5621_v56, 128  ;;  %v2563_v30 = vsel %vm2531_vm14, %v5624_v57, 128 }
 0x463   : > { %v2586_v39 = vsel %vm2585_vm10, %v2582_v47, %v2557_v4  ;;  %v2588_v36 = vsel %vm2587_vm1, %v2584_v26, %v2559_v9  ;;  %vm2543_vm11 = vcmp.eq.f32.partialorder %v6905_v35, %v2491_v51  ;;  %v6949_v10 = vmin.f32 %v2510_v63, %v2511_v34  ;;  %v6993_v51 = vpop.permute.xlu1 %3258  ;;  %v8296_v63 = vld [vmem:[#allocation19_spill] sm:$0xff]  ;;  %v8299_v47 = vld [vmem:[#allocation22_spill] sm:$0xff] }
 0x464   : > { %vm2589_vm6 = vcmp.lt.s32.totalorder %v2586_v39, %v2561_v62  ;;  %vm2591_vm12 = vcmp.lt.s32.totalorder %v2588_v36, %v2563_v30  ;;  %v2565_v24 = vsel %vm2533_vm7, %v5627_v0, 128  ;;  %v2567_v44 = vsel %vm2535_vm0, %v5630_v1, 128 }
 0x465   : > { %v2590_v52 = vsel %vm2589_vm6, %v2586_v39, %v2561_v62  ;;  %v2592_v60 = vsel %vm2591_vm12, %v2588_v36, %v2563_v30  ;;  %v2569_v22 = vsel %vm2537_vm13, %v5633_v58, 128  ;;  %v2571_v35 = vsel %vm2539_vm8, %v5636_v59, 128 }
 0x466   : > { %vm2593_vm4 = vcmp.lt.s32.totalorder %v2590_v52, %v2565_v24  ;;  %vm2595_vm14 = vcmp.lt.s32.totalorder %v2592_v60, %v2567_v44  ;;  %v2573_v41 = vsel %vm2541_vm9, %v5643_v16, 128  ;;  %v2575_v42 = vsel %vm2543_vm11, %v5646_v20, 128 }
 0x467   : > { %v2594_v28 = vsel %vm2593_vm4, %v2590_v52, %v2565_v24  ;;  %v2596_v18 = vsel %vm2595_vm14, %v2592_v60, %v2567_v44  ;;  %vm2514_vm15 = vcmp.eq.f32.partialorder %v6824_v23, %v6949_v10  ;;  %vm2518_vm0 = vcmp.eq.f32.partialorder %v6809_v31, %v6949_v10  ;;  %v7021_v62 = vpop.permute.xlu1 %3268 }
 0x468   : > { %vm2597_vm7 = vcmp.lt.s32.totalorder %v2594_v28, %v2569_v22  ;;  %vm2599_vm3 = vcmp.lt.s32.totalorder %v2596_v18, %v2571_v35  ;;  %vm2516_vm13 = vcmp.eq.f32.partialorder %v6826_v14, %v6949_v10  ;;  %vm2520_vm2 = vcmp.eq.f32.partialorder %v6811_v8, %v6949_v10 }
 0x469   : > { %v2598_v5 = vsel %vm2597_vm7, %v2594_v28, %v2569_v22  ;;  %v2600_v29 = vsel %vm2599_vm3, %v2596_v18, %v2571_v35  ;;  %v2546_v38 = vsel %vm2514_vm15, %v5587_v40, 128  ;;  %v2550_v23 = vsel %vm2518_vm0, %v5595_v48, 128 }
 0x46a   : > { %vm2601_vm5 = vcmp.lt.s32.totalorder %v2598_v5, %v2573_v41  ;;  %vm2603_vm8 = vcmp.lt.s32.totalorder %v2600_v29, %v2575_v42  ;;  %vm2522_vm10 = vcmp.eq.f32.partialorder %v6829_v33, %v6949_v10  ;;  %v2548_v31 = vsel %vm2516_vm13, %v5592_v46, 128  ;;  %v8295_v33 = vld [vmem:[#allocation18_spill] sm:$0xff] }
 0x46b   : > { %v2602_v2 = vsel %vm2601_vm5, %v2598_v5, %v2573_v41  ;;  %v2604_v32 = vsel %vm2603_vm8, %v2600_v29, %v2575_v42  ;;  %v2552_v37 = vsel %vm2520_vm2, %v5598_v49, 128  ;;  %vm2524_vm1 = vcmp.eq.f32.partialorder %v6831_v25, %v6949_v10  ;;  %v7045_v42 = vpop.permute.xlu1 %3278 }
 0x46c   : > { %vm2605_vm9 = vcmp.lt.s32.totalorder %v2602_v2, %v2604_v32  ;;  %vm2526_vm11 = vcmp.eq.f32.partialorder %v6847_v27, %v6949_v10  ;;  %vm2528_vm6 = vcmp.eq.f32.partialorder %v6849_v11, %v6949_v10  ;;  %vm2530_vm12 = vcmp.eq.f32.partialorder %v6861_v13, %v6949_v10 }
 0x46d   : > { %v2606_v14 = vsel %vm2605_vm9, %v2602_v2, %v2604_v32  ;;  %vm2532_vm4 = vcmp.eq.f32.partialorder %v8295_v33, %v6949_v10  ;;  %vm2616_vm14 = vcmp.lt.s32.totalorder %v2546_v38, %v2550_v23  ;;  %vm2534_vm7 = vcmp.eq.f32.partialorder %v8296_v63, %v6949_v10  ;;  %v4666_v63 = vld [vmem:[%s5260_s12 + $0xf0] sm:$0xff] }
 0x46e   : > { %v2607_v8 = vrot.slane %v2606_v14, 4  ;;  %v2554_v25 = vsel %vm2522_vm10, %v5601_v50, 128  ;;  %v2617_v45 = vsel %vm2616_vm14, %v2546_v38, %v2550_v23  ;;  %vm2618_vm3 = vcmp.lt.s32.totalorder %v2548_v31, %v2552_v37 }
 0x46f   : > { %v2556_v21 = vsel %vm2524_vm1, %v5604_v53, 128  ;;  %v2619_v6 = vsel %vm2618_vm3, %v2548_v31, %v2552_v37  ;;  %vm2620_vm0 = vcmp.lt.s32.totalorder %v2617_v45, %v2554_v25  ;;  %vm2536_vm13 = vcmp.eq.f32.partialorder %v8297_v3, %v6949_v10  ;;  %v7047_v32 = vpop.permute.xlu1 %3288  ;;  %v4985_v3 = vld [vmem:[%s8223_s2 + $0x20] sm:$0xff]  }
 0x470   : > { %vm2608_vm15 = vcmp.lt.s32.totalorder %v2606_v14, %v2607_v8  ;;  %v2558_v34 = vsel %vm2526_vm11, %v5607_v54, 128  ;;  %v2621_v61 = vsel %vm2620_vm0, %v2617_v45, %v2554_v25  ;;  %vm2622_vm2 = vcmp.lt.s32.totalorder %v2619_v6, %v2556_v21 }
 0x471   : > { %vm2538_vm5 = vcmp.eq.f32.partialorder %v8298_v19, %v6949_v10  ;;  %v2560_v17 = vsel %vm2528_vm6, %v5618_v55, 128  ;;  %v2623_v43 = vsel %vm2622_vm2, %v2619_v6, %v2556_v21  ;;  %vm2624_vm8 = vcmp.lt.s32.totalorder %v2621_v61, %v2558_v34  ;;  %v2128_v6 = vpop.f32.mrf.mxu0  ;;  %v7351_v21 = vld [vmem:[%s5260_s12 + $0xc8] sm:$0xff]  ;;  %v7366_v19 = vld [vmem:[%s5260_s12 + $0xc0] sm:$0xff] }
 0x472   : > { %v2609_v4 = vsel %vm2608_vm15, %v2606_v14, %v2607_v8  ;;  %v2562_v9 = vsel %vm2530_vm12, %v5621_v56, 128  ;;  %v2625_v27 = vsel %vm2624_vm8, %v2621_v61, %v2558_v34  ;;  %vm2626_vm9 = vcmp.lt.s32.totalorder %v2623_v43, %v2560_v17  ;;  %2134 = vst [vmem:[%s6149_s23 + $0x1] sm:$0x1] %v2128_v6  ;;  %8342 = vst [vmem:[#allocation19_spill] sm:$0xff] %v7351_v21  ;;  %v7354_v6 = vld [vmem:[%s5260_s12 + $0xd8] sm:$0xff] }
 0x473   : > { %vm2540_vm10 = vcmp.eq.f32.partialorder %v8299_v47, %v6949_v10  ;;  %v2564_v26 = vsel %vm2532_vm4, %v5624_v57, 128  ;;  %v2627_v11 = vsel %vm2626_vm9, %v2623_v43, %v2560_v17  ;;  %vm2628_vm1 = vcmp.lt.s32.totalorder %v2625_v27, %v2562_v9  ;;  %v7049_v37 = vpop.permute.xlu1 %3298  ;;  %v2130_v34 = vpop.f32.mrf.mxu0  ;;  %v8309_v43 = vld [vmem:[#allocation8_spill] sm:$0xff]  ;;  %8343 = vst [vmem:[#allocation20_spill] sm:$0xff] %v7354_v6  ;;  %8344 = vst [vmem:[#allocation21_spill] sm:$0xff] %v7366_v19 }
 0x474   : > { %vm2542_vm11 = vcmp.eq.f32.partialorder %v6903_v12, %v6949_v10  ;;  %v2566_v13 = vsel %vm2534_vm7, %v5627_v0, 128  ;;  %v2629_v30 = vsel %vm2628_vm1, %v2625_v27, %v2562_v9  ;;  %vm2630_vm6 = vcmp.lt.s32.totalorder %v2627_v11, %v2564_v26 }
 0x475   : > { %v2610_v39 = vrot.slane %v2609_v4, 2  ;;  %v2568_v36 = vsel %vm2536_vm13, %v5630_v1, 128  ;;  %v2631_v24 = vsel %vm2630_vm6, %v2627_v11, %v2564_v26  ;;  %vm2632_vm12 = vcmp.lt.s32.totalorder %v2629_v30, %v2566_v13  ;;  %v2131_v17 = vpop.f32.mrf.mxu0 }
 0x476   : > { %vm2544_vm4 = vcmp.eq.f32.partialorder %v6911_v7, %v6949_v10  ;;  %v2570_v12 = vsel %vm2538_vm5, %v5633_v58, 128  ;;  %v2633_v44 = vsel %vm2632_vm12, %v2629_v30, %v2566_v13  ;;  %vm2634_vm14 = vcmp.lt.s32.totalorder %v2631_v24, %v2568_v36  ;;  %v8314_v13 = vld [vmem:[#allocation9_spill] sm:$0xff]  ;;  %v7369_v17 = vld [vmem:[%s5260_s12 + $0xd0] sm:$0xff] }
 0x477   : > { %v2572_v52 = vsel %vm2540_vm10, %v5636_v59, 128  ;;  %v2635_v60 = vsel %vm2634_vm14, %v2631_v24, %v2568_v36  ;;  %vm2636_vm7 = vcmp.lt.s32.totalorder %v2633_v44, %v2570_v12  ;;  %v2574_v22 = vsel %vm2542_vm11, %v5643_v16, 128  ;;  %v7071_v25 = vpop.permute.xlu1 %3308  ;;  %v2132_v47 = vpop.f32.mrf.mxu0  ;;  %8345 = vst [vmem:[#allocation22_spill] sm:$0xff] %v7369_v17  ;;  %v4993_v24 = vld [vmem:[%s8173_s1 + $0xf0] sm:$0xff]  }
 0x478   : > { %v2637_v35 = vsel %vm2636_vm7, %v2633_v44, %v2570_v12  ;;  %vm2638_vm3 = vcmp.lt.s32.totalorder %v2635_v60, %v2572_v52  ;;  %vm2611_vm15 = vcmp.lt.s32.totalorder %v2609_v4, %v2610_v39  ;;  %v2576_v7 = vsel %vm2544_vm4, %v5646_v20, 128  ;;  %v4987_v47 = vld [vmem:[%s8173_s1 + $0xc0] sm:$0xff]   ;;  %v4994_v12 = vld [vmem:[%s8173_s1 + $0xf8] sm:$0xff]  }
 0x479   : > { %v2639_v41 = vsel %vm2638_vm3, %v2635_v60, %v2572_v52  ;;  %vm2640_vm0 = vcmp.lt.s32.totalorder %v2637_v35, %v2574_v22  ;;  %v2612_v5 = vsel %vm2611_vm15, %v2609_v4, %v2610_v39  ;;  %v8302_v45 = vmov 1.0|1.0  }
 0x47a   : > { %v2641_v28 = vsel %vm2640_vm0, %v2637_v35, %v2574_v22  ;;  %vm2642_vm13 = vcmp.lt.s32.totalorder %v2639_v41, %v2576_v7  ;;  %v2613_v2 = vrot.slane %v2612_v5, 1  ;;  %v8310_v9 = vmov 0 }
 0x47b   : > { %v2643_v18 = vsel %vm2642_vm13, %v2639_v41, %v2576_v7  ;;  %v7126_v27 = vpop.permute.xlu1 %3318  ;;  %v8312_v11 = vmov 0  ;;  %v8316_v30 = vmov 0 }
 0x47c   : > { %vm2644_vm2 = vcmp.lt.s32.totalorder %v2641_v28, %v2643_v18  ;;  %vm2614_vm8 = vcmp.lt.s32.totalorder %v2612_v5, %v2613_v2 }
 0x47d   : > { %v2645_v10 = vsel %vm2644_vm2, %v2641_v28, %v2643_v18  ;;  %v7051_v14 = vsel %vm2614_vm8, %v2612_v5, %v2613_v2  ;;  %v8328_v28 = vmov 0  ;;  %v4983_v2 = vld [vmem:[%s8210_s3 + $0x20] sm:$0xff]  }
 0x47e   : > { %v2646_v29 = vrot.slane %v2645_v10, 4  ;;  %vm2683_vm1 = vcmp.eq.s32.totalorder %v5643_v16, %v7051_v14  ;;  %vm2685_vm11 = vcmp.eq.s32.totalorder %v5646_v20, %v7051_v14  ;;  %vm2679_vm0 = vcmp.eq.s32.totalorder %v5633_v58, %v7051_v14 }
 0x47f   : > { %vm7079_vm3 = vmpackc.low %vm2685_vm11, %vm2683_vm1  ;;  %vm2681_vm13 = vcmp.eq.s32.totalorder %v5636_v59, %v7051_v14  ;;  %vm2677_vm1 = vcmp.eq.s32.totalorder %v5630_v1, %v7051_v14 }
 0x480   : > { %vm2647_vm5 = vcmp.lt.s32.totalorder %v2645_v10, %v2646_v29  ;;  %vm7110_vm8 = vmpackc.low %vm2681_vm13, %vm2679_vm0  ;;  %vm2671_vm0 = vcmp.eq.s32.totalorder %v5621_v56, %v7051_v14  ;;  %vm2673_vm13 = vcmp.eq.s32.totalorder %v5624_v57, %v7051_v14 }
 0x481   : > { %v2648_v38 = vsel %vm2647_vm5, %v2645_v10, %v2646_v29 }
 0x482   : > { %v2649_v23 = vrot.slane %v2648_v38, 2 }
 0x484   : > { %vm2650_vm9 = vcmp.lt.s32.totalorder %v2648_v38, %v2649_v23 }
 0x485   : > { %v2651_v31 = vsel %vm2650_vm9, %v2648_v38, %v2649_v23  ;;  %v8336_v38 = vmov 0   ;;  %v4984_v23 = vld [vmem:[%s8210_s3 + $0x28] sm:$0xff]  }
 0x486   : > { %v2652_v8 = vrot.slane %v2651_v31, 1 }
 0x488   : > { %vm2653_vm10 = vcmp.lt.s32.totalorder %v2651_v31, %v2652_v8 }
 0x489   : > { %v7053_v33 = vsel %vm2653_vm10, %v2651_v31, %v2652_v8  ;;  %vm2675_vm10 = vcmp.eq.s32.totalorder %v5627_v0, %v7051_v14  ;;  %v4665_v31 = vld [vmem:[%s5260_s12 + $0xe8] sm:$0xff] }
 0x48a   : > { %vm2684_vm6 = vcmp.eq.s32.totalorder %v5643_v16, %v7053_v33  ;;  %vm2686_vm12 = vcmp.eq.s32.totalorder %v5646_v20, %v7053_v33  ;;  %vm2680_vm4 = vcmp.eq.s32.totalorder %v5633_v58, %v7053_v33  ;;  %vm2682_vm14 = vcmp.eq.s32.totalorder %v5636_v59, %v7053_v33 }
 0x48b   : > { %vm7067_vm7 = vmpackc.low %vm2686_vm12, %vm2684_vm6  ;;  %vm2676_vm2 = vcmp.eq.s32.totalorder %v5627_v0, %v7053_v33  ;;  %vm2678_vm5 = vcmp.eq.s32.totalorder %v5630_v1, %v7053_v33  ;;  %v2916_v61 = vcombine.low %v7051_v14, %v7053_v33  ;;  %vm2672_vm11 = vcmp.eq.s32.totalorder %v5621_v56, %v7053_v33 }
 0x48c   : > { %4554 = vmatprep.subr.msk.bf16.mxu0 %vm7067_vm7, %v8302_v45  ;;  %4629 = vmatprep.subr.msk.bf16.mxu1 %vm7067_vm7, %v8302_v45  ;;  %vm7089_vm15 = vmpackc.low %vm2682_vm14, %vm2680_vm4  ;;  %vm2674_vm6 = vcmp.eq.s32.totalorder %v5624_v57, %v7053_v33  ;;  %vm8315_vm4 = vnez %v8314_v13 }
 0x48d   : > { %4556 = vmatpush1.bf16.msk.msra.mxu0 %vm7079_vm3, %v8302_v45  ;;  %4631 = vmatpush1.bf16.xpose.msk.msra.mxu1 %vm7079_vm3, %v8302_v45  ;;  %v2923_v4 = vrot.slane %v2916_v61, %v8309_v43  ;;  %vm7118_vm9 = vmpackc.low %vm2678_vm5, %vm2676_vm2  ;;  %vm2668_vm2 = vcmp.eq.s32.totalorder %v5607_v54, %v7053_v33  ;;  %vm2670_vm5 = vcmp.eq.s32.totalorder %v5618_v55, %v7053_v33 }
 0x48e   : > { %4558 = vmatprep.subr.msk.bf16.mxu0 %vm7089_vm15, %v8302_v45  ;;  %4633 = vmatprep.subr.msk.bf16.mxu1 %vm7089_vm15, %v8302_v45  ;;  %v8311_v9 = vsel %vm7118_vm9, 4294967295, %v8310_v9  ;;  %vm7136_vm12 = vmpackc.low %vm2677_vm1, %vm2675_vm10  ;;  %v3044_v61 = vpack.c.bf16 %v7354_v6, %v7351_v21 }
 0x48f   : > { %v2930_v26 = vrot.slane %v2923_v4, %v8309_v43  ;;  %v8313_v11 = vsel %vm7136_vm12, 4294967295, %v8312_v11  ;;  %vm7149_vm14 = vmpackc.low %vm2674_vm6, %vm2672_vm11  ;;  %vm2667_vm11 = vcmp.eq.s32.totalorder %v5607_v54, %v7051_v14  ;;  %vm2669_vm6 = vcmp.eq.s32.totalorder %v5618_v55, %v7051_v14 }
 0x490   : > { %v8317_v30 = vsel %vm7149_vm14, 4294967295, %v8316_v30  ;;  %vm7167_vm10 = vmpackc.low %vm2673_vm13, %vm2671_vm0  ;;  %vm2664_vm0 = vcmp.eq.s32.totalorder %v5601_v50, %v7053_v33  ;;  %vm2666_vm13 = vcmp.eq.s32.totalorder %v5604_v53, %v7053_v33  ;;  %v3043_v4 = vpack.c.bf16 %v7369_v17, %v7366_v19  ;;  %v8356_v17 = vld [vmem:[#allocation12_spill] sm:$0xff] }
 0x491   : > { %4560 = vmatpush1.bf16.msk.msra.mxu0 %vm7110_vm8, %v8302_v45  ;;  %4627 = vst.msk [vmem:[%s5878_s22 + $0x2] ss:$4 sm:$0x3] %vm8315_vm4, %v2930_v26  ;;  %vm7174_vm1 = vmpackc.low %vm2670_vm5, %vm2668_vm2  ;;  %vm2663_vm4 = vcmp.eq.s32.totalorder %v5601_v50, %v7051_v14  ;;  %v4988_v26 = vld [vmem:[%s8173_s1 + $0xc8] sm:$0xff]  }
 0x492   : > { %4562 = vmatprep.subr.msk.bf16.mxu0 %vm7118_vm9, %v8302_v45  ;;  %vm7189_vm2 = vmpackc.low %vm2669_vm6, %vm2667_vm11  ;;  %vm2665_vm11 = vcmp.eq.s32.totalorder %v5604_v53, %v7051_v14  ;;  %vm2660_vm6 = vcmp.eq.s32.totalorder %v5595_v48, %v7053_v33 }
 0x493   : > { %vm7199_vm5 = vmpackc.low %vm2666_vm13, %vm2664_vm0  ;;  %vm2662_vm0 = vcmp.eq.s32.totalorder %v5598_v49, %v7053_v33 }
 0x494   : > { %vm7217_vm13 = vmpackc.low %vm2665_vm11, %vm2663_vm4  ;;  %vm2656_vm4 = vcmp.eq.s32.totalorder %v5587_v40, %v7053_v33  ;;  %vm2658_vm11 = vcmp.eq.s32.totalorder %v5592_v46, %v7053_v33  ;;  %v7347_v33 = vld [vmem:[%s5260_s12 + $0xe0] sm:$0xff] }
 0x495   : > { %4564 = vmatpush1.bf16.msk.msra.mxu0 %vm7136_vm12, %v8302_v45  ;;  %4635 = vmatpush1.bf16.xpose.msk.msra.mxu1 %vm7110_vm8, %v8302_v45  ;;  %8341 = vst [vmem:[#allocation18_spill] sm:$0xff] %v7347_v33  ;;  %v3045_v34 = vpack.c.bf16 %v4666_v63, %v7347_v33 }
 0x496   : > { %4566 = vmatprep.subr.msk.bf16.mxu0 %vm7149_vm14, %v8302_v45  ;;  %4637 = vmatprep.subr.msk.bf16.mxu1 %vm7118_vm9, %v8302_v45  ;;  %vm2661_vm9 = vcmp.eq.s32.totalorder %v5598_v49, %v7051_v14 }
 0x499   : > { %4568 = vmatpush1.bf16.msk.msra.mxu0 %vm7167_vm10, %v8302_v45 }
 0x49a   : > { %4570 = vmatprep.subr.msk.bf16.mxu0 %vm7174_vm1, %v8302_v45 }
 0x49b   : > { %v2083_v39 = vpop.xlane.xlu1 %2082 }
 0x49c   : > { %v2084_v36 = vrot.slane %v2083_v39, 4 }
 0x49d   : > { %4572 = vmatpush1.bf16.msk.msra.mxu0 %vm7189_vm2, %v8302_v45  ;;  %4639 = vmatpush1.bf16.xpose.msk.msra.mxu1 %vm7136_vm12, %v8302_v45  ;;  %vm7224_vm12 = vmpackc.low %vm2662_vm0, %vm2660_vm6 }
 0x49e   : > { %v2085_v44 = vadd.f32 %v2084_v36, %v2083_v39  ;;  %4574 = vmatprep.subr.msk.bf16.mxu0 %vm7199_vm5, %v8302_v45  ;;  %4641 = vmatprep.subr.msk.bf16.mxu1 %vm7149_vm14, %v8302_v45  ;;  %v8329_v28 = vsel %vm7224_vm12, 4294967295, %v8328_v28  ;;  %vm2659_vm14 = vcmp.eq.s32.totalorder %v5595_v48, %v7051_v14  ;;  %vm7249_vm0 = vmpackc.low %vm2658_vm11, %vm2656_vm4  ;;  %v4991_v39 = vld [vmem:[%s8173_s1 + $0xe0] sm:$0xff]   ;;  %v4992_v36 = vld [vmem:[%s8173_s1 + $0xe8] sm:$0xff]  }
 0x49f   : > { %vm7239_vm6 = vmpackc.low %vm2661_vm9, %vm2659_vm14  ;;  %vm2657_vm9 = vcmp.eq.s32.totalorder %v5592_v46, %v7051_v14 }
 0x4a0   : > { %v2086_v52 = vrot.slane %v2085_v44, 2 }
 0x4a1   : > { %4576 = vmatpush1.bf16.msk.msra.mxu0 %vm7217_vm13, %v8302_v45 }
 0x4a2   : > { %v2087_v35 = vadd.f32 %v2086_v52, %v2085_v44  ;;  %4578 = vmatprep.subr.msk.bf16.mxu0 %vm7224_vm12, %v8302_v45  ;;  %vm2655_vm12 = vcmp.eq.s32.totalorder %v5587_v40, %v7051_v14  ;;  %v4667_v14 = vld [vmem:[%s5260_s12 + $0xf8] sm:$0xff] }
 0x4a3   : > { %vm7263_vm14 = vmpackc.low %vm2657_vm9, %vm2655_vm12  ;;  %v3046_v8 = vpack.c.bf16 %v4667_v14, %v4665_v31  ;;  %vm8346_vm12 = vcmask 261120  }
 0x4a4   : > { %v2088_v7 = vrot.slane %v2087_v35, 1 }
 0x4a5   : > { %4580 = vmatpush1.bf16.msk.msra.mxu0 %vm7239_vm6, %v8302_v45  ;;  %4643 = vmatpush1.bf16.xpose.msk.msra.mxu1 %vm7167_vm10, %v8302_v45 }
 0x4a6   : > { %v2089_v18 = vadd.f32 %v2088_v7, %v2087_v35  ;;  %4582 = vmatprep.subr.msk.bf16.mxu0 %vm7249_vm0, %v8302_v45  ;;  %4645 = vmatprep.subr.msk.bf16.mxu1 %vm7174_vm1, %v8302_v45 }
 0x4a8   : > { %4878 = vpush %v2089_v18 }
 0x4a9   : > { %4584 = vmatpush1.bf16.msk.msra.mxu0 %vm7263_vm14, %v8302_v45 }
 0x4aa   : > { %4588 = vmatprep.subr.msk.bf16.mxu0 %vm7067_vm7, %v8302_v45  ;;  %vm8337_vm7 = vnez %v8311_v9  ;;  %v4986_v9 = vld [vmem:[%s8223_s2 + $0x28] sm:$0xff]  }
 0x4ac   : > { %2822 = vmatmul.mubr.bf16.vlgmr.msra.gmra.mxu0 %v4983_v2 }
 0x4ad   : > { %4590 = vmatpush1.bf16.msk.msra.mxu0 %vm7079_vm3, %v8302_v45  ;;  %4647 = vmatpush1.bf16.xpose.msk.msra.mxu1 %vm7189_vm2, %v8302_v45  ;;  %vm8338_vm3 = vnez %v8313_v11  ;;  %v4989_v11 = vld [vmem:[%s8173_s1 + $0xd0] sm:$0xff]  }
 0x4ae   : > { %4592 = vmatprep.subr.msk.bf16.mxu0 %vm7089_vm15, %v8302_v45  ;;  %4649 = vmatprep.subr.msk.bf16.mxu1 %vm7199_vm5, %v8302_v45  ;;  %vm8339_vm15 = vnez %v8317_v30  ;;  %v4990_v30 = vld [vmem:[%s8173_s1 + $0xd8] sm:$0xff]  }
 0x4af   : > { %2831 = vmatprep.mubr.bf16.mxu0 %v8336_v38 }
 0x4b1   : > { %4594 = vmatpush1.bf16.msk.msra.mxu0 %vm7110_vm8, %v8302_v45  ;;  %vm8340_vm8 = vnez %v8329_v28 }
 0x4b2   : > { %4596 = vmatprep.subr.msk.bf16.mxu0 %vm8337_vm7, %v8302_v45 }
 0x4b4   : > { %2832 = vmatmul.mubr.bf16.gmra.mxu0 %v4984_v23  ;;  %v5015_v23 = vld [vmem:[%s5260_s12 + $0x80] sm:$0xff] }
 0x4b5   : > { %4598 = vmatpush1.bf16.msk.msra.mxu0 %vm8338_vm3, %v8302_v45  ;;  %4651 = vmatpush1.bf16.xpose.msk.msra.mxu1 %vm7217_vm13, %v8302_v45 }
 0x4b6   : > { %4600 = vmatprep.subr.msk.bf16.mxu0 %vm8339_vm15, %v8302_v45  ;;  %4653 = vmatprep.subr.msk.bf16.mxu1 %vm8340_vm8, %v8302_v45 }
 0x4b7   : > { %2886 = vmatprep.mubr.bf16.mxu0 %v8336_v38 }
 0x4b9   : > { %4602 = vmatpush1.bf16.msk.msra.mxu0 %vm7167_vm10, %v8302_v45  ;;  %vm8347_vm10 = vmmov %vm8346_vm12 }
 0x4ba   : > { %4604 = vmatprep.subr.msk.bf16.mxu0 %vm7174_vm1, %v8302_v45  ;;  %vm8348_vm1 = vmmov %vm8347_vm10 }
 0x4bb   : > { %vm8352_vm4 = vmmov %vm8348_vm1 }
 0x4bc   : > { %vm8353_vm11 = vmmov %vm8348_vm1 }
 0x4bd   : > { %4606 = vmatpush1.bf16.msk.msra.mxu0 %vm7189_vm2, %v8302_v45  ;;  %4655 = vmatpush1.bf16.xpose.msk.msra.mxu1 %vm7239_vm6, %v8302_v45  ;;  %vm8349_vm2 = vmmov %vm8348_vm1 }
 0x4be   : > { %4608 = vmatprep.subr.msk.bf16.mxu0 %vm7199_vm5, %v8302_v45  ;;  %4657 = vmatprep.subr.msk.bf16.mxu1 %vm7249_vm0, %v8302_v45  ;;  %vm8350_vm5 = vmmov %vm8348_vm1 }
 0x4c1   : > { %4610 = vmatpush1.bf16.msk.msra.mxu0 %vm7217_vm13, %v8302_v45  ;;  %vm8351_vm13 = vmmov %vm8348_vm1 }
 0x4c2   : > { %4612 = vmatprep.subr.msk.bf16.mxu0 %vm8340_vm8, %v8302_v45 }
 0x4c5   : > { %4614 = vmatpush1.bf16.msk.msra.mxu0 %vm7239_vm6, %v8302_v45  ;;  %4659 = vmatpush1.bf16.xpose.msk.msra.mxu1 %vm7263_vm14, %v8302_v45 }
 0x4c6   : > { %4616 = vmatprep.subr.msk.bf16.mxu0 %vm7249_vm0, %v8302_v45  ;;  %3123 = vmatprep.subr.bf16.mxu1 %v3046_v8 }
 0x4c9   : > { %4618 = vmatpush1.bf16.msk.msra.mxu0 %vm7263_vm14, %v8302_v45 }
 0x4cc   : > { %2887 = vmatmul.mubr.bf16.vlgmr.msra.gmra.mxu0 %v4985_v3  ;;  %3009 = vmatmul.mubr.bf16.vlgmr.msra.gmra.mxu1 %v8302_v45 }
 0x4cd   : > { %3124 = vmatpush1.bf16.msra.mxu1 %v3045_v34  ;;  %2896 = vmatprep.mubr.bf16.mxu0 %v8336_v38  ;;  %v5016_v34 = vld [vmem:[%s5260_s12 + $0x88] sm:$0xff] }
 0x4ce   : > { %3125 = vmatprep.subr.bf16.mxu1 %v3044_v61  ;;  %3143 = vmatprep.mubr.bf16.mxu1 %v8336_v38 }
 0x4d1   : > { %3126 = vmatpush1.bf16.msra.mxu1 %v3043_v4 }
 0x4d4   : > { %2897 = vmatmul.mubr.bf16.gmra.mxu0 %v4986_v9  ;;  %4692 = vmatmul.mubr.msk.bf16.vlgmr.msra.gmra.mxu1 %vm8346_vm12, %v4987_v47 }
 0x4d5   : > { %3153 = vmatprep.mubr.bf16.mxu1 %v8336_v38  ;;  %3703 = vmatprep.mubr.bf16.mxu0 %v8336_v38 }
 0x4dc   : > { %4693 = vmatmul.mubr.msk.bf16.gmra.mxu1 %vm8347_vm10, %v4988_v26 }
 0x4dd   : > { %3163 = vmatprep.mubr.bf16.mxu1 %v8336_v38 }
 0x4e4   : > { %4694 = vmatmul.mubr.msk.bf16.gmra.mxu1 %vm8348_vm1, %v4989_v11  ;;  %v5017_v11 = vld [vmem:[%s5260_s12 + $0x90] sm:$0xff] }
 0x4e5   : > { %3173 = vmatprep.mubr.bf16.mxu1 %v8336_v38 }
 0x4ec   : > { %4695 = vmatmul.mubr.msk.bf16.gmra.mxu1 %vm8349_vm2, %v4990_v30 }
 0x4ed   : > { %3183 = vmatprep.mubr.bf16.mxu1 %v8336_v38 }
 0x4f4   : > { %4696 = vmatmul.mubr.msk.bf16.gmra.mxu1 %vm8350_vm5, %v4991_v39 }
 0x4f5   : > { %3193 = vmatprep.mubr.bf16.mxu1 %v8336_v38 }
 0x4fc   : > { %4697 = vmatmul.mubr.msk.bf16.gmra.mxu1 %vm8351_vm13, %v4992_v36 }
 0x4fd   : > { %3203 = vmatprep.mubr.bf16.mxu1 %v8336_v38 }
 0x504   : > { %4698 = vmatmul.mubr.msk.bf16.gmra.mxu1 %vm8352_vm4, %v4993_v24 }
 0x505   : > { %3213 = vmatprep.mubr.bf16.mxu1 %v8336_v38 }
 0x50c   : > { %4699 = vmatmul.mubr.msk.bf16.gmra.mxu1 %vm8353_vm11, %v4994_v12 }
 0x50d   : > { %3890 = vmatprep.mubr.bf16.mxu1 %v8302_v45 }
 0x56c   : > { %v2823_v44 = vpop.f32.mrf.mxu0 }
 0x56e   : > { %v2825_v52 = vpop.f32.mrf.mxu0 }
 0x570   : > { %v2827_v60 = vpop.f32.mrf.mxu0 }
 0x572   : > { %v2829_v22 = vpop.f32.mrf.mxu0 }
 0x574   : > { %v2833_v35 = vpop.f32.mrf.mxu0 }
 0x576   : > { %v2835_v7 = vpop.f32.mrf.mxu0 }
 0x578   : > { %v2837_v41 = vpop.f32.mrf.mxu0 }
 0x57a   : > { %v2839_v28 = vpop.f32.mrf.mxu0 }
 0x58c   : > { %v2888_v18 = vpop.f32.mrf.mxu0  ;;  %v3010_v5 = vpop.f32.mrf.mxu1 }
 0x58d   : > { %v2889_v10 = vadd.f32 %v2888_v18, %v2823_v44  ;;  %3016 = vst [vmem:[%s6149_s23 + $0x2] sm:$0x1] %v3010_v5 }
 0x58e   : > { %v2890_v29 = vpop.f32.mrf.mxu0  ;;  %v3012_v2 = vpop.f32.mrf.mxu1 }
 0x58f   : > { %4619 = vst [vmem:[%s6570_s30 + $0x80] sm:$0xff] %v2889_v10  ;;  %v2933_v31 = vsub.f32 %v2889_v10, %v5015_v23  ;;  %v2891_v14 = vadd.f32 %v2890_v29, %v2825_v52  ;;  %v5018_v52 = vld [vmem:[%s5260_s12 + $0x98] sm:$0xff]  ;;  %v5019_v23 = vld [vmem:[%s5260_s12 + $0xa0] sm:$0xff] }
 0x590   : > { %v2892_v8 = vpop.f32.mrf.mxu0  ;;  %v3013_v63 = vpop.f32.mrf.mxu1 }
 0x591   : > { %v2949_v3 = vmul.f32 %v2933_v31, %v2933_v31  ;;  %4620 = vst [vmem:[%s6570_s30 + $0x88] sm:$0xff] %v2891_v14  ;;  %v2934_v61 = vsub.f32 %v2891_v14, %v5016_v34  ;;  %v2893_v4 = vadd.f32 %v2892_v8, %v2827_v60  ;;  %v5020_v34 = vld [vmem:[%s5260_s12 + $0xa8] sm:$0xff] }
 0x592   : > { %v2894_v9 = vpop.f32.mrf.mxu0  ;;  %v3014_v47 = vpop.f32.mrf.mxu1 }
 0x593   : > { %v2950_v26 = vmul.f32 %v2934_v61, %v2934_v61  ;;  %4621 = vst [vmem:[%s6570_s30 + $0x90] sm:$0xff] %v2893_v4  ;;  %v2935_v30 = vsub.f32 %v2893_v4, %v5017_v11  ;;  %v2895_v39 = vadd.f32 %v2894_v9, %v2829_v22  ;;  %v5021_v11 = vld [vmem:[%s5260_s12 + $0xb0] sm:$0xff] }
 0x594   : > { %v2898_v36 = vpop.f32.mrf.mxu0  ;;  %v7427_v24 = vpop.f32.mrf.mxu1 }
 0x595   : > { %v2957_v12 = vadd.f32 %v2950_v26, %v2949_v3  ;;  %v2951_v44 = vmul.f32 %v2935_v30, %v2935_v30  ;;  %4622 = vst [vmem:[%s6570_s30 + $0x98] sm:$0xff] %v2895_v39  ;;  %v2936_v18 = vsub.f32 %v2895_v39, %v5018_v52  ;;  %v2899_v60 = vadd.f32 %v2898_v36, %v2833_v35 }
 0x596   : > { %v2900_v5 = vpop.f32.mrf.mxu0  ;;  %v3147_v10 = vpop.f32.mrf.mxu1 }
 0x597   : > { %v2958_v29 = vadd.f32 %v2957_v12, %v2951_v44  ;;  %v2952_v2 = vmul.f32 %v2936_v18, %v2936_v18  ;;  %4623 = vst [vmem:[%s6570_s30 + $0xa0] sm:$0xff] %v2899_v60  ;;  %v2937_v22 = vsub.f32 %v2899_v60, %v5019_v23  ;;  %v2901_v31 = vadd.f32 %v2900_v5, %v2835_v7  ;;  %v5022_v44 = vld [vmem:[%s5260_s12 + $0xb8] sm:$0xff] }
 0x598   : > { %v2902_v14 = vpop.f32.mrf.mxu0  ;;  %v3149_v8 = vpop.f32.mrf.mxu1 }
 0x599   : > { %v2959_v63 = vadd.f32 %v2958_v29, %v2952_v2  ;;  %v2953_v3 = vmul.f32 %v2937_v22, %v2937_v22  ;;  %4624 = vst [vmem:[%s6570_s30 + $0xa8] sm:$0xff] %v2901_v31  ;;  %v2938_v61 = vsub.f32 %v2901_v31, %v5020_v34  ;;  %v2903_v35 = vadd.f32 %v2902_v14, %v2837_v41 }
 0x59a   : > { %v2904_v4 = vpop.f32.mrf.mxu0  ;;  %v3151_v9 = vpop.f32.mrf.mxu1  ;;  %v7456_v6 = vadd.f32 %v6971_v15, %v3149_v8 }
 0x59b   : > { %v2960_v47 = vadd.f32 %v2959_v63, %v2953_v3  ;;  %v2954_v26 = vmul.f32 %v2938_v61, %v2938_v61  ;;  %4625 = vst [vmem:[%s6570_s30 + $0xb0] sm:$0xff] %v2903_v35  ;;  %v2939_v30 = vsub.f32 %v2903_v35, %v5021_v11  ;;  %v2905_v39 = vadd.f32 %v2904_v4, %v2839_v28 }
 0x59c   : > { %v3155_v36 = vpop.f32.mrf.mxu1 }
 0x59d   : > { %v2961_v7 = vadd.f32 %v2960_v47, %v2954_v26  ;;  %v2955_v12 = vmul.f32 %v2939_v30, %v2939_v30  ;;  %4626 = vst [vmem:[%s6570_s30 + $0xb8] sm:$0xff] %v2905_v39  ;;  %v2940_v52 = vsub.f32 %v2905_v39, %v5022_v44 }
 0x59e   : > { %v3157_v18 = vpop.f32.mrf.mxu1 }
 0x59f   : > { %v2956_v60 = vmul.f32 %v2940_v52, %v2940_v52  ;;  %v2962_v5 = vadd.f32 %v2961_v7, %v2955_v12  ;;  %v8354_v7 = vld [vmem:[#allocation11_spill] sm:$0xff] }
 0x5a0   : > { %v3159_v29 = vpop.f32.mrf.mxu1  ;;  %v7440_v12 = vadd.f32 %v8354_v7, %v3155_v36  ;;  %v7446_v52 = vadd.f32 %v8354_v7, %v3157_v18  ;;  %v8357_v7 = vld [vmem:[#allocation13_spill] sm:$0xff] }
 0x5a1   : > { %v2963_v2 = vadd.f32 %v2962_v5, %v2956_v60  ;;  %v7443_v44 = vadd.f32 %v6993_v51, %v3159_v29 }
 0x5a2   : > { %v3161_v41 = vpop.f32.mrf.mxu1 }
 0x5a3   : > { %2964 = vadd.xlane.f32.xlu0 %v2963_v2  ;;  %v7449_v60 = vadd.f32 %v6993_v51, %v3161_v41  ;;  %v8355_v2 = vld [vmem:[#allocation10_spill] sm:$0xff]  ;;  %v7468_v51 = vadd.f32 %v6971_v15, %v3151_v9 }
 0x5a4   : > { %v3165_v23 = vpop.f32.mrf.mxu1  ;;  %v7453_v33 = vadd.f32 %v8355_v2, %v7427_v24  ;;  %v7465_v18 = vadd.f32 %v8355_v2, %v3147_v10  ;;  %v8358_v2 = vld [vmem:[#allocation14_spill] sm:$0xff] }
 0x5a5   : > { %v7459_v36 = vadd.f32 %v8356_v17, %v3165_v23 }
 0x5a6   : > { %v3167_v22 = vpop.f32.mrf.mxu1  ;;  %v3353_v23 = vmin.f32 %v7453_v33, %v7440_v12  ;;  %v3374_v15 = vmin.f32 %v7465_v18, %v7446_v52 }
 0x5a7   : > { %v7471_v41 = vadd.f32 %v8356_v17, %v3167_v22 }
 0x5a8   : > { %v3169_v31 = vpop.f32.mrf.mxu1 }
 0x5a9   : > { %v7462_v29 = vadd.f32 %v7021_v62, %v3169_v31  ;;  %v3354_v31 = vmin.f32 %v7456_v6, %v7443_v44  ;;  %v3376_v38 = vmin.f32 %v3374_v15, %v7471_v41 }
 0x5aa   : > { %v3171_v14 = vpop.f32.mrf.mxu1 }
 0x5ab   : > { %v7474_v24 = vadd.f32 %v7021_v62, %v3171_v14  ;;  %v3375_v62 = vmin.f32 %v7468_v51, %v7449_v60  ;;  %v3355_v14 = vmin.f32 %v3353_v23, %v7459_v36 }
 0x5ac   : > { %v3175_v63 = vpop.f32.mrf.mxu1 }
 0x5ad   : > { %v7481_v21 = vadd.f32 %v8357_v7, %v3175_v63  ;;  %v3356_v63 = vmin.f32 %v3354_v31, %v7462_v29  ;;  %v3377_v13 = vmin.f32 %v3375_v62, %v7474_v24 }
 0x5ae   : > { %v3177_v3 = vpop.f32.mrf.mxu1 }
 0x5af   : > { %v7491_v17 = vadd.f32 %v8357_v7, %v3177_v3  ;;  %v3357_v23 = vmin.f32 %v3355_v14, %v7481_v21 }
 0x5b0   : > { %v3179_v28 = vpop.f32.mrf.mxu1 }
 0x5b1   : > { %v7484_v10 = vadd.f32 %v7045_v42, %v3179_v28  ;;  %v3378_v15 = vmin.f32 %v3376_v38, %v7491_v17 }
 0x5b2   : > { %v3181_v34 = vpop.f32.mrf.mxu1 }
 0x5b3   : > { %v7494_v9 = vadd.f32 %v7045_v42, %v3181_v34  ;;  %v3358_v31 = vmin.f32 %v3356_v63, %v7484_v10 }
 0x5b4   : > { %v3185_v61 = vpop.f32.mrf.mxu1 }
 0x5b5   : > { %v7499_v28 = vadd.f32 %v8358_v2, %v3185_v61  ;;  %v8359_v61 = vld [vmem:[#allocation15_spill] sm:$0xff]  ;;  %v3379_v62 = vmin.f32 %v3377_v13, %v7494_v9 }
 0x5b6   : > { %v3187_v35 = vpop.f32.mrf.mxu1 }
 0x5b7   : > { %v7507_v3 = vadd.f32 %v8358_v2, %v3187_v35  ;;  %v3359_v14 = vmin.f32 %v3357_v23, %v7499_v28 }
 0x5b8   : > { %v3189_v4 = vpop.f32.mrf.mxu1 }
 0x5b9   : > { %v7502_v19 = vadd.f32 %v7047_v32, %v3189_v4  ;;  %v3380_v38 = vmin.f32 %v3378_v15, %v7507_v3 }
 0x5ba   : > { %v3191_v47 = vpop.f32.mrf.mxu1 }
 0x5bb   : > { %v7510_v42 = vadd.f32 %v7047_v32, %v3191_v47  ;;  %v3360_v63 = vmin.f32 %v3358_v31, %v7502_v19 }
 0x5bc   : > { %v3195_v26 = vpop.f32.mrf.mxu1 }
 0x5bd   : > { %v7515_v7 = vadd.f32 %v8359_v61, %v3195_v26  ;;  %v8362_v26 = vld [vmem:[#allocation16_spill] sm:$0xff]  ;;  %v3381_v13 = vmin.f32 %v3379_v62, %v7510_v42 }
 0x5be   : > { %v3197_v11 = vpop.f32.mrf.mxu1 }
 0x5bf   : > { %v7523_v35 = vadd.f32 %v8359_v61, %v3197_v11 }
 0x5c0   : > { %v3199_v30 = vpop.f32.mrf.mxu1 }
 0x5c1   : > { %v7518_v4 = vadd.f32 %v7049_v37, %v3199_v30  ;;  %8360 = vst [vmem:[#allocation11_spill] sm:$0xff] %v7523_v35 }
 0x5c2   : > { %v3201_v39 = vpop.f32.mrf.mxu1 }
 0x5c3   : > { %v7526_v32 = vadd.f32 %v7049_v37, %v3201_v39  ;;  %v3361_v39 = vmin.f32 %v3359_v14, %v7515_v7  ;;  %v3362_v23 = vmin.f32 %v3360_v63, %v7518_v4 }
 0x5c4   : > { %v3205_v5 = vpop.f32.mrf.mxu1 }
 0x5c5   : > { %8361 = vst [vmem:[#allocation10_spill] sm:$0xff] %v7526_v32  ;;  %v7531_v2 = vadd.f32 %v8362_v26, %v3205_v5  ;;  %v8365_v5 = vld [vmem:[#allocation17_spill] sm:$0xff]  ;;  %v3383_v15 = vmin.f32 %v3381_v13, %v7526_v32 }
 0x5c6   : > { %v3207_v8 = vpop.f32.mrf.mxu1 }
 0x5c7   : > { %v7539_v11 = vadd.f32 %v8362_v26, %v3207_v8  ;;  %v3363_v62 = vmin.f32 %v3361_v39, %v7531_v2 }
 0x5c8   : > { %v3209_v22 = vpop.f32.mrf.mxu1 }
 0x5c9   : > { %v7534_v30 = vadd.f32 %v7071_v25, %v3209_v22  ;;  %8363 = vst [vmem:[#allocation12_spill] sm:$0xff] %v7539_v11  ;;  %v3382_v22 = vmin.f32 %v3380_v38, %v7523_v35 }
 0x5ca   : > { %v3211_v34 = vpop.f32.mrf.mxu1 }
 0x5cb   : > { %v7544_v31 = vadd.f32 %v7071_v25, %v3211_v34  ;;  %v3364_v8 = vmin.f32 %v3362_v23, %v7534_v30  ;;  %v3384_v25 = vmin.f32 %v3382_v22, %v7539_v11 }
 0x5cc   : > { %v3215_v47 = vpop.f32.mrf.mxu1 }
 0x5cd   : > { %8364 = vst [vmem:[#allocation13_spill] sm:$0xff] %v7544_v31  ;;  %v7547_v61 = vadd.f32 %v8365_v5, %v3215_v47  ;;  %v3385_v47 = vmin.f32 %v3383_v15, %v7544_v31 }
 0x5ce   : > { %v3217_v37 = vpop.f32.mrf.mxu1 }
 0x5cf   : > { %v7554_v26 = vadd.f32 %v8365_v5, %v3217_v37  ;;  %v3365_v63 = vmin.f32 %v3363_v62, %v7547_v61 }
 0x5d0   : > { %v3219_v43 = vpop.f32.mrf.mxu1 }
 0x5d1   : > { %v7557_v14 = vadd.f32 %v7126_v27, %v3219_v43  ;;  %v3386_v39 = vmin.f32 %v3384_v25, %v7554_v26 }
 0x5d2   : > { %v3221_v34 = vpop.f32.mrf.mxu1 }
 0x5d3   : > { %v3366_v38 = vmin.f32 %v3364_v8, %v7557_v14  ;;  %v7564_v13 = vadd.f32 %v7126_v27, %v3221_v34 }
 0x5d5   : > { %v3367_v23 = vmin.f32 %v3365_v63, %v3366_v38  ;;  %v3387_v37 = vmin.f32 %v3385_v47, %v7564_v13 }
 0x5d7   : > { %v3368_v5 = vrot.slane %v3367_v23, 4  ;;  %v3388_v43 = vmin.f32 %v3386_v39, %v3387_v37 }
 0x5d9   : > { %v3369_v45 = vmin.f32 %v3367_v23, %v3368_v5  ;;  %v3389_v32 = vrot.slane %v3388_v43, 4 }
 0x5db   : > { %v3370_v22 = vrot.slane %v3369_v45, 2  ;;  %v3390_v35 = vmin.f32 %v3388_v43, %v3389_v32 }
 0x5dd   : > { %v3371_v11 = vmin.f32 %v3369_v45, %v3370_v22  ;;  %v3391_v62 = vrot.slane %v3390_v35, 2 }
 0x5df   : > { %v3372_v15 = vrot.slane %v3371_v11, 1  ;;  %v3392_v27 = vmin.f32 %v3390_v35, %v3391_v62 }
 0x5e1   : > { %v3373_v31 = vmin.f32 %v3371_v11, %v3372_v15 }
 0x5e3   : > { %vm3395_vm6 = vcmp.eq.f32.partialorder %v7453_v33, %v3373_v31  ;;  %vm3397_vm0 = vcmp.eq.f32.partialorder %v7456_v6, %v3373_v31  ;;  %vm3399_vm9 = vcmp.eq.f32.partialorder %v7440_v12, %v3373_v31  ;;  %vm3401_vm14 = vcmp.eq.f32.partialorder %v7443_v44, %v3373_v31 }
 0x5e4   : > { %v3427_v8 = vsel %vm3395_vm6, %v5587_v40, 128  ;;  %v3429_v25 = vsel %vm3397_vm0, %v5592_v46, 128  ;;  %v3431_v34 = vsel %vm3399_vm9, %v5595_v48, 128  ;;  %v3433_v45 = vsel %vm3401_vm14, %v5598_v49, 128 }
 0x5e5   : > { %vm3403_vm7 = vcmp.eq.f32.partialorder %v7459_v36, %v3373_v31  ;;  %vm3405_vm3 = vcmp.eq.f32.partialorder %v7462_v29, %v3373_v31  ;;  %vm3407_vm15 = vcmp.eq.f32.partialorder %v7481_v21, %v3373_v31  ;;  %vm3409_vm8 = vcmp.eq.f32.partialorder %v7484_v10, %v3373_v31 }
 0x5e6   : > { %vm3411_vm12 = vcmp.eq.f32.partialorder %v7499_v28, %v3373_v31  ;;  %v3393_v33 = vrot.slane %v3392_v27, 1  ;;  %vm3413_vm10 = vcmp.eq.f32.partialorder %v7502_v19, %v3373_v31  ;;  %vm3415_vm1 = vcmp.eq.f32.partialorder %v7515_v7, %v3373_v31 }
 0x5e7   : > { %vm3459_vm2 = vcmp.lt.s32.totalorder %v3427_v8, %v3431_v34  ;;  %vm3461_vm5 = vcmp.lt.s32.totalorder %v3429_v25, %v3433_v45  ;;  %v3435_v6 = vsel %vm3403_vm7, %v5601_v50, 128  ;;  %v3437_v12 = vsel %vm3405_vm3, %v5604_v53, 128 }
 0x5e8   : > { %v3460_v44 = vsel %vm3459_vm2, %v3427_v8, %v3431_v34  ;;  %v3462_v36 = vsel %vm3461_vm5, %v3429_v25, %v3433_v45  ;;  %vm3417_vm13 = vcmp.eq.f32.partialorder %v7518_v4, %v3373_v31  ;;  %vm3419_vm4 = vcmp.eq.f32.partialorder %v7531_v2, %v3373_v31  ;;  %v8367_v8 = vld [vmem:[#allocation10_spill] sm:$0xff]  ;;  %v8368_v45 = vld [vmem:[#allocation12_spill] sm:$0xff] }
 0x5e9   : > { %vm3463_vm11 = vcmp.lt.s32.totalorder %v3460_v44, %v3435_v6  ;;  %vm3465_vm6 = vcmp.lt.s32.totalorder %v3462_v36, %v3437_v12  ;;  %v3439_v29 = vsel %vm3407_vm15, %v5607_v54, 128  ;;  %v3441_v35 = vsel %vm3409_vm8, %v5618_v55, 128 }
 0x5ea   : > { %v3464_v32 = vsel %vm3463_vm11, %v3460_v44, %v3435_v6  ;;  %v3466_v11 = vsel %vm3465_vm6, %v3462_v36, %v3437_v12  ;;  %vm3421_vm0 = vcmp.eq.f32.partialorder %v7534_v30, %v3373_v31  ;;  %vm3423_vm9 = vcmp.eq.f32.partialorder %v7547_v61, %v3373_v31 }
 0x5eb   : > { %vm3467_vm14 = vcmp.lt.s32.totalorder %v3464_v32, %v3439_v29  ;;  %vm3469_vm7 = vcmp.lt.s32.totalorder %v3466_v11, %v3441_v35  ;;  %v3443_v47 = vsel %vm3411_vm12, %v5621_v56, 128  ;;  %v3445_v21 = vsel %vm3413_vm10, %v5624_v57, 128 }
 0x5ec   : > { %v3468_v63 = vsel %vm3467_vm14, %v3464_v32, %v3439_v29  ;;  %v3470_v38 = vsel %vm3469_vm7, %v3466_v11, %v3441_v35  ;;  %vm3425_vm3 = vcmp.eq.f32.partialorder %v7557_v14, %v3373_v31  ;;  %v7602_v10 = vmin.f32 %v3392_v27, %v3393_v33  ;;  %v8369_v29 = vld [vmem:[#allocation13_spill] sm:$0xff] }
 0x5ed   : > { %vm3471_vm15 = vcmp.lt.s32.totalorder %v3468_v63, %v3443_v47  ;;  %vm3473_vm8 = vcmp.lt.s32.totalorder %v3470_v38, %v3445_v21  ;;  %v3447_v39 = vsel %vm3415_vm1, %v5627_v0, 128  ;;  %v3449_v28 = vsel %vm3417_vm13, %v5630_v1, 128 }
 0x5ee   : > { %v3472_v23 = vsel %vm3471_vm15, %v3468_v63, %v3443_v47  ;;  %v3474_v37 = vsel %vm3473_vm8, %v3470_v38, %v3445_v21  ;;  %v3451_v19 = vsel %vm3419_vm4, %v5633_v58, 128  ;;  %v3453_v14 = vsel %vm3421_vm0, %v5636_v59, 128 }
 0x5ef   : > { %vm3475_vm12 = vcmp.lt.s32.totalorder %v3472_v23, %v3447_v39  ;;  %vm3477_vm10 = vcmp.lt.s32.totalorder %v3474_v37, %v3449_v28  ;;  %v3455_v7 = vsel %vm3423_vm9, %v5643_v16, 128  ;;  %v3457_v5 = vsel %vm3425_vm3, %v5646_v20, 128 }
 0x5f0   : > { %v3476_v4 = vsel %vm3475_vm12, %v3472_v23, %v3447_v39  ;;  %v3478_v43 = vsel %vm3477_vm10, %v3474_v37, %v3449_v28  ;;  %vm3396_vm5 = vcmp.eq.f32.partialorder %v7465_v18, %v7602_v10  ;;  %vm3400_vm13 = vcmp.eq.f32.partialorder %v7446_v52, %v7602_v10 }
 0x5f1   : > { %vm3479_vm1 = vcmp.lt.s32.totalorder %v3476_v4, %v3451_v19  ;;  %vm3481_vm2 = vcmp.lt.s32.totalorder %v3478_v43, %v3453_v14  ;;  %vm3398_vm4 = vcmp.eq.f32.partialorder %v7468_v51, %v7602_v10  ;;  %vm3402_vm11 = vcmp.eq.f32.partialorder %v7449_v60, %v7602_v10 }
 0x5f2   : > { %v3480_v2 = vsel %vm3479_vm1, %v3476_v4, %v3451_v19  ;;  %v3482_v30 = vsel %vm3481_vm2, %v3478_v43, %v3453_v14  ;;  %v3428_v22 = vsel %vm3396_vm5, %v5587_v40, 128  ;;  %v3432_v15 = vsel %vm3400_vm13, %v5595_v48, 128 }
 0x5f3   : > { %vm3483_vm6 = vcmp.lt.s32.totalorder %v3480_v2, %v3455_v7  ;;  %vm3485_vm0 = vcmp.lt.s32.totalorder %v3482_v30, %v3457_v5  ;;  %vm3404_vm14 = vcmp.eq.f32.partialorder %v7471_v41, %v7602_v10  ;;  %v3430_v52 = vsel %vm3398_vm4, %v5592_v46, 128  ;;  %v8366_v41 = vld [vmem:[#allocation11_spill] sm:$0xff] }
 0x5f4   : > { %v3484_v31 = vsel %vm3483_vm6, %v3480_v2, %v3455_v7  ;;  %v3486_v61 = vsel %vm3485_vm0, %v3482_v30, %v3457_v5  ;;  %v3434_v18 = vsel %vm3402_vm11, %v5598_v49, 128  ;;  %vm3406_vm7 = vcmp.eq.f32.partialorder %v7474_v24, %v7602_v10 }
 0x5f5   : > { %vm3487_vm9 = vcmp.lt.s32.totalorder %v3484_v31, %v3486_v61  ;;  %vm3408_vm3 = vcmp.eq.f32.partialorder %v7491_v17, %v7602_v10  ;;  %vm3410_vm15 = vcmp.eq.f32.partialorder %v7494_v9, %v7602_v10  ;;  %vm3412_vm8 = vcmp.eq.f32.partialorder %v7507_v3, %v7602_v10 }
 0x5f6   : > { %v3488_v51 = vsel %vm3487_vm9, %v3484_v31, %v3486_v61  ;;  %vm3414_vm12 = vcmp.eq.f32.partialorder %v7510_v42, %v7602_v10  ;;  %vm3498_vm10 = vcmp.lt.s32.totalorder %v3428_v22, %v3432_v15  ;;  %vm3416_vm1 = vcmp.eq.f32.partialorder %v8366_v41, %v7602_v10 }
 0x5f7   : > { %v3489_v60 = vrot.slane %v3488_v51, 4  ;;  %v3436_v62 = vsel %vm3404_vm14, %v5601_v50, 128  ;;  %v3499_v24 = vsel %vm3498_vm10, %v3428_v22, %v3432_v15  ;;  %vm3500_vm2 = vcmp.lt.s32.totalorder %v3430_v52, %v3434_v18 }
 0x5f8   : > { %v3438_v17 = vsel %vm3406_vm7, %v5604_v53, 128  ;;  %v3501_v27 = vsel %vm3500_vm2, %v3430_v52, %v3434_v18  ;;  %vm3502_vm13 = vcmp.lt.s32.totalorder %v3499_v24, %v3436_v62  ;;  %vm3418_vm4 = vcmp.eq.f32.partialorder %v8367_v8, %v7602_v10  ;;  %v8379_v52 = vld [vmem:[#allocation8_spill] sm:$0xff] }
 0x5f9   : > { %vm3490_vm5 = vcmp.lt.s32.totalorder %v3488_v51, %v3489_v60  ;;  %v3440_v25 = vsel %vm3408_vm3, %v5607_v54, 128  ;;  %v3503_v34 = vsel %vm3502_vm13, %v3499_v24, %v3436_v62  ;;  %vm3504_vm11 = vcmp.lt.s32.totalorder %v3501_v27, %v3438_v17 }
 0x5fa   : > { %vm3420_vm6 = vcmp.eq.f32.partialorder %v8368_v45, %v7602_v10  ;;  %v3442_v33 = vsel %vm3410_vm15, %v5618_v55, 128  ;;  %v3505_v6 = vsel %vm3504_vm11, %v3501_v27, %v3438_v17  ;;  %vm3506_vm0 = vcmp.lt.s32.totalorder %v3503_v34, %v3440_v25 }
 0x5fb   : > { %v3491_v12 = vsel %vm3490_vm5, %v3488_v51, %v3489_v60  ;;  %v3444_v44 = vsel %vm3412_vm8, %v5621_v56, 128  ;;  %v3507_v36 = vsel %vm3506_vm0, %v3503_v34, %v3440_v25  ;;  %vm3508_vm9 = vcmp.lt.s32.totalorder %v3505_v6, %v3442_v33 }
 0x5fc   : > { %vm3422_vm14 = vcmp.eq.f32.partialorder %v8369_v29, %v7602_v10  ;;  %v3446_v35 = vsel %vm3414_vm12, %v5624_v57, 128  ;;  %v3509_v9 = vsel %vm3508_vm9, %v3505_v6, %v3442_v33  ;;  %vm3510_vm7 = vcmp.lt.s32.totalorder %v3507_v36, %v3444_v44  ;;  %v4996_v33 = vld [vmem:[%s8210_s3 + $0x38] sm:$0xff]   ;;  %v4997_v6 = vld [vmem:[%s8223_s2 + $0x30] sm:$0xff]  }
 0x5fd   : > { %vm3424_vm3 = vcmp.eq.f32.partialorder %v7554_v26, %v7602_v10  ;;  %v3448_v3 = vsel %vm3416_vm1, %v5627_v0, 128  ;;  %v3511_v32 = vsel %vm3510_vm7, %v3507_v36, %v3444_v44  ;;  %vm3512_vm15 = vcmp.lt.s32.totalorder %v3509_v9, %v3446_v35 }
 0x5fe   : > { %v3492_v11 = vrot.slane %v3491_v12, 2  ;;  %v3450_v47 = vsel %vm3418_vm4, %v5630_v1, 128  ;;  %v3513_v42 = vsel %vm3512_vm15, %v3509_v9, %v3446_v35  ;;  %vm3514_vm8 = vcmp.lt.s32.totalorder %v3511_v32, %v3448_v3 }
 0x5ff   : > { %vm3426_vm12 = vcmp.eq.f32.partialorder %v7564_v13, %v7602_v10  ;;  %v3452_v26 = vsel %vm3420_vm6, %v5633_v58, 128  ;;  %v3515_v21 = vsel %vm3514_vm8, %v3511_v32, %v3448_v3  ;;  %vm3516_vm10 = vcmp.lt.s32.totalorder %v3513_v42, %v3450_v47 }
 0x600   : > { %v3454_v63 = vsel %vm3422_vm14, %v5636_v59, 128  ;;  %v3517_v38 = vsel %vm3516_vm10, %v3513_v42, %v3450_v47  ;;  %vm3518_vm1 = vcmp.lt.s32.totalorder %v3515_v21, %v3452_v26  ;;  %v3456_v39 = vsel %vm3424_vm3, %v5643_v16, 128 }
 0x601   : > { %v3519_v28 = vsel %vm3518_vm1, %v3515_v21, %v3452_v26  ;;  %vm3520_vm2 = vcmp.lt.s32.totalorder %v3517_v38, %v3454_v63  ;;  %vm3493_vm5 = vcmp.lt.s32.totalorder %v3491_v12, %v3492_v11  ;;  %v3458_v13 = vsel %vm3426_vm12, %v5646_v20, 128  ;;  %v8411_v21 = vld [vmem:[#allocation21_spill] sm:$0xff] }
 0x602   : > { %v3521_v23 = vsel %vm3520_vm2, %v3517_v38, %v3454_v63  ;;  %vm3522_vm13 = vcmp.lt.s32.totalorder %v3519_v28, %v3456_v39  ;;  %v3494_v14 = vsel %vm3493_vm5, %v3491_v12, %v3492_v11  ;;  %v8372_v15 = vmov 1.0|1.0   ;;  %v4998_v12 = vld [vmem:[%s8223_s2 + $0x38] sm:$0xff]  }
 0x603   : > { %v3523_v37 = vsel %vm3522_vm13, %v3519_v28, %v3456_v39  ;;  %vm3524_vm4 = vcmp.lt.s32.totalorder %v3521_v23, %v3458_v13  ;;  %v3495_v10 = vrot.slane %v3494_v14, 1  ;;  %v8380_v51 = vmov 0  ;;  %v8412_v28 = vld [vmem:[#allocation19_spill] sm:$0xff] }
 0x604   : > { %v3525_v19 = vsel %vm3524_vm4, %v3521_v23, %v3458_v13  ;;  %v8382_v41 = vmov 0  ;;  %v8406_v45 = vmov 0  }
 0x605   : > { %vm3526_vm11 = vcmp.lt.s32.totalorder %v3523_v37, %v3525_v19  ;;  %vm3496_vm0 = vcmp.lt.s32.totalorder %v3494_v14, %v3495_v10 }
 0x606   : > { %v3527_v7 = vsel %vm3526_vm11, %v3523_v37, %v3525_v19  ;;  %v7689_v30 = vsel %vm3496_vm0, %v3494_v14, %v3495_v10 }
 0x607   : > { %v3528_v5 = vrot.slane %v3527_v7, 4  ;;  %vm3565_vm7 = vcmp.eq.s32.totalorder %v5643_v16, %v7689_v30  ;;  %vm3567_vm3 = vcmp.eq.s32.totalorder %v5646_v20, %v7689_v30  ;;  %vm3561_vm13 = vcmp.eq.s32.totalorder %v5633_v58, %v7689_v30 }
 0x608   : > { %vm7715_vm2 = vmpackc.low %vm3567_vm3, %vm3565_vm7  ;;  %vm3563_vm4 = vcmp.eq.s32.totalorder %v5636_v59, %v7689_v30  ;;  %vm3559_vm7 = vcmp.eq.s32.totalorder %v5630_v1, %v7689_v30 }
 0x609   : > { %vm3529_vm6 = vcmp.lt.s32.totalorder %v3527_v7, %v3528_v5  ;;  %vm7745_vm0 = vmpackc.low %vm3563_vm4, %vm3561_vm13  ;;  %vm3553_vm13 = vcmp.eq.s32.totalorder %v5621_v56, %v7689_v30  ;;  %vm3555_vm4 = vcmp.eq.s32.totalorder %v5624_v57, %v7689_v30 }
 0x60a   : > { %v3530_v4 = vsel %vm3529_vm6, %v3527_v7, %v3528_v5  ;;  %v8413_v7 = vld [vmem:[#allocation22_spill] sm:$0xff] }
 0x60b   : > { %v3531_v43 = vrot.slane %v3530_v4, 2 }
 0x60d   : > { %vm3532_vm9 = vcmp.lt.s32.totalorder %v3530_v4, %v3531_v43 }
 0x60e   : > { %v3533_v2 = vsel %vm3532_vm9, %v3530_v4, %v3531_v43 }
 0x60f   : > { %v3534_v31 = vrot.slane %v3533_v2, 1 }
 0x611   : > { %vm3535_vm14 = vcmp.lt.s32.totalorder %v3533_v2, %v3534_v31 }
 0x612   : > { %v7691_v61 = vsel %vm3535_vm14, %v3533_v2, %v3534_v31  ;;  %vm3557_vm14 = vcmp.eq.s32.totalorder %v5627_v0, %v7689_v30 }
 0x613   : > { %vm3566_vm15 = vcmp.eq.s32.totalorder %v5643_v16, %v7691_v61  ;;  %vm3568_vm8 = vcmp.eq.s32.totalorder %v5646_v20, %v7691_v61  ;;  %vm3562_vm12 = vcmp.eq.s32.totalorder %v5633_v58, %v7691_v61  ;;  %vm3564_vm10 = vcmp.eq.s32.totalorder %v5636_v59, %v7691_v61  ;;  %v8415_v20 = vld [vmem:[#allocation18_spill] sm:$0xff] }
 0x614   : > { %vm7705_vm1 = vmpackc.low %vm3568_vm8, %vm3566_vm15  ;;  %vm3558_vm11 = vcmp.eq.s32.totalorder %v5627_v0, %v7691_v61  ;;  %vm3560_vm6 = vcmp.eq.s32.totalorder %v5630_v1, %v7691_v61  ;;  %v3798_v58 = vcombine.low %v7689_v30, %v7691_v61  ;;  %vm3554_vm3 = vcmp.eq.s32.totalorder %v5621_v56, %v7691_v61  ;;  %v8384_v0 = vld [vmem:[#allocation9_spill] sm:$0xff] }
 0x615   : > { %4759 = vmatprep.subr.msk.bf16.mxu0 %vm7705_vm1, %v8372_v15  ;;  %4834 = vmatprep.subr.msk.bf16.mxu1 %vm7705_vm1, %v8372_v15  ;;  %vm7725_vm5 = vmpackc.low %vm3564_vm10, %vm3562_vm12  ;;  %vm3556_vm15 = vcmp.eq.s32.totalorder %v5624_v57, %v7691_v61  ;;  %vm8385_vm12 = vnez %v8384_v0  ;;  %v8386_v1 = vmov 0  ;;  %v5024_v57 = vld [vmem:[%s5260_s12 + $0xf0] sm:$0xff] }
 0x616   : > { %4761 = vmatpush1.bf16.msk.msra.mxu0 %vm7715_vm2, %v8372_v15  ;;  %4836 = vmatpush1.bf16.xpose.msk.msra.mxu1 %vm7715_vm2, %v8372_v15  ;;  %v3805_v18 = vrot.slane %v3798_v58, %v8379_v52  ;;  %vm7753_vm9 = vmpackc.low %vm3560_vm6, %vm3558_vm11  ;;  %vm3550_vm11 = vcmp.eq.s32.totalorder %v5607_v54, %v7691_v61  ;;  %vm3552_vm6 = vcmp.eq.s32.totalorder %v5618_v55, %v7691_v61 }
 0x617   : > { %4763 = vmatprep.subr.msk.bf16.mxu0 %vm7725_vm5, %v8372_v15  ;;  %4838 = vmatprep.subr.msk.bf16.mxu1 %vm7725_vm5, %v8372_v15  ;;  %v8381_v51 = vsel %vm7753_vm9, 4294967295, %v8380_v51  ;;  %vm7769_vm8 = vmpackc.low %vm3559_vm7, %vm3557_vm14 }
 0x618   : > { %v3812_v60 = vrot.slane %v3805_v18, %v8379_v52  ;;  %v8383_v41 = vsel %vm7769_vm8, 4294967295, %v8382_v41  ;;  %vm7782_vm10 = vmpackc.low %vm3556_vm15, %vm3554_vm3  ;;  %vm3549_vm3 = vcmp.eq.s32.totalorder %v5607_v54, %v7689_v30  ;;  %vm3551_vm15 = vcmp.eq.s32.totalorder %v5618_v55, %v7689_v30 }
 0x619   : > { %v8387_v1 = vsel %vm7782_vm10, 4294967295, %v8386_v1  ;;  %vm7800_vm14 = vmpackc.low %vm3555_vm4, %vm3553_vm13  ;;  %vm3548_vm13 = vcmp.eq.s32.totalorder %v5604_v53, %v7691_v61 }
 0x61a   : > { %4765 = vmatpush1.bf16.msk.msra.mxu0 %vm7745_vm0, %v8372_v15  ;;  %4832 = vst.msk [vmem:[%s5878_s22 + $0x3] ss:$4 sm:$0x3] %vm8385_vm12, %v3812_v60  ;;  %vm7807_vm7 = vmpackc.low %vm3552_vm6, %vm3550_vm11  ;;  %vm3546_vm12 = vcmp.eq.s32.totalorder %v5601_v50, %v7691_v61  ;;  %vm3545_vm6 = vcmp.eq.s32.totalorder %v5601_v50, %v7689_v30  ;;  %v5023_v60 = vld [vmem:[%s5260_s12 + $0xe8] sm:$0xff] }
 0x61b   : > { %4767 = vmatprep.subr.msk.bf16.mxu0 %vm7753_vm9, %v8372_v15  ;;  %vm7822_vm4 = vmpackc.low %vm3551_vm15, %vm3549_vm3  ;;  %vm3547_vm3 = vcmp.eq.s32.totalorder %v5604_v53, %v7689_v30  ;;  %vm3542_vm15 = vcmp.eq.s32.totalorder %v5595_v48, %v7691_v61  ;;  %v8398_v53 = vmov 0 }
 0x61c   : > { %vm7832_vm11 = vmpackc.low %vm3548_vm13, %vm3546_vm12  ;;  %vm3544_vm12 = vcmp.eq.s32.totalorder %v5598_v49, %v7691_v61 }
 0x61d   : > { %vm7850_vm13 = vmpackc.low %vm3547_vm3, %vm3545_vm6  ;;  %vm3538_vm6 = vcmp.eq.s32.totalorder %v5587_v40, %v7691_v61  ;;  %vm3540_vm3 = vcmp.eq.s32.totalorder %v5592_v46, %v7691_v61 }
 0x61e   : > { %4769 = vmatpush1.bf16.msk.msra.mxu0 %vm7769_vm8, %v8372_v15  ;;  %4840 = vmatpush1.bf16.xpose.msk.msra.mxu1 %vm7745_vm0, %v8372_v15 }
 0x61f   : > { %4771 = vmatprep.subr.msk.bf16.mxu0 %vm7782_vm10, %v8372_v15  ;;  %4842 = vmatprep.subr.msk.bf16.mxu1 %vm7753_vm9, %v8372_v15  ;;  %vm3543_vm9 = vcmp.eq.s32.totalorder %v5598_v49, %v7689_v30 }
 0x622   : > { %4773 = vmatpush1.bf16.msk.msra.mxu0 %vm7800_vm14, %v8372_v15 }
 0x623   : > { %4775 = vmatprep.subr.msk.bf16.mxu0 %vm7807_vm7, %v8372_v15 }
 0x626   : > { %4777 = vmatpush1.bf16.msk.msra.mxu0 %vm7822_vm4, %v8372_v15  ;;  %4844 = vmatpush1.bf16.xpose.msk.msra.mxu1 %vm7769_vm8, %v8372_v15  ;;  %vm7857_vm8 = vmpackc.low %vm3544_vm12, %vm3542_vm15 }
 0x627   : > { %4779 = vmatprep.subr.msk.bf16.mxu0 %vm7832_vm11, %v8372_v15  ;;  %4846 = vmatprep.subr.msk.bf16.mxu1 %vm7782_vm10, %v8372_v15  ;;  %v8399_v53 = vsel %vm7857_vm8, 4294967295, %v8398_v53  ;;  %vm3541_vm10 = vcmp.eq.s32.totalorder %v5595_v48, %v7689_v30  ;;  %vm7882_vm12 = vmpackc.low %vm3540_vm3, %vm3538_vm6 }
 0x628   : > { %vm7872_vm15 = vmpackc.low %vm3543_vm9, %vm3541_vm10  ;;  %vm3539_vm9 = vcmp.eq.s32.totalorder %v5592_v46, %v7689_v30 }
 0x62a   : > { %4781 = vmatpush1.bf16.msk.msra.mxu0 %vm7850_vm13, %v8372_v15 }
 0x62b   : > { %4783 = vmatprep.subr.msk.bf16.mxu0 %vm7857_vm8, %v8372_v15  ;;  %vm3537_vm8 = vcmp.eq.s32.totalorder %v5587_v40, %v7689_v30  ;;  %v4995_v40 = vld [vmem:[%s8210_s3 + $0x30] sm:$0xff]  }
 0x62c   : > { %v2965_v55 = vpop.xlane.xlu0 %2964  ;;  %vm7896_vm10 = vmpackc.low %vm3539_vm9, %vm3537_vm8  ;;  %v8414_v30 = vld [vmem:[#allocation20_spill] sm:$0xff] }
 0x62d   : > { %v2966_v24 = vrot.slane %v2965_v55, 4 }
 0x62e   : > { %4785 = vmatpush1.bf16.msk.msra.mxu0 %vm7872_vm15, %v8372_v15  ;;  %4848 = vmatpush1.bf16.xpose.msk.msra.mxu1 %vm7800_vm14, %v8372_v15 }
 0x62f   : > { %v2967_v17 = vadd.f32 %v2966_v24, %v2965_v55  ;;  %4787 = vmatprep.subr.msk.bf16.mxu0 %vm7882_vm12, %v8372_v15  ;;  %4850 = vmatprep.subr.msk.bf16.mxu1 %vm7807_vm7, %v8372_v15 }
 0x631   : > { %v2968_v27 = vrot.slane %v2967_v17, 2 }
 0x632   : > { %4789 = vmatpush1.bf16.msk.msra.mxu0 %vm7896_vm10, %v8372_v15 }
 0x633   : > { %v2969_v49 = vadd.f32 %v2968_v27, %v2967_v17  ;;  %4793 = vmatprep.subr.msk.bf16.mxu0 %vm7705_vm1, %v8372_v15  ;;  %vm8407_vm1 = vnez %v8381_v51 }
 0x635   : > { %v2970_v25 = vrot.slane %v2969_v49, 1  ;;  %3704 = vmatmul.mubr.bf16.vlgmr.msra.gmra.mxu0 %v4995_v40 }
 0x636   : > { %4795 = vmatpush1.bf16.msk.msra.mxu0 %vm7715_vm2, %v8372_v15  ;;  %4852 = vmatpush1.bf16.xpose.msk.msra.mxu1 %vm7822_vm4, %v8372_v15  ;;  %vm8408_vm2 = vnez %v8383_v41 }
 0x637   : > { %v2971_v46 = vadd.f32 %v2970_v25, %v2969_v49  ;;  %4797 = vmatprep.subr.msk.bf16.mxu0 %vm7725_vm5, %v8372_v15  ;;  %4854 = vmatprep.subr.msk.bf16.mxu1 %vm7832_vm11, %v8372_v15  ;;  %vm8409_vm5 = vnez %v8387_v1 }
 0x638   : > { %3713 = vmatprep.mubr.bf16.mxu0 %v8406_v45 }
 0x639   : > { %4880 = vpush %v2971_v46 }
 0x63a   : > { %4799 = vmatpush1.bf16.msk.msra.mxu0 %vm7745_vm0, %v8372_v15  ;;  %vm8410_vm0 = vnez %v8399_v53  ;;  %v5025_v53 = vld [vmem:[%s5260_s12 + $0xf8] sm:$0xff] }
 0x63b   : > { %4801 = vmatprep.subr.msk.bf16.mxu0 %vm8407_vm1, %v8372_v15 }
 0x63d   : > { %3714 = vmatmul.mubr.bf16.gmra.mxu0 %v4996_v33 }
 0x63e   : > { %4803 = vmatpush1.bf16.msk.msra.mxu0 %vm8408_vm2, %v8372_v15  ;;  %4856 = vmatpush1.bf16.xpose.msk.msra.mxu1 %vm7850_vm13, %v8372_v15 }
 0x63f   : > { %4805 = vmatprep.subr.msk.bf16.mxu0 %vm8409_vm5, %v8372_v15  ;;  %4858 = vmatprep.subr.msk.bf16.mxu1 %vm8410_vm0, %v8372_v15 }
 0x640   : > { %3768 = vmatprep.mubr.bf16.mxu0 %v8406_v45 }
 0x642   : > { %4807 = vmatpush1.bf16.msk.msra.mxu0 %vm7800_vm14, %v8372_v15 }
 0x643   : > { %4809 = vmatprep.subr.msk.bf16.mxu0 %vm7807_vm7, %v8372_v15 }
 0x646   : > { %4811 = vmatpush1.bf16.msk.msra.mxu0 %vm7822_vm4, %v8372_v15  ;;  %4860 = vmatpush1.bf16.xpose.msk.msra.mxu1 %vm7872_vm15, %v8372_v15 }
 0x647   : > { %4813 = vmatprep.subr.msk.bf16.mxu0 %vm7832_vm11, %v8372_v15  ;;  %4862 = vmatprep.subr.msk.bf16.mxu1 %vm7882_vm12, %v8372_v15 }
 0x64a   : > { %4815 = vmatpush1.bf16.msk.msra.mxu0 %vm7850_vm13, %v8372_v15 }
 0x64b   : > { %4817 = vmatprep.subr.msk.bf16.mxu0 %vm8410_vm0, %v8372_v15 }
 0x64e   : > { %4819 = vmatpush1.bf16.msk.msra.mxu0 %vm7872_vm15, %v8372_v15  ;;  %4864 = vmatpush1.bf16.xpose.msk.msra.mxu1 %vm7896_vm10, %v8372_v15 }
 0x64f   : > { %4821 = vmatprep.subr.msk.bf16.mxu0 %vm7882_vm12, %v8372_v15 }
 0x652   : > { %4823 = vmatpush1.bf16.msk.msra.mxu0 %vm7896_vm10, %v8372_v15 }
 0x655   : > { %3769 = vmatmul.mubr.bf16.vlgmr.msra.gmra.mxu0 %v4997_v6  ;;  %3891 = vmatmul.mubr.bf16.vlgmr.msra.gmra.mxu1 %v8372_v15 }
 0x656   : > { %3778 = vmatprep.mubr.bf16.mxu0 %v8406_v45 }
 0x65d   : > { %3779 = vmatmul.mubr.bf16.gmra.mxu0 %v4998_v12 }
 0x6f5   : > { %v3705_v44 = vpop.f32.mrf.mxu0 }
 0x6f7   : > { %v3707_v36 = vpop.f32.mrf.mxu0 }
 0x6f9   : > { %v3709_v29 = vpop.f32.mrf.mxu0 }
 0x6fb   : > { %v3711_v35 = vpop.f32.mrf.mxu0 }
 0x6fd   : > { %v3715_v9 = vpop.f32.mrf.mxu0 }
 0x6ff   : > { %v3717_v3 = vpop.f32.mrf.mxu0 }
 0x701   : > { %v3719_v32 = vpop.f32.mrf.mxu0 }
 0x703   : > { %v3721_v11 = vpop.f32.mrf.mxu0 }
 0x715   : > { %v3770_v47 = vpop.f32.mrf.mxu0  ;;  %v3892_v49 = vpop.f32.mrf.mxu1 }
 0x716   : > { %v3771_v42 = vadd.f32 %v3770_v47, %v3705_v44  ;;  %3898 = vst [vmem:[%s6149_s23 + $0x3] sm:$0x1] %v3892_v49 }
 0x717   : > { %v3772_v26 = vpop.f32.mrf.mxu0  ;;  %v3894_v25 = vpop.f32.mrf.mxu1 }
 0x718   : > { %4824 = vst [vmem:[%s6570_s30 + $0xc0] sm:$0xff] %v3771_v42  ;;  %v3815_v63 = vsub.f32 %v3771_v42, %v8411_v21  ;;  %v3773_v38 = vadd.f32 %v3772_v26, %v3707_v36 }
 0x719   : > { %v3774_v39 = vpop.f32.mrf.mxu0  ;;  %v3895_v34 = vpop.f32.mrf.mxu1 }
 0x71a   : > { %4825 = vst [vmem:[%s6570_s30 + $0xc8] sm:$0xff] %v3773_v38  ;;  %v3816_v13 = vsub.f32 %v3773_v38, %v8412_v28  ;;  %v3775_v23 = vadd.f32 %v3774_v39, %v3709_v29  ;;  %v3831_v19 = vmul.f32 %v3815_v63, %v3815_v63 }
 0x71b   : > { %v3776_v37 = vpop.f32.mrf.mxu0  ;;  %v3896_v40 = vpop.f32.mrf.mxu1 }
 0x71c   : > { %v3832_v14 = vmul.f32 %v3816_v13, %v3816_v13  ;;  %4826 = vst [vmem:[%s6570_s30 + $0xd0] sm:$0xff] %v3775_v23  ;;  %v3817_v5 = vsub.f32 %v3775_v23, %v8413_v7  ;;  %v3777_v10 = vadd.f32 %v3776_v37, %v3711_v35 }
 0x71d   : > { %v3780_v4 = vpop.f32.mrf.mxu0 }
 0x71e   : > { %v3839_v43 = vadd.f32 %v3832_v14, %v3831_v19  ;;  %v3833_v2 = vmul.f32 %v3817_v5, %v3817_v5  ;;  %4827 = vst [vmem:[%s6570_s30 + $0xd8] sm:$0xff] %v3777_v10  ;;  %v3818_v31 = vsub.f32 %v3777_v10, %v8414_v30  ;;  %v3781_v61 = vadd.f32 %v3780_v4, %v3715_v9 }
 0x71f   : > { %v3782_v22 = vpop.f32.mrf.mxu0 }
 0x720   : > { %v3840_v15 = vadd.f32 %v3839_v43, %v3833_v2  ;;  %v3834_v16 = vmul.f32 %v3818_v31, %v3818_v31  ;;  %4828 = vst [vmem:[%s6570_s30 + $0xe0] sm:$0xff] %v3781_v61  ;;  %v3819_v58 = vsub.f32 %v3781_v61, %v8415_v20  ;;  %v3783_v59 = vadd.f32 %v3782_v22, %v3717_v3 }
 0x721   : > { %v3784_v52 = vpop.f32.mrf.mxu0 }
 0x722   : > { %v3841_v18 = vadd.f32 %v3840_v15, %v3834_v16  ;;  %v3835_v51 = vmul.f32 %v3819_v58, %v3819_v58  ;;  %4829 = vst [vmem:[%s6570_s30 + $0xe8] sm:$0xff] %v3783_v59  ;;  %v3820_v41 = vsub.f32 %v3783_v59, %v5023_v60  ;;  %v3785_v0 = vadd.f32 %v3784_v52, %v3719_v32 }
 0x723   : > { %v3786_v1 = vpop.f32.mrf.mxu0 }
 0x724   : > { %v3842_v62 = vadd.f32 %v3841_v18, %v3835_v51  ;;  %v3836_v56 = vmul.f32 %v3820_v41, %v3820_v41  ;;  %4830 = vst [vmem:[%s6570_s30 + $0xf0] sm:$0xff] %v3785_v0  ;;  %v3821_v54 = vsub.f32 %v3785_v0, %v5024_v57  ;;  %v3787_v55 = vadd.f32 %v3786_v1, %v3721_v11 }
 0x726   : > { %v3843_v24 = vadd.f32 %v3842_v62, %v3836_v56  ;;  %v3837_v50 = vmul.f32 %v3821_v54, %v3821_v54  ;;  %4831 = vst [vmem:[%s6570_s30 + $0xf8] sm:$0xff] %v3787_v55  ;;  %v3822_v17 = vsub.f32 %v3787_v55, %v5025_v53 }
 0x728   : > { %v3838_v27 = vmul.f32 %v3822_v17, %v3822_v17  ;;  %v3844_v8 = vadd.f32 %v3843_v24, %v3837_v50 }
 0x72a   : > { %v3845_v48 = vadd.f32 %v3844_v8, %v3838_v27 }
 0x72c   : > { %3846 = vadd.xlane.f32.xlu0 %v3845_v48 }
 0x72d   : > { %5039 = shalt.err (!%p5036_p5)
}
 0x72e   : > { %s5040_s30 = scalar_lea.hbm %s8009_s16, 4096  ;;  %s5044_s15 = scalar_lea.hbm %s8084_s5, 8192 }
 0x72f   : > { %p5041_p6 = scmp.ne.s32.totalorder %s8009_s16, %s5040_s30  ;;  %p5045_p10 = scmp.lt.s32.totalorder %s8009_s16, %s8084_s5 }
 0x730   : > { %p5046_p11 = scmp.lt.s32.totalorder %s5044_s15, %s5040_s30 }
 0x731   : > { %p5042_p7 = pnand %p5041_p6, %p5221_p4 }
 0x732   : > { %p5047_p12 = por %p5046_p11, %p5045_p10 }
 0x733   : > { %p5043_p9 = pneg %p5042_p7 }
 0x735   : > { %p5048_p13 = pnand %p5047_p12, %p5043_p9 }
 0x737   : > { %5051 = shalt.err (!%p5048_p13)
}
 0x738   : > { %s5138_s0 = smov 256   ;;  %s5139_s18 = smov 16  }
 0x739   : > { %s8416_s19 = scalar_lea.sflag [#allocation3], %s5803_s20  ;;  %s4875_s8 = sshll.u32 %s5124_s27, 7 }
 0x73a   : > { %4884 = dma.vmem_to_hbm [thread:$0]  (%p5221_p4), %s8012_s17, 4096, %s8009_s16, %s8416_s19, %s5138_s0, %s5138_s0, %s5139_s18  }
 0x73b   : > { %s3947_s12 = sshll.u32 %s5878_s22, 4  ;;  %s3945_s15 = scalar_lea.hbm %s8085_s6, %s4875_s8  ;;  %s3948_s12 = int_to_ptr.vmem [resolvable:$true] %s3947_s12 }
 0x73c   : > { %s3906_s21 = scalar_lea.sflag [#allocation5], %s5803_s20  ;;  %s5052_s1 = scalar_lea.vmem %s3948_s12, 128 }
 0x73d   : > { %p5053_p0 = scmp.ne.s32.totalorder %s3948_s12, %s5052_s1  ;;  %s5140_s2 = smov [#allocation4]  }
 0x73e   : > { %s5056_s3 = sshll.u32 %s5140_s2, 4  ;;  %s5057_s3 = int_to_ptr.vmem [resolvable:$false] %s5056_s3 }
 0x73f   : > { %p5054_p1 = pnand %p5053_p0, %p5221_p4  ;;  %s5058_s4 = scalar_lea.vmem %s5057_s3, 256 }
 0x740   : > { %p5059_p3 = scmp.lt.s32.totalorder %s3948_s12, %s5057_s3  ;;  %p5060_p5 = scmp.lt.s32.totalorder %s5058_s4, %s5052_s1 }
 0x741   : > { %p5055_p2 = pneg %p5054_p1 }
 0x742   : > { %p5061_p6 = por %p5060_p5, %p5059_p3 }
 0x744   : > { %p5062_p7 = pnand %p5061_p6, %p5055_p2 }
 0x746   : > { %5065 = shalt.err (!%p5062_p7)
}
 0x747   : > { %s5066_s27 = scalar_lea.hbm %s3945_s15, 128  ;;  %s5070_s16 = scalar_lea.hbm %s8085_s6, 256 }
 0x748   : > { %p5067_p9 = scmp.ne.s32.totalorder %s3945_s15, %s5066_s27  ;;  %p5071_p12 = scmp.lt.s32.totalorder %s3945_s15, %s8085_s6 }
 0x749   : > { %p5072_p13 = scmp.lt.s32.totalorder %s5070_s16, %s5066_s27 }
 0x74a   : > { %p5068_p10 = pnand %p5067_p9, %p5221_p4 }
 0x74b   : > { %p5073_p0 = por %p5072_p13, %p5071_p12 }
 0x74c   : > { %p5069_p11 = pneg %p5068_p10 }
 0x74e   : > { %p5074_p1 = pnand %p5073_p0, %p5069_p11 }
 0x750   : > { %5077 = shalt.err (!%p5074_p1)
}
 0x751   : > { %4885 = dma.vmem_to_hbm [thread:$0]  (%p5221_p4), %s3948_s12, 128, %s3945_s15, %s3906_s21   ;;  %v8417_v29 = vlaneseq }
 0x752   : > { %s4877_s1 = spop %4876 }
 0x753   : > { %v343_v35 = vand.u32 127, %v8417_v29  ;;  %s4879_s2 = spop %4878  ;;  %v1210_v9 = vstv %s4877_s1 }
 0x754   : > { %s4881_s3 = spop %4880  ;;  %v2092_v3 = vstv %s4879_s2 }
 0x755   : > { %vm1209_vm8 = vcmp.eq.s32.totalorder %v343_v35, 0  ;;  %vm2091_vm14 = vcmp.eq.s32.totalorder %v343_v35, 1  ;;  %vm2973_vm7 = vcmp.eq.s32.totalorder %v343_v35, 2  ;;  %v2974_v32 = vstv %s4881_s3 }
 0x756   : > { %v1211_v11 = vsel %vm1209_vm8, %v1210_v9, 0.0  ;;  %vm3855_vm4 = vcmp.eq.s32.totalorder %v343_v35, 3 }
 0x757   : > { %v2093_v47 = vsel %vm2091_vm14, %v2092_v3, %v1211_v11 }
 0x758   : > { %v2975_v42 = vsel %vm2973_vm7, %v2974_v32, %v2093_v47 }
 0x7b5   : > { %v3847_v46 = vpop.xlane.xlu0 %3846 }
 0x7b6   : > { %v3848_v45 = vrot.slane %v3847_v46, 4 }
 0x7b8   : > { %v3849_v33 = vadd.f32 %v3848_v45, %v3847_v46 }
 0x7ba   : > { %v3850_v6 = vrot.slane %v3849_v33, 2 }
 0x7bc   : > { %v3851_v12 = vadd.f32 %v3850_v6, %v3849_v33 }
 0x7be   : > { %v3852_v44 = vrot.slane %v3851_v12, 1 }
 0x7c0   : > { %v3853_v36 = vadd.f32 %v3852_v44, %v3851_v12 }
 0x7c2   : > { %4882 = vpush %v3853_v36 }
 0x7f3   : > { %s4883_s4 = spop %4882 }
 0x7f4   : > { %v3856_v26 = vstv %s4883_s4 }
 0x7f5   : > { %v3857_v21 = vsel %vm3855_vm4, %v3856_v26, %v2975_v42 }
 0x7f6   : > { %3899 = vst [vmem:[%s6149_s23 + $0x4] sm:$0x1] %v3857_v21 }
 0x7f7 PF: > { %p4895_p4 = scmp.ge.s32.totalorder %s5132_s29, 2  ;;  %s3962_s11 = sand.u32 1, %s5112_s24  }
 0x7f8   : > { %s3963_s18 = scalar_lea.sflag [#allocation3], %s3962_s11 }
 0x7f9   : > { %p4889_p2 = pnand %p4895_p4, %p5228_p8 }
 0x7fb   : > { %p4890_p3 = pneg %p4889_p2 }
 0x7fd   : > { %5103 = dma.done.wait (%p4890_p3), %s3963_s18, 4096  }
 0x7fe   : > { %5105 = vsyncadd (%p4890_p3), %s3963_s18, 4294963200  ;;  %s3972_s19 = scalar_lea.sflag [#allocation5], %s3962_s11 }
 0x7ff   : > { %5107 = dma.done.wait (%p4890_p3), %s3972_s19, 128  }
 0x800   : > { %5109 = vsyncadd (%p4890_p3), %s3972_s19, 4294967168  ;;  %s24_s29 = sadd.s32 1, %s5132_s29   ;;  %s8418_s24 = smov %s5116_s25 }
 0x801   : > { %p21_p5 = scmp.ge.s32.totalorder %s24_s29, 4   ;;  %s8419_s25 = smov %s5120_s26 }
 0x802   : > { %s8420_s26 = smov %s5234_s14  ;;  %s8421_s27 = smov %s5128_s28 }
 0x803   : > { %s8422_s28 = smov %s8424_s9  ;;  %23 = sbr.rel (!%p21_p5) target bundleno = 12 (0xc), region = 125 }
 0x808   :  { %3987 = vsyncpa [#allocation3], 1 }
 0x809   :  { %3989 = vsyncpa [#allocation3 + $0x1], 1 }
 0x80a   :  { %3990 = vsyncpa [#allocation5], 1 }
 0x80b   :  { %3992 = vsyncpa [#allocation5 + $0x1], 1 }

</bundles_post_ra>
